<compile_context>
chip_gen: v7x
topology: tpu7x:2x2x1
jax: 0.10.0
libtpu: 0.0.40
codegen_flags: <defaults>
</compile_context>

<pallas_src>
from functools import partial

import jax
import jax.numpy as jnp
from jax.experimental import pallas as pl
from jax.experimental.pallas import tpu as pltpu


# ----------------------------------------------------------------------------
# Static geometry of the Up / depthnet head (fixed by the module: 15 x 22)
# ----------------------------------------------------------------------------
H_OUT, W_OUT = 15, 22          # Up target size / reduction_4 spatial size
H5, W5 = 8, 11                 # reduction_5 spatial size
WP = W_OUT + 2                 # padded width (pad = 1 each side)        -> 24
HW = H_OUT * W_OUT             # valid spatial positions                  -> 330
HWP = H_OUT * WP               # flat conv-output columns (2 garbage/row) -> 360
NP = 416                       # padded-plane lanes: >= 17*24 + 2 (tap overrun), mult of 8


def _bilinear_matrix(n_in, n_out):
    """(n_out, n_in) matrix implementing align_corners=True bilinear resize."""
    if n_out == 1:
        src = jnp.zeros((1,), jnp.float32)
    else:
        src = jnp.arange(n_out, dtype=jnp.float32) * ((n_in - 1) / (n_out - 1))
    lo = jnp.clip(jnp.floor(src).astype(jnp.int32), 0, n_in - 1)
    hi = jnp.clip(lo + 1, 0, n_in - 1)
    w_hi = src - lo.astype(jnp.float32)
    m = jnp.zeros((n_out, n_in), jnp.float32)
    m = m.at[jnp.arange(n_out), lo].add(1.0 - w_hi)
    m = m.at[jnp.arange(n_out), hi].add(w_hi)
    return m


def _static_operands(dtype=jnp.bfloat16):
    """Constant matmul operands (XLA constant-folds them under jit).

    m4  (HW,   NP): embeds reduction_4 (row-major H*W) into the zero-padded plane.
    m5  (H5*W5,NP): bilinear-upsamples reduction_5 AND embeds it into the plane.
    emb (HWP,  NP): zeroes the 2 garbage columns/row of a conv output and embeds
                    the valid (15 x 22) block back into the padded plane.
    sel (HWP,  HW): drops the 2 garbage columns/row -> the 330 valid positions.
    """
    j = jnp.arange(HW)
    r_int = (j // W_OUT + 1) * WP + (j % W_OUT) + 1          # interior padded column
    wy = _bilinear_matrix(H5, H_OUT)                         # (15, 8)
    wx = _bilinear_matrix(W5, W_OUT)                         # (22, 11)
    kmat = jnp.kron(wy, wx)                                  # (330, 88)
    m5 = jnp.zeros((H5 * W5, NP), jnp.float32).at[:, r_int].set(kmat.T)
    m4 = jnp.zeros((HW, NP), jnp.float32).at[j, r_int].set(1.0)
    q = jnp.arange(HWP)
    valid = ((q % WP) < W_OUT).astype(jnp.float32)
    emb = jnp.zeros((HWP, NP), jnp.float32).at[q, q + WP + 1].set(valid)
    qj = (j // W_OUT) * WP + (j % W_OUT)
    sel = jnp.zeros((HWP, HW), jnp.float32).at[qj, j].set(1.0)
    return m4.astype(dtype), m5.astype(dtype), emb.astype(dtype), sel.astype(dtype)


# ----------------------------------------------------------------------------
# Fused kernel: upsample + concat + (conv3x3+BN+ReLU) x2 + depthnet + softmax
#               + frustum outer product, one batch element per grid step.
# ----------------------------------------------------------------------------
def _cam_encode_kernel(red4_ref, red5_ref, m4_ref, m5_ref, emb_ref, sel_ref,
                       w1_ref, sc1_ref, bi1_ref, w2_ref, sc2_ref, bi2_ref,
                       wd_ref, bd_ref, fr_ref, dl_ref, *, D, C):
    f32 = jnp.float32
    bf16 = jnp.bfloat16

    def conv3x3_bn_relu(pad, w_ref, sc_ref, bi_ref):
        # 3x3 conv (pad=1, no bias) on the flattened padded plane: output column
        # q reads padded column q + dy*WP + dx  ->  9 MXU taps, no im2col copies.
        acc = None
        for dy in range(3):
            for dx in range(3):
                off = dy * WP + dx
                t = jnp.dot(w_ref[dy * 3 + dx], pad[:, off:off + HWP],
                            preferred_element_type=f32)
                acc = t if acc is None else acc + t
        return jnp.maximum(acc * sc_ref[...] + bi_ref[...], 0.0)   # folded BN + ReLU

    # 1) upsample(reduction_5) + cat([reduction_4, up], channel) + zero-pad embed
    p4 = jnp.dot(red4_ref[0], m4_ref[...], preferred_element_type=f32)
    p5 = jnp.dot(red5_ref[0], m5_ref[...], preferred_element_type=f32)
    pad1 = jnp.concatenate([p4, p5], axis=0).astype(bf16)          # (Cin, NP)

    # 2) Up.conv: Conv3x3 + BN + ReLU, twice
    x1 = conv3x3_bn_relu(pad1, w1_ref, sc1_ref, bi1_ref)           # (MID, HWP) f32
    pad2 = jnp.dot(x1.astype(bf16), emb_ref[...],                  # mask + re-embed
                   preferred_element_type=f32).astype(bf16)        # (MID, NP)
    x2 = conv3x3_bn_relu(pad2, w2_ref, sc2_ref, bi2_ref)           # (MID, HWP) f32

    # 3) crop the 2 garbage columns per row -> valid 330 spatial positions
    x2v = jnp.dot(x2.astype(bf16), sel_ref[...],
                  preferred_element_type=f32).astype(bf16)         # (MID, HW)

    # 4) depthnet 1x1 conv (+bias), softmax over depth bins, frustum outer product
    logits = jnp.dot(wd_ref[...], x2v, preferred_element_type=f32) + bd_ref[...]
    d_log = logits[:D, :]                                          # (D, HW)
    feat = logits[D:D + C, :]                                      # (C, HW)
    mx = jnp.max(d_log, axis=0, keepdims=True)
    ex = jnp.exp(d_log - mx)
    depth = ex * pl.reciprocal(jnp.sum(ex, axis=0, keepdims=True), approx=True)
    dl_ref[0] = depth                                              # (D, HW) lane-dense
    for c in range(C):                                             # final (C, D, HW) layout
        fr_ref[0, c] = feat[c:c + 1, :] * depth


def fused_cam_encode(red4, red5, params, *, D, C):
    """red4: (B, C4, HW) f32, red5: (B, C5, H5*W5) f32 (channel-major, spatial flat).
    Returns frustum features (B, C, D, HW) and depth distribution (B, D, HW)."""
    B, C4, _ = red4.shape
    C5 = red5.shape[1]
    MID = params["w1"].shape[1]
    DC = D + C
    bf16 = jnp.bfloat16
    m4, m5, emb, sel = _static_operands()

    const2 = lambda shp: pl.BlockSpec(shp, lambda b: (0, 0))
    const3 = lambda shp: pl.BlockSpec(shp, lambda b: (0, 0, 0))

    fr, dl = pl.pallas_call(
        partial(_cam_encode_kernel, D=D, C=C),
        out_shape=(jax.ShapeDtypeStruct((B, C, D, HW), jnp.float32),
                   jax.ShapeDtypeStruct((B, D, HW), jnp.float32)),
        grid=(B,),
        in_specs=[
            pl.BlockSpec((1, C4, HW), lambda b: (b, 0, 0)),
            pl.BlockSpec((1, C5, H5 * W5), lambda b: (b, 0, 0)),
            const2(m4.shape), const2(m5.shape), const2(emb.shape), const2(sel.shape),
            const3((9, MID, C4 + C5)),
            const2((MID, 1)), const2((MID, 1)),
            const3((9, MID, MID)),
            const2((MID, 1)), const2((MID, 1)),
            const2((DC, MID)), const2((DC, 1)),
        ],
        out_specs=(pl.BlockSpec((1, C, D, HW), lambda b: (b, 0, 0, 0)),
                   pl.BlockSpec((1, D, HW), lambda b: (b, 0, 0))),
        compiler_params=pltpu.CompilerParams(
            dimension_semantics=("parallel",),        # v7x: one batch per TensorCore
            vmem_limit_bytes=32 * 1024 * 1024),
    )(red4.astype(bf16), red5.astype(bf16), m4, m5, emb, sel,
      params["w1"].astype(bf16), params["s1"], params["b1"],
      params["w2"].astype(bf16), params["s2"], params["b2"],
      params["wd"].astype(bf16), params["bd"])
    return fr, dl


# ----------------------------------------------------------------------------
# Parameter setup (deterministic, synthetic), trunk stand-in and full forward
# ----------------------------------------------------------------------------
def _bn_fold(gamma, beta, mean, var, eps=1e-5):
    scale = gamma / jnp.sqrt(var + eps)
    bias = beta - mean * scale
    return scale[:, None], bias[:, None]


def init_params(key, c_img, c4, c5, mid, D, C):
    ks = jax.random.split(key, 16)
    n = lambda k, shape, s=0.05: s * jax.random.normal(k, shape, jnp.float32)
    cin = c4 + c5
    dc = D + C
    p = {}
    # stand-in trunk projections (see TODO in _trunk_standin)
    p["proj4"] = n(ks[0], (c_img, c4))
    p["proj5"] = n(ks[1], (c_img, c5))
    # Up.conv[0..2]: Conv3x3(no bias) + BN + ReLU ; per-tap layout (9, Cout, Cin)
    p["w1"] = n(ks[2], (9, mid, cin))
    p["s1"], p["b1"] = _bn_fold(1.0 + n(ks[3], (mid,), 0.1), n(ks[4], (mid,), 0.1),
                                n(ks[5], (mid,), 0.05),
                                jnp.abs(1.0 + n(ks[6], (mid,), 0.1)))
    # Up.conv[3..5]
    p["w2"] = n(ks[7], (9, mid, mid))
    p["s2"], p["b2"] = _bn_fold(1.0 + n(ks[8], (mid,), 0.1), n(ks[9], (mid,), 0.1),
                                n(ks[10], (mid,), 0.05),
                                jnp.abs(1.0 + n(ks[11], (mid,), 0.1)))
    # depthnet: Conv2d(mid, D+C, kernel_size=1) with bias ; weight transposed (D+C, mid)
    p["wd"] = n(ks[12], (dc, mid))
    p["bd"] = n(ks[13], (dc, 1))
    return p


def _trunk_standin(imags, params):
    # TODO(synk): the pretrained EfficientNet-b0 trunk (MBConv backbone) is not
    # reproduced; a deterministic resize + 1x1 projection supplies the
    # reduction_4 / reduction_5 endpoints consumed by the Up / depthnet head.
    B, c_img = imags.shape[0], imags.shape[1]
    x = imags.astype(jnp.float32)
    r4 = jax.image.resize(x, (B, c_img, H_OUT, W_OUT), method="linear")
    r5 = jax.image.resize(x, (B, c_img, H5, W5), method="linear")
    red4 = jnp.einsum("bchw,co->bohw", r4, params["proj4"]).reshape(B, -1, HW)
    red5 = jnp.einsum("bchw,co->bohw", r5, params["proj5"]).reshape(B, -1, H5 * W5)
    return red4, red5


def cam_encode_forward(imags, params, *, D, C):
    """imags: (B, 3, H, W) NCHW float32 -> (frustum_features (B,C,D,15,22),
    depth distribution (B,D,15,22))."""
    B = imags.shape[0]
    red4, red5 = _trunk_standin(imags, params)
    fr, dl = fused_cam_encode(red4, red5, params, D=D, C=C)
    # the kernel already emits the final (C, D, H*W) layout -> reshape only (free)
    return fr.reshape(B, C, D, H_OUT, W_OUT), dl.reshape(B, D, H_OUT, W_OUT)


# ----------------------------------------------------------------------------
# Pure-JAX f32 reference of the fused head (for verification)
# ----------------------------------------------------------------------------
def reference_forward(red4, red5, params, *, D, C):
    B, C4, _ = red4.shape
    C5 = red5.shape[1]
    r4 = red4.reshape(B, C4, H_OUT, W_OUT)
    r5 = red5.reshape(B, C5, H5, W5)
    wy = _bilinear_matrix(H5, H_OUT)
    wx = _bilinear_matrix(W5, W_OUT)
    up = jnp.einsum("yh,xw,bchw->bcyx", wy, wx, r5)
    x = jnp.concatenate([r4, up], axis=1)

    def conv_bn_relu(x, w9, s, b):
        cout, cin = w9.shape[1], w9.shape[2]
        w = w9.reshape(3, 3, cout, cin).transpose(2, 3, 0, 1)        # OIHW
        y = jax.lax.conv_general_dilated(
            x, w, window_strides=(1, 1), padding=((1, 1), (1, 1)),
            dimension_numbers=("NCHW", "OIHW", "NCHW"))
        return jnp.maximum(y * s.reshape(1, cout, 1, 1) + b.reshape(1, cout, 1, 1), 0.0)

    x = conv_bn_relu(x, params["w1"], params["s1"], params["b1"])
    x = conv_bn_relu(x, params["w2"], params["s2"], params["b2"])
    logits = (jnp.einsum("oc,bchw->bohw", params["wd"], x)
              + params["bd"].reshape(1, -1, 1, 1))
    depth = jax.nn.softmax(logits[:, :D], axis=1)
    feat = logits[:, D:D + C]
    return feat[:, :, None] * depth[:, None], depth


if __name__ == "__main__":
    # Small shapes consistent with the module (channels scaled down).
    B, C_IMG, H_IMG, W_IMG = 2, 3, 64, 88
    C4, C5, MID = 16, 24, 64          # stand-ins for 112, 320, 512
    D, C = 8, 8                       # stand-ins for D = C = 40

    key = jax.random.PRNGKey(0)
    k_img, k_par = jax.random.split(key)
    imags = jax.random.normal(k_img, (B, C_IMG, H_IMG, W_IMG), jnp.float32)
    params = init_params(k_par, C_IMG, C4, C5, MID, D, C)

    fwd = jax.jit(partial(cam_encode_forward, D=D, C=C))
    frustum_features, depth_logits = fwd(imags, params)
    jax.block_until_ready((frustum_features, depth_logits))

    assert frustum_features.shape == (B, C, D, H_OUT, W_OUT)
    assert depth_logits.shape == (B, D, H_OUT, W_OUT)
    # softmax over the depth axis sums to 1 (approx reciprocal -> loose tol)
    assert jnp.allclose(depth_logits.sum(axis=1), 1.0, atol=2e-2)

    # compare against a pure-JAX f32 reference (kernel uses bf16 MXU operands)
    red4, red5 = _trunk_standin(imags, params)
    fr_ref, dl_ref = reference_forward(red4, red5, params, D=D, C=C)
    assert float(jnp.max(jnp.abs(frustum_features - fr_ref))) < 2e-2
    assert float(jnp.max(jnp.abs(depth_logits - dl_ref))) < 2e-2
    print("KERNEL_OK")
</pallas_src>

<mosaic_0001>
module attributes {stable_mosaic.version = 11 : i64} {
  func.func @_cam_encode_kernel(%arg0: i32, %arg1: memref<1x16x330xbf16, #tpu.memory_space<vmem>>, %arg2: memref<1x24x88xbf16, #tpu.memory_space<vmem>>, %arg3: memref<330x416xbf16, #tpu.memory_space<vmem>>, %arg4: memref<88x416xbf16, #tpu.memory_space<vmem>>, %arg5: memref<360x416xbf16, #tpu.memory_space<vmem>>, %arg6: memref<360x330xbf16, #tpu.memory_space<vmem>>, %arg7: memref<9x64x40xbf16, #tpu.memory_space<vmem>>, %arg8: memref<64x1xf32, #tpu.memory_space<vmem>>, %arg9: memref<64x1xf32, #tpu.memory_space<vmem>>, %arg10: memref<9x64x64xbf16, #tpu.memory_space<vmem>>, %arg11: memref<64x1xf32, #tpu.memory_space<vmem>>, %arg12: memref<64x1xf32, #tpu.memory_space<vmem>>, %arg13: memref<16x64xbf16, #tpu.memory_space<vmem>>, %arg14: memref<16x1xf32, #tpu.memory_space<vmem>>, %arg15: memref<1x8x8x330xf32, #tpu.memory_space<vmem>>, %arg16: memref<1x8x330xf32, #tpu.memory_space<vmem>>) attributes {dimension_semantics = [#tpu.dimension_semantics<parallel>], iteration_bounds = array<i64: 2>, scalar_prefetch = 0 : i64, scratch_operands = 0 : i64, tpu.core_type = #tpu.core_type<tc>, window_params = [{transform_indices = @transform_0, window_bounds = array<i64: 1, 16, 330>}, {transform_indices = @transform_1, window_bounds = array<i64: 1, 24, 88>}, {pipeline_mode = #tpu.pipeline_mode<synchronous>, transform_indices = @transform_2, window_bounds = array<i64: 330, 416>}, {pipeline_mode = #tpu.pipeline_mode<synchronous>, transform_indices = @transform_3, window_bounds = array<i64: 88, 416>}, {pipeline_mode = #tpu.pipeline_mode<synchronous>, transform_indices = @transform_4, window_bounds = array<i64: 360, 416>}, {pipeline_mode = #tpu.pipeline_mode<synchronous>, transform_indices = @transform_5, window_bounds = array<i64: 360, 330>}, {pipeline_mode = #tpu.pipeline_mode<synchronous>, transform_indices = @transform_6, window_bounds = array<i64: 9, 64, 40>}, {pipeline_mode = #tpu.pipeline_mode<synchronous>, transform_indices = @transform_7, window_bounds = array<i64: 64, 1>}, {pipeline_mode = #tpu.pipeline_mode<synchronous>, transform_indices = @transform_8, window_bounds = array<i64: 64, 1>}, {pipeline_mode = #tpu.pipeline_mode<synchronous>, transform_indices = @transform_9, window_bounds = array<i64: 9, 64, 64>}, {pipeline_mode = #tpu.pipeline_mode<synchronous>, transform_indices = @transform_10, window_bounds = array<i64: 64, 1>}, {pipeline_mode = #tpu.pipeline_mode<synchronous>, transform_indices = @transform_11, window_bounds = array<i64: 64, 1>}, {pipeline_mode = #tpu.pipeline_mode<synchronous>, transform_indices = @transform_12, window_bounds = array<i64: 16, 64>}, {pipeline_mode = #tpu.pipeline_mode<synchronous>, transform_indices = @transform_13, window_bounds = array<i64: 16, 1>}, {transform_indices = @transform_14, window_bounds = array<i64: 1, 8, 8, 330>}, {transform_indices = @transform_15, window_bounds = array<i64: 1, 8, 330>}]} {
    %c0 = arith.constant 0 : index
    %c0_0 = arith.constant 0 : index
    %c0_1 = arith.constant 0 : index
    %0 = vector.load %arg1[%c0, %c0_0, %c0_1] : memref<1x16x330xbf16, #tpu.memory_space<vmem>>, vector<1x16x330xbf16>
    %1 = vector.shape_cast %0 : vector<1x16x330xbf16> to vector<16x330xbf16>
    %c0_2 = arith.constant 0 : index
    %c0_3 = arith.constant 0 : index
    %2 = vector.load %arg3[%c0_2, %c0_3] : memref<330x416xbf16, #tpu.memory_space<vmem>>, vector<330x416xbf16>
    %cst = arith.constant dense<0.000000e+00> : vector<16x416xf32>
    %3 = tpu.matmul %1, %2, %cst {dimension_numbers = #tpu.dot_dimension_numbers<[1], [0], [0], [1], [0, 0, 1, 1], [], []>} : vector<16x330xbf16>, vector<330x416xbf16>, vector<16x416xf32> -> vector<16x416xf32>
    %c0_4 = arith.constant 0 : index
    %c0_5 = arith.constant 0 : index
    %c0_6 = arith.constant 0 : index
    %4 = vector.load %arg2[%c0_4, %c0_5, %c0_6] : memref<1x24x88xbf16, #tpu.memory_space<vmem>>, vector<1x24x88xbf16>
    %5 = vector.shape_cast %4 : vector<1x24x88xbf16> to vector<24x88xbf16>
    %c0_7 = arith.constant 0 : index
    %c0_8 = arith.constant 0 : index
    %6 = vector.load %arg4[%c0_7, %c0_8] : memref<88x416xbf16, #tpu.memory_space<vmem>>, vector<88x416xbf16>
    %cst_9 = arith.constant dense<0.000000e+00> : vector<24x416xf32>
    %7 = tpu.matmul %5, %6, %cst_9 {dimension_numbers = #tpu.dot_dimension_numbers<[1], [0], [0], [1], [0, 0, 1, 1], [], []>} : vector<24x88xbf16>, vector<88x416xbf16>, vector<24x416xf32> -> vector<24x416xf32>
    %8 = tpu.concatenate %3, %7 in 0 : vector<16x416xf32>, vector<24x416xf32> -> vector<40x416xf32>
    %9 = arith.truncf %8 : vector<40x416xf32> to vector<40x416xbf16>
    %c0_10 = arith.constant 0 : index
    %c0_11 = arith.constant 0 : index
    %c0_12 = arith.constant 0 : index
    %10 = vector.load %arg7[%c0_10, %c0_11, %c0_12] : memref<9x64x40xbf16, #tpu.memory_space<vmem>>, vector<1x64x40xbf16>
    %11 = vector.shape_cast %10 : vector<1x64x40xbf16> to vector<64x40xbf16>
    %12 = vector.extract_strided_slice %9 {offsets = [0, 0], sizes = [40, 360], strides = [1, 1]} : vector<40x416xbf16> to vector<40x360xbf16>
    %cst_13 = arith.constant dense<0.000000e+00> : vector<64x360xf32>
    %13 = tpu.matmul %11, %12, %cst_13 {dimension_numbers = #tpu.dot_dimension_numbers<[1], [0], [0], [1], [0, 0, 1, 1], [], []>} : vector<64x40xbf16>, vector<40x360xbf16>, vector<64x360xf32> -> vector<64x360xf32>
    %c1 = arith.constant 1 : index
    %c0_14 = arith.constant 0 : index
    %c0_15 = arith.constant 0 : index
    %14 = vector.load %arg7[%c1, %c0_14, %c0_15] : memref<9x64x40xbf16, #tpu.memory_space<vmem>>, vector<1x64x40xbf16>
    %15 = vector.shape_cast %14 : vector<1x64x40xbf16> to vector<64x40xbf16>
    %16 = vector.extract_strided_slice %9 {offsets = [0, 1], sizes = [40, 360], strides = [1, 1]} : vector<40x416xbf16> to vector<40x360xbf16>
    %cst_16 = arith.constant dense<0.000000e+00> : vector<64x360xf32>
    %17 = tpu.matmul %15, %16, %cst_16 {dimension_numbers = #tpu.dot_dimension_numbers<[1], [0], [0], [1], [0, 0, 1, 1], [], []>} : vector<64x40xbf16>, vector<40x360xbf16>, vector<64x360xf32> -> vector<64x360xf32>
    %18 = arith.addf %13, %17 : vector<64x360xf32>
    %c2 = arith.constant 2 : index
    %c0_17 = arith.constant 0 : index
    %c0_18 = arith.constant 0 : index
    %19 = vector.load %arg7[%c2, %c0_17, %c0_18] : memref<9x64x40xbf16, #tpu.memory_space<vmem>>, vector<1x64x40xbf16>
    %20 = vector.shape_cast %19 : vector<1x64x40xbf16> to vector<64x40xbf16>
    %21 = vector.extract_strided_slice %9 {offsets = [0, 2], sizes = [40, 360], strides = [1, 1]} : vector<40x416xbf16> to vector<40x360xbf16>
    %cst_19 = arith.constant dense<0.000000e+00> : vector<64x360xf32>
    %22 = tpu.matmul %20, %21, %cst_19 {dimension_numbers = #tpu.dot_dimension_numbers<[1], [0], [0], [1], [0, 0, 1, 1], [], []>} : vector<64x40xbf16>, vector<40x360xbf16>, vector<64x360xf32> -> vector<64x360xf32>
    %23 = arith.addf %18, %22 : vector<64x360xf32>
    %c3 = arith.constant 3 : index
    %c0_20 = arith.constant 0 : index
    %c0_21 = arith.constant 0 : index
    %24 = vector.load %arg7[%c3, %c0_20, %c0_21] : memref<9x64x40xbf16, #tpu.memory_space<vmem>>, vector<1x64x40xbf16>
    %25 = vector.shape_cast %24 : vector<1x64x40xbf16> to vector<64x40xbf16>
    %26 = vector.extract_strided_slice %9 {offsets = [0, 24], sizes = [40, 360], strides = [1, 1]} : vector<40x416xbf16> to vector<40x360xbf16>
    %cst_22 = arith.constant dense<0.000000e+00> : vector<64x360xf32>
    %27 = tpu.matmul %25, %26, %cst_22 {dimension_numbers = #tpu.dot_dimension_numbers<[1], [0], [0], [1], [0, 0, 1, 1], [], []>} : vector<64x40xbf16>, vector<40x360xbf16>, vector<64x360xf32> -> vector<64x360xf32>
    %28 = arith.addf %23, %27 : vector<64x360xf32>
    %c4 = arith.constant 4 : index
    %c0_23 = arith.constant 0 : index
    %c0_24 = arith.constant 0 : index
    %29 = vector.load %arg7[%c4, %c0_23, %c0_24] : memref<9x64x40xbf16, #tpu.memory_space<vmem>>, vector<1x64x40xbf16>
    %30 = vector.shape_cast %29 : vector<1x64x40xbf16> to vector<64x40xbf16>
    %31 = vector.extract_strided_slice %9 {offsets = [0, 25], sizes = [40, 360], strides = [1, 1]} : vector<40x416xbf16> to vector<40x360xbf16>
    %cst_25 = arith.constant dense<0.000000e+00> : vector<64x360xf32>
    %32 = tpu.matmul %30, %31, %cst_25 {dimension_numbers = #tpu.dot_dimension_numbers<[1], [0], [0], [1], [0, 0, 1, 1], [], []>} : vector<64x40xbf16>, vector<40x360xbf16>, vector<64x360xf32> -> vector<64x360xf32>
    %33 = arith.addf %28, %32 : vector<64x360xf32>
    %c5 = arith.constant 5 : index
    %c0_26 = arith.constant 0 : index
    %c0_27 = arith.constant 0 : index
    %34 = vector.load %arg7[%c5, %c0_26, %c0_27] : memref<9x64x40xbf16, #tpu.memory_space<vmem>>, vector<1x64x40xbf16>
    %35 = vector.shape_cast %34 : vector<1x64x40xbf16> to vector<64x40xbf16>
    %36 = vector.extract_strided_slice %9 {offsets = [0, 26], sizes = [40, 360], strides = [1, 1]} : vector<40x416xbf16> to vector<40x360xbf16>
    %cst_28 = arith.constant dense<0.000000e+00> : vector<64x360xf32>
    %37 = tpu.matmul %35, %36, %cst_28 {dimension_numbers = #tpu.dot_dimension_numbers<[1], [0], [0], [1], [0, 0, 1, 1], [], []>} : vector<64x40xbf16>, vector<40x360xbf16>, vector<64x360xf32> -> vector<64x360xf32>
    %38 = arith.addf %33, %37 : vector<64x360xf32>
    %c6 = arith.constant 6 : index
    %c0_29 = arith.constant 0 : index
    %c0_30 = arith.constant 0 : index
    %39 = vector.load %arg7[%c6, %c0_29, %c0_30] : memref<9x64x40xbf16, #tpu.memory_space<vmem>>, vector<1x64x40xbf16>
    %40 = vector.shape_cast %39 : vector<1x64x40xbf16> to vector<64x40xbf16>
    %41 = vector.extract_strided_slice %9 {offsets = [0, 48], sizes = [40, 360], strides = [1, 1]} : vector<40x416xbf16> to vector<40x360xbf16>
    %cst_31 = arith.constant dense<0.000000e+00> : vector<64x360xf32>
    %42 = tpu.matmul %40, %41, %cst_31 {dimension_numbers = #tpu.dot_dimension_numbers<[1], [0], [0], [1], [0, 0, 1, 1], [], []>} : vector<64x40xbf16>, vector<40x360xbf16>, vector<64x360xf32> -> vector<64x360xf32>
    %43 = arith.addf %38, %42 : vector<64x360xf32>
    %c7 = arith.constant 7 : index
    %c0_32 = arith.constant 0 : index
    %c0_33 = arith.constant 0 : index
    %44 = vector.load %arg7[%c7, %c0_32, %c0_33] : memref<9x64x40xbf16, #tpu.memory_space<vmem>>, vector<1x64x40xbf16>
    %45 = vector.shape_cast %44 : vector<1x64x40xbf16> to vector<64x40xbf16>
    %46 = vector.extract_strided_slice %9 {offsets = [0, 49], sizes = [40, 360], strides = [1, 1]} : vector<40x416xbf16> to vector<40x360xbf16>
    %cst_34 = arith.constant dense<0.000000e+00> : vector<64x360xf32>
    %47 = tpu.matmul %45, %46, %cst_34 {dimension_numbers = #tpu.dot_dimension_numbers<[1], [0], [0], [1], [0, 0, 1, 1], [], []>} : vector<64x40xbf16>, vector<40x360xbf16>, vector<64x360xf32> -> vector<64x360xf32>
    %48 = arith.addf %43, %47 : vector<64x360xf32>
    %c8 = arith.constant 8 : index
    %c0_35 = arith.constant 0 : index
    %c0_36 = arith.constant 0 : index
    %49 = vector.load %arg7[%c8, %c0_35, %c0_36] : memref<9x64x40xbf16, #tpu.memory_space<vmem>>, vector<1x64x40xbf16>
    %50 = vector.shape_cast %49 : vector<1x64x40xbf16> to vector<64x40xbf16>
    %51 = vector.extract_strided_slice %9 {offsets = [0, 50], sizes = [40, 360], strides = [1, 1]} : vector<40x416xbf16> to vector<40x360xbf16>
    %cst_37 = arith.constant dense<0.000000e+00> : vector<64x360xf32>
    %52 = tpu.matmul %50, %51, %cst_37 {dimension_numbers = #tpu.dot_dimension_numbers<[1], [0], [0], [1], [0, 0, 1, 1], [], []>} : vector<64x40xbf16>, vector<40x360xbf16>, vector<64x360xf32> -> vector<64x360xf32>
    %53 = arith.addf %48, %52 : vector<64x360xf32>
    %c0_38 = arith.constant 0 : index
    %c0_39 = arith.constant 0 : index
    %54 = vector.load %arg8[%c0_38, %c0_39] : memref<64x1xf32, #tpu.memory_space<vmem>>, vector<64x1xf32>
    %55 = vector.broadcast %54 : vector<64x1xf32> to vector<64x360xf32>
    %56 = arith.mulf %53, %55 : vector<64x360xf32>
    %c0_40 = arith.constant 0 : index
    %c0_41 = arith.constant 0 : index
    %57 = vector.load %arg9[%c0_40, %c0_41] : memref<64x1xf32, #tpu.memory_space<vmem>>, vector<64x1xf32>
    %58 = vector.broadcast %57 : vector<64x1xf32> to vector<64x360xf32>
    %59 = arith.addf %56, %58 : vector<64x360xf32>
    %cst_42 = arith.constant 0.000000e+00 : f32
    %60 = vector.broadcast %cst_42 : f32 to vector<64x360xf32>
    %61 = arith.maximumf %59, %60 : vector<64x360xf32>
    %62 = arith.truncf %61 : vector<64x360xf32> to vector<64x360xbf16>
    %c0_43 = arith.constant 0 : index
    %c0_44 = arith.constant 0 : index
    %63 = vector.load %arg5[%c0_43, %c0_44] : memref<360x416xbf16, #tpu.memory_space<vmem>>, vector<360x416xbf16>
    %cst_45 = arith.constant dense<0.000000e+00> : vector<64x416xf32>
    %64 = tpu.matmul %62, %63, %cst_45 {dimension_numbers = #tpu.dot_dimension_numbers<[1], [0], [0], [1], [0, 0, 1, 1], [], []>} : vector<64x360xbf16>, vector<360x416xbf16>, vector<64x416xf32> -> vector<64x416xf32>
    %65 = arith.truncf %64 : vector<64x416xf32> to vector<64x416xbf16>
    %c0_46 = arith.constant 0 : index
    %c0_47 = arith.constant 0 : index
    %c0_48 = arith.constant 0 : index
    %66 = vector.load %arg10[%c0_46, %c0_47, %c0_48] : memref<9x64x64xbf16, #tpu.memory_space<vmem>>, vector<1x64x64xbf16>
    %67 = vector.shape_cast %66 : vector<1x64x64xbf16> to vector<64x64xbf16>
    %68 = vector.extract_strided_slice %65 {offsets = [0, 0], sizes = [64, 360], strides = [1, 1]} : vector<64x416xbf16> to vector<64x360xbf16>
    %cst_49 = arith.constant dense<0.000000e+00> : vector<64x360xf32>
    %69 = tpu.matmul %67, %68, %cst_49 {dimension_numbers = #tpu.dot_dimension_numbers<[1], [0], [0], [1], [0, 0, 1, 1], [], []>} : vector<64x64xbf16>, vector<64x360xbf16>, vector<64x360xf32> -> vector<64x360xf32>
    %c1_50 = arith.constant 1 : index
    %c0_51 = arith.constant 0 : index
    %c0_52 = arith.constant 0 : index
    %70 = vector.load %arg10[%c1_50, %c0_51, %c0_52] : memref<9x64x64xbf16, #tpu.memory_space<vmem>>, vector<1x64x64xbf16>
    %71 = vector.shape_cast %70 : vector<1x64x64xbf16> to vector<64x64xbf16>
    %72 = vector.extract_strided_slice %65 {offsets = [0, 1], sizes = [64, 360], strides = [1, 1]} : vector<64x416xbf16> to vector<64x360xbf16>
    %cst_53 = arith.constant dense<0.000000e+00> : vector<64x360xf32>
    %73 = tpu.matmul %71, %72, %cst_53 {dimension_numbers = #tpu.dot_dimension_numbers<[1], [0], [0], [1], [0, 0, 1, 1], [], []>} : vector<64x64xbf16>, vector<64x360xbf16>, vector<64x360xf32> -> vector<64x360xf32>
    %74 = arith.addf %69, %73 : vector<64x360xf32>
    %c2_54 = arith.constant 2 : index
    %c0_55 = arith.constant 0 : index
    %c0_56 = arith.constant 0 : index
    %75 = vector.load %arg10[%c2_54, %c0_55, %c0_56] : memref<9x64x64xbf16, #tpu.memory_space<vmem>>, vector<1x64x64xbf16>
    %76 = vector.shape_cast %75 : vector<1x64x64xbf16> to vector<64x64xbf16>
    %77 = vector.extract_strided_slice %65 {offsets = [0, 2], sizes = [64, 360], strides = [1, 1]} : vector<64x416xbf16> to vector<64x360xbf16>
    %cst_57 = arith.constant dense<0.000000e+00> : vector<64x360xf32>
    %78 = tpu.matmul %76, %77, %cst_57 {dimension_numbers = #tpu.dot_dimension_numbers<[1], [0], [0], [1], [0, 0, 1, 1], [], []>} : vector<64x64xbf16>, vector<64x360xbf16>, vector<64x360xf32> -> vector<64x360xf32>
    %79 = arith.addf %74, %78 : vector<64x360xf32>
    %c3_58 = arith.constant 3 : index
    %c0_59 = arith.constant 0 : index
    %c0_60 = arith.constant 0 : index
    %80 = vector.load %arg10[%c3_58, %c0_59, %c0_60] : memref<9x64x64xbf16, #tpu.memory_space<vmem>>, vector<1x64x64xbf16>
    %81 = vector.shape_cast %80 : vector<1x64x64xbf16> to vector<64x64xbf16>
    %82 = vector.extract_strided_slice %65 {offsets = [0, 24], sizes = [64, 360], strides = [1, 1]} : vector<64x416xbf16> to vector<64x360xbf16>
    %cst_61 = arith.constant dense<0.000000e+00> : vector<64x360xf32>
    %83 = tpu.matmul %81, %82, %cst_61 {dimension_numbers = #tpu.dot_dimension_numbers<[1], [0], [0], [1], [0, 0, 1, 1], [], []>} : vector<64x64xbf16>, vector<64x360xbf16>, vector<64x360xf32> -> vector<64x360xf32>
    %84 = arith.addf %79, %83 : vector<64x360xf32>
    %c4_62 = arith.constant 4 : index
    %c0_63 = arith.constant 0 : index
    %c0_64 = arith.constant 0 : index
    %85 = vector.load %arg10[%c4_62, %c0_63, %c0_64] : memref<9x64x64xbf16, #tpu.memory_space<vmem>>, vector<1x64x64xbf16>
    %86 = vector.shape_cast %85 : vector<1x64x64xbf16> to vector<64x64xbf16>
    %87 = vector.extract_strided_slice %65 {offsets = [0, 25], sizes = [64, 360], strides = [1, 1]} : vector<64x416xbf16> to vector<64x360xbf16>
    %cst_65 = arith.constant dense<0.000000e+00> : vector<64x360xf32>
    %88 = tpu.matmul %86, %87, %cst_65 {dimension_numbers = #tpu.dot_dimension_numbers<[1], [0], [0], [1], [0, 0, 1, 1], [], []>} : vector<64x64xbf16>, vector<64x360xbf16>, vector<64x360xf32> -> vector<64x360xf32>
    %89 = arith.addf %84, %88 : vector<64x360xf32>
    %c5_66 = arith.constant 5 : index
    %c0_67 = arith.constant 0 : index
    %c0_68 = arith.constant 0 : index
    %90 = vector.load %arg10[%c5_66, %c0_67, %c0_68] : memref<9x64x64xbf16, #tpu.memory_space<vmem>>, vector<1x64x64xbf16>
    %91 = vector.shape_cast %90 : vector<1x64x64xbf16> to vector<64x64xbf16>
    %92 = vector.extract_strided_slice %65 {offsets = [0, 26], sizes = [64, 360], strides = [1, 1]} : vector<64x416xbf16> to vector<64x360xbf16>
    %cst_69 = arith.constant dense<0.000000e+00> : vector<64x360xf32>
    %93 = tpu.matmul %91, %92, %cst_69 {dimension_numbers = #tpu.dot_dimension_numbers<[1], [0], [0], [1], [0, 0, 1, 1], [], []>} : vector<64x64xbf16>, vector<64x360xbf16>, vector<64x360xf32> -> vector<64x360xf32>
    %94 = arith.addf %89, %93 : vector<64x360xf32>
    %c6_70 = arith.constant 6 : index
    %c0_71 = arith.constant 0 : index
    %c0_72 = arith.constant 0 : index
    %95 = vector.load %arg10[%c6_70, %c0_71, %c0_72] : memref<9x64x64xbf16, #tpu.memory_space<vmem>>, vector<1x64x64xbf16>
    %96 = vector.shape_cast %95 : vector<1x64x64xbf16> to vector<64x64xbf16>
    %97 = vector.extract_strided_slice %65 {offsets = [0, 48], sizes = [64, 360], strides = [1, 1]} : vector<64x416xbf16> to vector<64x360xbf16>
    %cst_73 = arith.constant dense<0.000000e+00> : vector<64x360xf32>
    %98 = tpu.matmul %96, %97, %cst_73 {dimension_numbers = #tpu.dot_dimension_numbers<[1], [0], [0], [1], [0, 0, 1, 1], [], []>} : vector<64x64xbf16>, vector<64x360xbf16>, vector<64x360xf32> -> vector<64x360xf32>
    %99 = arith.addf %94, %98 : vector<64x360xf32>
    %c7_74 = arith.constant 7 : index
    %c0_75 = arith.constant 0 : index
    %c0_76 = arith.constant 0 : index
    %100 = vector.load %arg10[%c7_74, %c0_75, %c0_76] : memref<9x64x64xbf16, #tpu.memory_space<vmem>>, vector<1x64x64xbf16>
    %101 = vector.shape_cast %100 : vector<1x64x64xbf16> to vector<64x64xbf16>
    %102 = vector.extract_strided_slice %65 {offsets = [0, 49], sizes = [64, 360], strides = [1, 1]} : vector<64x416xbf16> to vector<64x360xbf16>
    %cst_77 = arith.constant dense<0.000000e+00> : vector<64x360xf32>
    %103 = tpu.matmul %101, %102, %cst_77 {dimension_numbers = #tpu.dot_dimension_numbers<[1], [0], [0], [1], [0, 0, 1, 1], [], []>} : vector<64x64xbf16>, vector<64x360xbf16>, vector<64x360xf32> -> vector<64x360xf32>
    %104 = arith.addf %99, %103 : vector<64x360xf32>
    %c8_78 = arith.constant 8 : index
    %c0_79 = arith.constant 0 : index
    %c0_80 = arith.constant 0 : index
    %105 = vector.load %arg10[%c8_78, %c0_79, %c0_80] : memref<9x64x64xbf16, #tpu.memory_space<vmem>>, vector<1x64x64xbf16>
    %106 = vector.shape_cast %105 : vector<1x64x64xbf16> to vector<64x64xbf16>
    %107 = vector.extract_strided_slice %65 {offsets = [0, 50], sizes = [64, 360], strides = [1, 1]} : vector<64x416xbf16> to vector<64x360xbf16>
    %cst_81 = arith.constant dense<0.000000e+00> : vector<64x360xf32>
    %108 = tpu.matmul %106, %107, %cst_81 {dimension_numbers = #tpu.dot_dimension_numbers<[1], [0], [0], [1], [0, 0, 1, 1], [], []>} : vector<64x64xbf16>, vector<64x360xbf16>, vector<64x360xf32> -> vector<64x360xf32>
    %109 = arith.addf %104, %108 : vector<64x360xf32>
    %c0_82 = arith.constant 0 : index
    %c0_83 = arith.constant 0 : index
    %110 = vector.load %arg11[%c0_82, %c0_83] : memref<64x1xf32, #tpu.memory_space<vmem>>, vector<64x1xf32>
    %111 = vector.broadcast %110 : vector<64x1xf32> to vector<64x360xf32>
    %112 = arith.mulf %109, %111 : vector<64x360xf32>
    %c0_84 = arith.constant 0 : index
    %c0_85 = arith.constant 0 : index
    %113 = vector.load %arg12[%c0_84, %c0_85] : memref<64x1xf32, #tpu.memory_space<vmem>>, vector<64x1xf32>
    %114 = vector.broadcast %113 : vector<64x1xf32> to vector<64x360xf32>
    %115 = arith.addf %112, %114 : vector<64x360xf32>
    %cst_86 = arith.constant 0.000000e+00 : f32
    %116 = vector.broadcast %cst_86 : f32 to vector<64x360xf32>
    %117 = arith.maximumf %115, %116 : vector<64x360xf32>
    %118 = arith.truncf %117 : vector<64x360xf32> to vector<64x360xbf16>
    %c0_87 = arith.constant 0 : index
    %c0_88 = arith.constant 0 : index
    %119 = vector.load %arg6[%c0_87, %c0_88] : memref<360x330xbf16, #tpu.memory_space<vmem>>, vector<360x330xbf16>
    %cst_89 = arith.constant dense<0.000000e+00> : vector<64x330xf32>
    %120 = tpu.matmul %118, %119, %cst_89 {dimension_numbers = #tpu.dot_dimension_numbers<[1], [0], [0], [1], [0, 0, 1, 1], [], []>} : vector<64x360xbf16>, vector<360x330xbf16>, vector<64x330xf32> -> vector<64x330xf32>
    %121 = arith.truncf %120 : vector<64x330xf32> to vector<64x330xbf16>
    %c0_90 = arith.constant 0 : index
    %c0_91 = arith.constant 0 : index
    %122 = vector.load %arg13[%c0_90, %c0_91] : memref<16x64xbf16, #tpu.memory_space<vmem>>, vector<16x64xbf16>
    %cst_92 = arith.constant dense<0.000000e+00> : vector<16x330xf32>
    %123 = tpu.matmul %122, %121, %cst_92 {dimension_numbers = #tpu.dot_dimension_numbers<[1], [0], [0], [1], [0, 0, 1, 1], [], []>} : vector<16x64xbf16>, vector<64x330xbf16>, vector<16x330xf32> -> vector<16x330xf32>
    %c0_93 = arith.constant 0 : index
    %c0_94 = arith.constant 0 : index
    %124 = vector.load %arg14[%c0_93, %c0_94] : memref<16x1xf32, #tpu.memory_space<vmem>>, vector<16x1xf32>
    %125 = vector.broadcast %124 : vector<16x1xf32> to vector<16x330xf32>
    %126 = arith.addf %123, %125 : vector<16x330xf32>
    %127 = vector.extract_strided_slice %126 {offsets = [0, 0], sizes = [8, 330], strides = [1, 1]} : vector<16x330xf32> to vector<8x330xf32>
    %128 = vector.extract_strided_slice %126 {offsets = [8, 0], sizes = [8, 330], strides = [1, 1]} : vector<16x330xf32> to vector<8x330xf32>
    %cst_95 = arith.constant dense<0xFF800000> : vector<330xf32>
    %129 = vector.multi_reduction <maximumf>, %127, %cst_95 [0] : vector<8x330xf32> to vector<330xf32>
    %130 = vector.shape_cast %129 : vector<330xf32> to vector<1x330xf32>
    %131 = vector.broadcast %130 : vector<1x330xf32> to vector<8x330xf32>
    %132 = arith.subf %127, %131 : vector<8x330xf32>
    %133 = math.exp %132 : vector<8x330xf32>
    %cst_96 = arith.constant dense<0.000000e+00> : vector<330xf32>
    %134 = vector.multi_reduction <add>, %133, %cst_96 [0] : vector<8x330xf32> to vector<330xf32>
    %135 = vector.shape_cast %134 : vector<330xf32> to vector<1x330xf32>
    %136 = tpu.reciprocal %135 {approx = true} : vector<1x330xf32> -> vector<1x330xf32>
    %137 = vector.broadcast %136 : vector<1x330xf32> to vector<8x330xf32>
    %138 = arith.mulf %133, %137 : vector<8x330xf32>
    %c0_97 = arith.constant 0 : index
    %c0_98 = arith.constant 0 : index
    %c0_99 = arith.constant 0 : index
    %139 = vector.load %arg16[%c0_97, %c0_98, %c0_99] : memref<1x8x330xf32, #tpu.memory_space<vmem>>, vector<1x8x330xf32>
    %140 = vector.shape_cast %139 : vector<1x8x330xf32> to vector<8x330xf32>
    %141 = vector.shape_cast %138 : vector<8x330xf32> to vector<1x8x330xf32>
    tpu.vector_store %arg16[%c0_97, %c0_98, %c0_99], %141 {strides = array<i32>} : memref<1x8x330xf32, #tpu.memory_space<vmem>>, vector<1x8x330xf32>,
    %142 = vector.extract_strided_slice %128 {offsets = [0, 0], sizes = [1, 330], strides = [1, 1]} : vector<8x330xf32> to vector<1x330xf32>
    %143 = vector.broadcast %142 : vector<1x330xf32> to vector<8x330xf32>
    %144 = arith.mulf %143, %138 : vector<8x330xf32>
    %c0_100 = arith.constant 0 : index
    %c0_101 = arith.constant 0 : index
    %c0_102 = arith.constant 0 : index
    %c0_103 = arith.constant 0 : index
    %145 = vector.load %arg15[%c0_100, %c0_101, %c0_102, %c0_103] : memref<1x8x8x330xf32, #tpu.memory_space<vmem>>, vector<1x1x8x330xf32>
    %146 = vector.shape_cast %145 : vector<1x1x8x330xf32> to vector<8x330xf32>
    %147 = vector.shape_cast %144 : vector<8x330xf32> to vector<1x1x8x330xf32>
    tpu.vector_store %arg15[%c0_100, %c0_101, %c0_102, %c0_103], %147 {strides = array<i32>} : memref<1x8x8x330xf32, #tpu.memory_space<vmem>>, vector<1x1x8x330xf32>,
    %148 = vector.extract_strided_slice %128 {offsets = [1, 0], sizes = [1, 330], strides = [1, 1]} : vector<8x330xf32> to vector<1x330xf32>
    %149 = vector.broadcast %148 : vector<1x330xf32> to vector<8x330xf32>
    %150 = arith.mulf %149, %138 : vector<8x330xf32>
    %c0_104 = arith.constant 0 : index
    %c1_105 = arith.constant 1 : index
    %c0_106 = arith.constant 0 : index
    %c0_107 = arith.constant 0 : index
    %151 = vector.load %arg15[%c0_104, %c1_105, %c0_106, %c0_107] : memref<1x8x8x330xf32, #tpu.memory_space<vmem>>, vector<1x1x8x330xf32>
    %152 = vector.shape_cast %151 : vector<1x1x8x330xf32> to vector<8x330xf32>
    %153 = vector.shape_cast %150 : vector<8x330xf32> to vector<1x1x8x330xf32>
    tpu.vector_store %arg15[%c0_104, %c1_105, %c0_106, %c0_107], %153 {strides = array<i32>} : memref<1x8x8x330xf32, #tpu.memory_space<vmem>>, vector<1x1x8x330xf32>,
    %154 = vector.extract_strided_slice %128 {offsets = [2, 0], sizes = [1, 330], strides = [1, 1]} : vector<8x330xf32> to vector<1x330xf32>
    %155 = vector.broadcast %154 : vector<1x330xf32> to vector<8x330xf32>
    %156 = arith.mulf %155, %138 : vector<8x330xf32>
    %c0_108 = arith.constant 0 : index
    %c2_109 = arith.constant 2 : index
    %c0_110 = arith.constant 0 : index
    %c0_111 = arith.constant 0 : index
    %157 = vector.load %arg15[%c0_108, %c2_109, %c0_110, %c0_111] : memref<1x8x8x330xf32, #tpu.memory_space<vmem>>, vector<1x1x8x330xf32>
    %158 = vector.shape_cast %157 : vector<1x1x8x330xf32> to vector<8x330xf32>
    %159 = vector.shape_cast %156 : vector<8x330xf32> to vector<1x1x8x330xf32>
    tpu.vector_store %arg15[%c0_108, %c2_109, %c0_110, %c0_111], %159 {strides = array<i32>} : memref<1x8x8x330xf32, #tpu.memory_space<vmem>>, vector<1x1x8x330xf32>,
    %160 = vector.extract_strided_slice %128 {offsets = [3, 0], sizes = [1, 330], strides = [1, 1]} : vector<8x330xf32> to vector<1x330xf32>
    %161 = vector.broadcast %160 : vector<1x330xf32> to vector<8x330xf32>
    %162 = arith.mulf %161, %138 : vector<8x330xf32>
    %c0_112 = arith.constant 0 : index
    %c3_113 = arith.constant 3 : index
    %c0_114 = arith.constant 0 : index
    %c0_115 = arith.constant 0 : index
    %163 = vector.load %arg15[%c0_112, %c3_113, %c0_114, %c0_115] : memref<1x8x8x330xf32, #tpu.memory_space<vmem>>, vector<1x1x8x330xf32>
    %164 = vector.shape_cast %163 : vector<1x1x8x330xf32> to vector<8x330xf32>
    %165 = vector.shape_cast %162 : vector<8x330xf32> to vector<1x1x8x330xf32>
    tpu.vector_store %arg15[%c0_112, %c3_113, %c0_114, %c0_115], %165 {strides = array<i32>} : memref<1x8x8x330xf32, #tpu.memory_space<vmem>>, vector<1x1x8x330xf32>,
    %166 = vector.extract_strided_slice %128 {offsets = [4, 0], sizes = [1, 330], strides = [1, 1]} : vector<8x330xf32> to vector<1x330xf32>
    %167 = vector.broadcast %166 : vector<1x330xf32> to vector<8x330xf32>
    %168 = arith.mulf %167, %138 : vector<8x330xf32>
    %c0_116 = arith.constant 0 : index
    %c4_117 = arith.constant 4 : index
    %c0_118 = arith.constant 0 : index
    %c0_119 = arith.constant 0 : index
    %169 = vector.load %arg15[%c0_116, %c4_117, %c0_118, %c0_119] : memref<1x8x8x330xf32, #tpu.memory_space<vmem>>, vector<1x1x8x330xf32>
    %170 = vector.shape_cast %169 : vector<1x1x8x330xf32> to vector<8x330xf32>
    %171 = vector.shape_cast %168 : vector<8x330xf32> to vector<1x1x8x330xf32>
    tpu.vector_store %arg15[%c0_116, %c4_117, %c0_118, %c0_119], %171 {strides = array<i32>} : memref<1x8x8x330xf32, #tpu.memory_space<vmem>>, vector<1x1x8x330xf32>,
    %172 = vector.extract_strided_slice %128 {offsets = [5, 0], sizes = [1, 330], strides = [1, 1]} : vector<8x330xf32> to vector<1x330xf32>
    %173 = vector.broadcast %172 : vector<1x330xf32> to vector<8x330xf32>
    %174 = arith.mulf %173, %138 : vector<8x330xf32>
    %c0_120 = arith.constant 0 : index
    %c5_121 = arith.constant 5 : index
    %c0_122 = arith.constant 0 : index
    %c0_123 = arith.constant 0 : index
    %175 = vector.load %arg15[%c0_120, %c5_121, %c0_122, %c0_123] : memref<1x8x8x330xf32, #tpu.memory_space<vmem>>, vector<1x1x8x330xf32>
    %176 = vector.shape_cast %175 : vector<1x1x8x330xf32> to vector<8x330xf32>
    %177 = vector.shape_cast %174 : vector<8x330xf32> to vector<1x1x8x330xf32>
    tpu.vector_store %arg15[%c0_120, %c5_121, %c0_122, %c0_123], %177 {strides = array<i32>} : memref<1x8x8x330xf32, #tpu.memory_space<vmem>>, vector<1x1x8x330xf32>,
    %178 = vector.extract_strided_slice %128 {offsets = [6, 0], sizes = [1, 330], strides = [1, 1]} : vector<8x330xf32> to vector<1x330xf32>
    %179 = vector.broadcast %178 : vector<1x330xf32> to vector<8x330xf32>
    %180 = arith.mulf %179, %138 : vector<8x330xf32>
    %c0_124 = arith.constant 0 : index
    %c6_125 = arith.constant 6 : index
    %c0_126 = arith.constant 0 : index
    %c0_127 = arith.constant 0 : index
    %181 = vector.load %arg15[%c0_124, %c6_125, %c0_126, %c0_127] : memref<1x8x8x330xf32, #tpu.memory_space<vmem>>, vector<1x1x8x330xf32>
    %182 = vector.shape_cast %181 : vector<1x1x8x330xf32> to vector<8x330xf32>
    %183 = vector.shape_cast %180 : vector<8x330xf32> to vector<1x1x8x330xf32>
    tpu.vector_store %arg15[%c0_124, %c6_125, %c0_126, %c0_127], %183 {strides = array<i32>} : memref<1x8x8x330xf32, #tpu.memory_space<vmem>>, vector<1x1x8x330xf32>,
    %184 = vector.extract_strided_slice %128 {offsets = [7, 0], sizes = [1, 330], strides = [1, 1]} : vector<8x330xf32> to vector<1x330xf32>
    %185 = vector.broadcast %184 : vector<1x330xf32> to vector<8x330xf32>
    %186 = arith.mulf %185, %138 : vector<8x330xf32>
    %c0_128 = arith.constant 0 : index
    %c7_129 = arith.constant 7 : index
    %c0_130 = arith.constant 0 : index
    %c0_131 = arith.constant 0 : index
    %187 = vector.load %arg15[%c0_128, %c7_129, %c0_130, %c0_131] : memref<1x8x8x330xf32, #tpu.memory_space<vmem>>, vector<1x1x8x330xf32>
    %188 = vector.shape_cast %187 : vector<1x1x8x330xf32> to vector<8x330xf32>
    %189 = vector.shape_cast %186 : vector<8x330xf32> to vector<1x1x8x330xf32>
    tpu.vector_store %arg15[%c0_128, %c7_129, %c0_130, %c0_131], %189 {strides = array<i32>} : memref<1x8x8x330xf32, #tpu.memory_space<vmem>>, vector<1x1x8x330xf32>,
    return
  }
  func.func @transform_0(%arg0: i32) -> (i32, i32, i32) {
    %c0_i32 = arith.constant 0 : i32
    %c0_i32_0 = arith.constant 0 : i32
    %c0_i32_1 = arith.constant 0 : i32
    return %arg0, %c0_i32, %c0_i32_0 : i32, i32, i32
  }
  func.func @transform_1(%arg0: i32) -> (i32, i32, i32) {
    %c0_i32 = arith.constant 0 : i32
    %c0_i32_0 = arith.constant 0 : i32
    %c0_i32_1 = arith.constant 0 : i32
    return %arg0, %c0_i32, %c0_i32_0 : i32, i32, i32
  }
  func.func @transform_2(%arg0: i32) -> (i32, i32) {
    %c0_i32 = arith.constant 0 : i32
    %c0_i32_0 = arith.constant 0 : i32
    %c0_i32_1 = arith.constant 0 : i32
    return %c0_i32, %c0_i32_0 : i32, i32
  }
  func.func @transform_3(%arg0: i32) -> (i32, i32) {
    %c0_i32 = arith.constant 0 : i32
    %c0_i32_0 = arith.constant 0 : i32
    %c0_i32_1 = arith.constant 0 : i32
    return %c0_i32, %c0_i32_0 : i32, i32
  }
  func.func @transform_4(%arg0: i32) -> (i32, i32) {
    %c0_i32 = arith.constant 0 : i32
    %c0_i32_0 = arith.constant 0 : i32
    %c0_i32_1 = arith.constant 0 : i32
    return %c0_i32, %c0_i32_0 : i32, i32
  }
  func.func @transform_5(%arg0: i32) -> (i32, i32) {
    %c0_i32 = arith.constant 0 : i32
    %c0_i32_0 = arith.constant 0 : i32
    %c0_i32_1 = arith.constant 0 : i32
    return %c0_i32, %c0_i32_0 : i32, i32
  }
  func.func @transform_6(%arg0: i32) -> (i32, i32, i32) {
    %c0_i32 = arith.constant 0 : i32
    %c0_i32_0 = arith.constant 0 : i32
    %c0_i32_1 = arith.constant 0 : i32
    %c0_i32_2 = arith.constant 0 : i32
    return %c0_i32, %c0_i32_0, %c0_i32_1 : i32, i32, i32
  }
  func.func @transform_7(%arg0: i32) -> (i32, i32) {
    %c0_i32 = arith.constant 0 : i32
    %c0_i32_0 = arith.constant 0 : i32
    %c0_i32_1 = arith.constant 0 : i32
    return %c0_i32, %c0_i32_0 : i32, i32
  }
  func.func @transform_8(%arg0: i32) -> (i32, i32) {
    %c0_i32 = arith.constant 0 : i32
    %c0_i32_0 = arith.constant 0 : i32
    %c0_i32_1 = arith.constant 0 : i32
    return %c0_i32, %c0_i32_0 : i32, i32
  }
  func.func @transform_9(%arg0: i32) -> (i32, i32, i32) {
    %c0_i32 = arith.constant 0 : i32
    %c0_i32_0 = arith.constant 0 : i32
    %c0_i32_1 = arith.constant 0 : i32
    %c0_i32_2 = arith.constant 0 : i32
    return %c0_i32, %c0_i32_0, %c0_i32_1 : i32, i32, i32
  }
  func.func @transform_10(%arg0: i32) -> (i32, i32) {
    %c0_i32 = arith.constant 0 : i32
    %c0_i32_0 = arith.constant 0 : i32
    %c0_i32_1 = arith.constant 0 : i32
    return %c0_i32, %c0_i32_0 : i32, i32
  }
  func.func @transform_11(%arg0: i32) -> (i32, i32) {
    %c0_i32 = arith.constant 0 : i32
    %c0_i32_0 = arith.constant 0 : i32
    %c0_i32_1 = arith.constant 0 : i32
    return %c0_i32, %c0_i32_0 : i32, i32
  }
  func.func @transform_12(%arg0: i32) -> (i32, i32) {
    %c0_i32 = arith.constant 0 : i32
    %c0_i32_0 = arith.constant 0 : i32
    %c0_i32_1 = arith.constant 0 : i32
    return %c0_i32, %c0_i32_0 : i32, i32
  }
  func.func @transform_13(%arg0: i32) -> (i32, i32) {
    %c0_i32 = arith.constant 0 : i32
    %c0_i32_0 = arith.constant 0 : i32
    %c0_i32_1 = arith.constant 0 : i32
    return %c0_i32, %c0_i32_0 : i32, i32
  }
  func.func @transform_14(%arg0: i32) -> (i32, i32, i32, i32) {
    %c0_i32 = arith.constant 0 : i32
    %c0_i32_0 = arith.constant 0 : i32
    %c0_i32_1 = arith.constant 0 : i32
    %c0_i32_2 = arith.constant 0 : i32
    return %arg0, %c0_i32, %c0_i32_0, %c0_i32_1 : i32, i32, i32, i32
  }
  func.func @transform_15(%arg0: i32) -> (i32, i32, i32) {
    %c0_i32 = arith.constant 0 : i32
    %c0_i32_0 = arith.constant 0 : i32
    %c0_i32_1 = arith.constant 0 : i32
    return %arg0, %c0_i32, %c0_i32_0 : i32, i32, i32
  }
}

</mosaic_0001>

<bundles_post_ra>
// kernel: cam_encode_forward.1
= control target key start
LH: loop header
LB: loop body
LE: loop exit
PB: predicated region body
PF: predicated region fallthrough
CT: control target
= control target key end

     0   :  { %s10528_s18 = smov 0   ;;  %s13232_s0 = inlined_call_operand.vmem [shape: bf16[2,16,330], index: 0, kind: input, shape index: {}]   ;;  %s13233_s1 = inlined_call_operand.vmem [shape: bf16[2,24,88], index: 1, kind: input, shape index: {}]   ;;  %s13234_s2 = inlined_call_operand.vmem [shape: bf16[330,416], index: 2, kind: input, shape index: {}]   ;;  %s13235_s3 = inlined_call_operand.vmem [shape: bf16[88,416], index: 3, kind: input, shape index: {}]   ;;  %s13236_s4 = inlined_call_operand.vmem [shape: bf16[360,416], index: 4, kind: input, shape index: {}]   ;;  %s13237_s5 = inlined_call_operand.vmem [shape: bf16[360,330], index: 5, kind: input, shape index: {}]   ;;  %s13238_s6 = inlined_call_operand.vmem [shape: bf16[9,64,40], index: 6, kind: input, shape index: {}]   ;;  %s13239_s7 = inlined_call_operand.vmem [shape: f32[64,1], index: 7, kind: input, shape index: {}]   ;;  %s13240_s8 = inlined_call_operand.vmem [shape: f32[64,1], index: 8, kind: input, shape index: {}]   ;;  %s13241_s9 = inlined_call_operand.vmem [shape: bf16[9,64,64], index: 9, kind: input, shape index: {}]   ;;  %s13242_s10 = inlined_call_operand.vmem [shape: f32[64,1], index: 10, kind: input, shape index: {}]   ;;  %s13243_s11 = inlined_call_operand.vmem [shape: f32[64,1], index: 11, kind: input, shape index: {}]   ;;  %s13244_s12 = inlined_call_operand.vmem [shape: bf16[16,64], index: 12, kind: input, shape index: {}]   ;;  %s13245_s13 = inlined_call_operand.vmem [shape: f32[16,1], index: 13, kind: input, shape index: {}]   ;;  %s13246_s14 = inlined_call_operand.vmem [shape: f32[2,8,8,330], index: 14, kind: output, shape index: {0}]   ;;  %s13247_s15 = inlined_call_operand.vmem [shape: f32[2,8,330], index: 15, kind: output, shape index: {1}]  }
   0x1 LB: > { %s8291_s19 = sadd.s32 4294967295, %s10435_s18   ;;  %p8295_p0 = scmp.ge.s32.totalorder %s10435_s18, 1  ;;  %s10435_s18 = sphi %s10528_s18, %s26_s18  }
   0x2   : > { %p450_p1 = scmp.lt.s32.totalorder %s10435_s18, 3 }
   0x4   : > { %p451_p2 = pnand %p8295_p0, %p450_p1 }
   0x5   : > { %v9951_v0 = vld [vmem:[%s13234_s2 + $0x4] ss:$16 sps:$4 sm:$0xff] (!%p451_p2)   ;;  %v9953_v1 = vld [vmem:[%s13234_s2] ss:$16 sps:$4 sm:$0xff] (!%p451_p2)   ;;  %v10437_v2 = vmov (!%p451_p2), 0   ;;  %p508_p3 = scmp.lt.s32.totalorder (!%p451_p2), %s8291_s19, 1 }
   0x6   : > { %454 = sbr.rel (%p451_p2) target bundleno = 2644 (0xa54), region = 76  ;;  %1140 = vmatprep.mubr.bf16.mxu0 (!%p451_p2), %v10437_v2  ;;  %9949 = vset.pattern.permute.xlu1 (!%p451_p2), %v10437_v2  ;;  %v9954_v3 = vld [vmem:[%s13234_s2 + $0x24] ss:$16 sps:$4 sm:$0xff] (!%p451_p2)   ;;  %v9956_v4 = vld [vmem:[%s13234_s2 + $0x20] ss:$16 sps:$4 sm:$0xff] (!%p451_p2)   ;;  %vm1052_vm0 = vcmask (!%p451_p2), 1044480  }
   0x7   : > { %1065 = vmatprep.subr.bf16.mxu1 (!%p451_p2), %v9951_v0  ;;  %9950 = vset.pattern.permute.xlu0 (!%p451_p2), %v10437_v2  ;;  %v9957_v5 = vld [vmem:[%s13234_s2 + $0x44] ss:$16 sps:$4 sm:$0xff] (!%p451_p2)   ;;  %v9965_v7 = vld [vmem:[%s13234_s2 + $0x200] ss:$16 sps:$4 sm:$0xff] (!%p451_p2)   ;;  %vm1048_vm1 = vcmask (!%p451_p2), 605184   ;;  %vm1387_vm2 = vcmask (!%p451_p2), 1043456  }
   0x8   : > { %1066 = vmatpush1.bf16.msra.mxu1 (!%p451_p2), %v9953_v1  ;;  %v9963_v6 = vld [vmem:[%s13234_s2 + $0x204] ss:$16 sps:$4 sm:$0xff] (!%p451_p2)   ;;  %v9959_v8 = vld [vmem:[%s13234_s2 + $0x40] ss:$16 sps:$4 sm:$0xff] (!%p451_p2)   ;;  %vm1380_vm3 = vcmask (!%p451_p2), 719872   ;;  %s10439_s17 = smov (!%p451_p2), 104  }
   0x9   : > { %1067 = vmatprep.subr.bf16.mxu1 (!%p451_p2), %v9954_v3  ;;  %v9960_v9 = vld [vmem:[%s13234_s2 + $0x64] ss:$16 sps:$4 sm:$0xff] (!%p451_p2)   ;;  %1108 = vmatprep.subr.bf16.mxu0 (!%p451_p2), %v9963_v6  ;;  %v9971_v11 = vld [vmem:[%s13234_s2 + $0x220] ss:$16 sps:$4 sm:$0xff] (!%p451_p2)   ;;  %v10038_v62 = vld [vmem:[%s13234_s2 + $0xc] ss:$16 sps:$4 sm:$0xff] (!%p451_p2)  }
   0xa   : > { %v9969_v10 = vld [vmem:[%s13234_s2 + $0x224] ss:$16 sps:$4 sm:$0xff] (!%p451_p2)   ;;  %1109 = vmatpush1.bf16.msra.mxu0 (!%p451_p2), %v9965_v7  ;;  %v9962_v12 = vld [vmem:[%s13234_s2 + $0x60] ss:$16 sps:$4 sm:$0xff] (!%p451_p2)   ;;  %v10036_v0 = vld [vmem:[%s13234_s2 + $0x8] ss:$16 sps:$4 sm:$0xff] (!%p451_p2)  }
   0xb   : > { %1110 = vmatprep.subr.bf16.mxu0 (!%p451_p2), %v9969_v10  ;;  %v9975_v13 = vld [vmem:[%s13234_s2 + $0x244] ss:$16 sps:$4 sm:$0xff] (!%p451_p2)   ;;  %v9977_v15 = vld [vmem:[%s13234_s2 + $0x240] ss:$16 sps:$4 sm:$0xff] (!%p451_p2)   ;;  %v10042_v1 = vld [vmem:[%s13234_s2 + $0x2c] ss:$16 sps:$4 sm:$0xff] (!%p451_p2)  }
   0xc   : > { %1068 = vmatpush1.bf16.msra.mxu1 (!%p451_p2), %v9956_v4  ;;  %v9966_v14 = vld [vmem:[%s13234_s2 + $0x84] ss:$16 sps:$4 sm:$0xff] (!%p451_p2)   ;;  %v9968_v17 = vld [vmem:[%s13234_s2 + $0x80] ss:$16 sps:$4 sm:$0xff] (!%p451_p2)   ;;  %v10040_v3 = vld [vmem:[%s13234_s2 + $0x28] ss:$16 sps:$4 sm:$0xff] (!%p451_p2)  }
   0xd   : > { %1069 = vmatprep.subr.bf16.mxu1 %v9957_v5  ;;  %s13266_s19 = smov (!%p508_p3, %s8291_s19), 1  ;;  %v9981_v16 = vld [vmem:[%s13234_s2 + $0x264] ss:$16 sps:$4 sm:$0xff]   ;;  %v9983_v19 = vld [vmem:[%s13234_s2 + $0x260] ss:$16 sps:$4 sm:$0xff]   ;;  %vm1591_vm4 = vcmask 326656  }
   0xe   : > { %1111 = vmatpush1.bf16.msra.mxu0 %v9971_v11  ;;  %v9972_v18 = vld [vmem:[%s13234_s2 + $0xa4] ss:$16 sps:$4 sm:$0xff]   ;;  %s13248_s30 = smul.u32 24, %s13266_s19  ;;  %v9989_v21 = vld [vmem:[%s13234_s2 + $0x280] ss:$16 sps:$4 sm:$0x1f]  }
   0xf   : > { %1112 = vmatprep.subr.bf16.mxu0 %v9975_v13  ;;  %v9987_v20 = vld [vmem:[%s13234_s2 + $0x284] ss:$16 sps:$4 sm:$0x1f]   ;;  %v9974_v22 = vld [vmem:[%s13234_s2 + $0xa0] ss:$16 sps:$4 sm:$0xff]   ;;  %v1054_v24 = vsel %vm1052_vm0, %v9989_v21, 0 }
  0x10   : > { %1070 = vmatpush1.bf16.msra.mxu1 %v9959_v8  ;;  %s10617_s28 = scalar_lea.vmem %s13232_s0, %s13248_s30  ;;  %v9978_v23 = vld [vmem:[%s13234_s2 + $0xc4] ss:$16 sps:$4 sm:$0xff]   ;;  %v9980_v26 = vld [vmem:[%s13234_s2 + $0xc0] ss:$16 sps:$4 sm:$0xff]   ;;  %s9928_s24 = smul.u32 12, %s13266_s19  ;;  %vm1977_vm5 = vcmask 1031168  }
  0x11   : > { %1071 = vmatprep.subr.bf16.mxu1 %v9960_v9  ;;  %v9995_v25 = vld [vmem:[%s13235_s3 + $0x4] ss:$16 sps:$4 sm:$0xff]   ;;  %v9993_v29 = vld [vmem:[%s13235_s3] ss:$16 sps:$4 sm:$0xff]   ;;  %v10045_v4 = vld [vmem:[%s13234_s2 + $0x4c] ss:$16 sps:$4 sm:$0xff]  }
  0x12   : > { %1113 = vmatpush1.bf16.msra.mxu0 %v9977_v15  ;;  %v9984_v27 = vld [vmem:[%s13234_s2 + $0xe4] ss:$16 sps:$4 sm:$0xff]   ;;  %v9986_v31 = vld [vmem:[%s13234_s2 + $0xe0] ss:$16 sps:$4 sm:$0xff]   ;;  %s10670_s25 = scalar_lea.vmem %s13233_s1, %s9928_s24  ;;  %v10043_v5 = vld [vmem:[%s13234_s2 + $0x48] ss:$16 sps:$4 sm:$0xff]  }
  0x13   : > { %1114 = vmatprep.subr.bf16.mxu0 %v9981_v16  ;;  %v10634_v28 = vld [vmem:[%s10617_s28 + $0x8] ss:$12 sps:$4 sm:$0xff]   ;;  %v10000_v33 = vld [vmem:[%s13235_s3 + $0x20] ss:$16 sps:$4 sm:$0xff]   ;;  %v10048_v6 = vld [vmem:[%s13234_s2 + $0x6c] ss:$16 sps:$4 sm:$0xff]  }
  0x14   : > { %1072 = vmatpush1.bf16.msra.mxu1 %v9962_v12  ;;  %v10002_v30 = vld [vmem:[%s13235_s3 + $0x24] ss:$16 sps:$4 sm:$0xff]   ;;  %v9992_v35 = vld [vmem:[%s13234_s2 + $0x100] ss:$16 sps:$4 sm:$0xff]   ;;  %v10733_v60 = vld [vmem:[%s10670_s25 + $0x8] ss:$0 sps:$4 sm:$0xff]  }
  0x15   : > { %1073 = vmatprep.subr.bf16.mxu1 %v9966_v14  ;;  %v9990_v32 = vld [vmem:[%s13234_s2 + $0x104] ss:$16 sps:$4 sm:$0xff]   ;;  %v10006_v37 = vld [vmem:[%s13235_s3 + $0x40] ss:$16 sps:$4 sm:$0xff]   ;;  %v10046_v7 = vld [vmem:[%s13234_s2 + $0x68] ss:$16 sps:$4 sm:$0xff]  }
  0x16   : > { %1115 = vmatpush1.bf16.msra.mxu0 %v9983_v19  ;;  %v10008_v34 = vld [vmem:[%s13235_s3 + $0x44] ss:$16 sps:$4 sm:$0xff]   ;;  %v9999_v39 = vld [vmem:[%s13234_s2 + $0x120] ss:$16 sps:$4 sm:$0xff]   ;;  %v10051_v8 = vld [vmem:[%s13234_s2 + $0x8c] ss:$16 sps:$4 sm:$0xff]  }
  0x17   : > { %8387 = vmatprep.subr.msk.bf16.mxu0 %vm1052_vm0, %v9987_v20  ;;  %v9997_v36 = vld [vmem:[%s13234_s2 + $0x124] ss:$16 sps:$4 sm:$0xff]   ;;  %v10012_v41 = vld [vmem:[%s13235_s3 + $0x60] ss:$16 sps:$4 sm:$0xff]   ;;  %v10049_v9 = vld [vmem:[%s13234_s2 + $0x88] ss:$16 sps:$4 sm:$0xff]  }
  0x18   : > { %1074 = vmatpush1.bf16.msra.mxu1 %v9968_v17  ;;  %v10014_v38 = vld [vmem:[%s13235_s3 + $0x64] ss:$16 sps:$4 sm:$0xff]   ;;  %v10005_v44 = vld [vmem:[%s13234_s2 + $0x140] ss:$16 sps:$4 sm:$0xff]   ;;  %v10054_v10 = vld [vmem:[%s13234_s2 + $0xac] ss:$16 sps:$4 sm:$0xff]  }
  0x19   : > { %1075 = vmatprep.subr.bf16.mxu1 %v9972_v18  ;;  %v10003_v40 = vld [vmem:[%s13234_s2 + $0x144] ss:$16 sps:$4 sm:$0xff]   ;;  %v10018_v47 = vld [vmem:[%s13235_s3 + $0x80] ss:$16 sps:$4 sm:$0xff]   ;;  %v10052_v11 = vld [vmem:[%s13234_s2 + $0xa8] ss:$16 sps:$4 sm:$0xff]  }
  0x1a   : > { %1117 = vmatpush1.bf16.msra.mxu0 %v1054_v24  ;;  %v10020_v42 = vld [vmem:[%s13235_s3 + $0x84] ss:$16 sps:$4 sm:$0xff]   ;;  %v10011_v50 = vld [vmem:[%s13234_s2 + $0x160] ss:$16 sps:$4 sm:$0xff]   ;;  %v10057_v12 = vld [vmem:[%s13234_s2 + $0xcc] ss:$16 sps:$4 sm:$0xff]  }
  0x1b   : > { %1400 = vmatprep.subr.bf16.mxu0 %v9995_v25  ;;  %v10035_v43 = vld [vmem:[%s10617_s28 + $0x4] ss:$12 sps:$4 sm:$0xff]   ;;  %v10745_v63 = vld [vmem:[%s10617_s28] ss:$12 sps:$4 sm:$0xff]   ;;  %v10055_v13 = vld [vmem:[%s13234_s2 + $0xc8] ss:$16 sps:$4 sm:$0xff]  }
  0x1c   : > { %1076 = vmatpush1.bf16.msra.mxu1 %v9974_v22  ;;  %v1260_v45 = vld [vmem:[%s13235_s3 + $0xa0] sm:$0xff]  ;;  %1097 = vmatprep.mubr.bf16.mxu1 %v10035_v43  ;;  %v10060_v14 = vld [vmem:[%s13234_s2 + $0xec] ss:$16 sps:$4 sm:$0xff]   ;;  %v10058_v15 = vld [vmem:[%s13234_s2 + $0xe8] ss:$16 sps:$4 sm:$0xff]   ;;  %s13257_s27 = smov 103  }
  0x1d   : > { %1077 = vmatprep.subr.bf16.mxu1 %v9978_v23  ;;  %8388 = vmatmul.mubr.msk.bf16.vlgmr.msra.gmra.mrb[0].mxu0 %vm1048_vm1, %v10634_v28  ;;  %v10009_v46 = vld [vmem:[%s13234_s2 + $0x164] ss:$16 sps:$4 sm:$0xff]   ;;  %v8414_v48 = vcombine.high %v1260_v45, %v1260_v45  ;;  %v8413_v49 = vcombine.low %v1260_v45, %v1260_v45  ;;  %v10017_v52 = vld [vmem:[%s13234_s2 + $0x180] ss:$16 sps:$4 sm:$0xff]   ;;  %v10063_v16 = vld [vmem:[%s13234_s2 + $0x10c] ss:$16 sps:$4 sm:$0xff]  }
  0x1e   : > { %1401 = vmatpush1.bf16.msra.mxu0 %v9993_v29  ;;  %1432 = vmatprep.mubr.bf16.mxu0 %v10437_v2  ;;  %v10015_v51 = vld [vmem:[%s13234_s2 + $0x184] ss:$16 sps:$4 sm:$0xff]   ;;  %v10023_v56 = vld [vmem:[%s13234_s2 + $0x1a0] ss:$16 sps:$4 sm:$0xff]   ;;  %v10061_v17 = vld [vmem:[%s13234_s2 + $0x108] ss:$16 sps:$4 sm:$0xff]  }
  0x1f   : > { %1402 = vmatprep.subr.bf16.mxu0 %v10002_v30  ;;  %v1389_v53 = vsel %vm1387_vm2, %v8413_v49, 0  ;;  %v10021_v54 = vld [vmem:[%s13234_s2 + $0x1a4] ss:$16 sps:$4 sm:$0xff]   ;;  %v10028_v58 = vld [vmem:[%s13234_s2 + $0x1c0] ss:$16 sps:$4 sm:$0xff]   ;;  %s10441_s29 = smov 127  }
  0x20   : > { %1078 = vmatpush1.bf16.msra.mxu1 %v9980_v26  ;;  %v10715_v55 = vld [vmem:[%s10670_s25] sm:$0xff]   ;;  %v10066_v18 = vld [vmem:[%s13234_s2 + $0x12c] ss:$16 sps:$4 sm:$0xff]   ;;  %v10064_v19 = vld [vmem:[%s13234_s2 + $0x128] ss:$16 sps:$4 sm:$0xff]   ;;  %s10438_s25 = smov 126  }
  0x21   : > { %1079 = vmatprep.subr.bf16.mxu1 %v9984_v27  ;;  %v10026_v57 = vld [vmem:[%s13234_s2 + $0x1c4] ss:$16 sps:$4 sm:$0xff]   ;;  %v10032_v61 = vld [vmem:[%s13234_s2 + $0x1e0] ss:$16 sps:$4 sm:$0xff]   ;;  %v10069_v20 = vld [vmem:[%s13234_s2 + $0x14c] ss:$16 sps:$4 sm:$0xff]  }
  0x22   : > { %1403 = vmatpush1.bf16.msra.mxu0 %v10000_v33  ;;  %v10030_v59 = vld [vmem:[%s13234_s2 + $0x1e4] ss:$16 sps:$4 sm:$0xff]   ;;  %v10067_v21 = vld [vmem:[%s13234_s2 + $0x148] ss:$16 sps:$4 sm:$0xff]   ;;  %v10072_v22 = vld [vmem:[%s13234_s2 + $0x16c] ss:$16 sps:$4 sm:$0xff]  }
  0x23   : > { %1404 = vmatprep.subr.bf16.mxu0 %v10008_v34  ;;  %v10070_v23 = vld [vmem:[%s13234_s2 + $0x168] ss:$16 sps:$4 sm:$0xff]   ;;  %v10075_v24 = vld [vmem:[%s13234_s2 + $0x18c] ss:$16 sps:$4 sm:$0xff]   ;;  %s13255_s16 = smov 102   ;;  %s13253_s20 = smov 80  }
  0x24   : > { %1080 = vmatpush1.bf16.msra.mxu1 %v9986_v31  ;;  %v10073_v25 = vld [vmem:[%s13234_s2 + $0x188] ss:$16 sps:$4 sm:$0xff]   ;;  %v10078_v26 = vld [vmem:[%s13234_s2 + $0x1ac] ss:$16 sps:$4 sm:$0xff]   ;;  %s13251_s21 = smov 79   ;;  %s13249_s24 = smov 78  }
  0x25   : > { %1081 = vmatprep.subr.bf16.mxu1 %v9990_v32  ;;  %v10076_v27 = vld [vmem:[%s13234_s2 + $0x1a8] ss:$16 sps:$4 sm:$0xff]   ;;  %v10081_v29 = vld [vmem:[%s13234_s2 + $0x1cc] ss:$16 sps:$4 sm:$0xff]   ;;  %vm2220_vm6 = vcmask 850944   ;;  %vm2472_vm7 = vcmask 842752  }
  0x26   : > { %1405 = vmatpush1.bf16.msra.mxu0 %v10006_v37  ;;  %v10079_v30 = vld [vmem:[%s13234_s2 + $0x1c8] ss:$16 sps:$4 sm:$0xff]   ;;  %v10084_v31 = vld [vmem:[%s13234_s2 + $0x1ec] ss:$16 sps:$4 sm:$0xff]   ;;  %vm1578_vm8 = vcmask 1039360   ;;  %vm2724_vm9 = vcmask 834560  }
  0x27   : > { %1406 = vmatprep.subr.bf16.mxu0 %v10014_v38  ;;  %v10082_v32 = vld [vmem:[%s13234_s2 + $0x1e8] ss:$16 sps:$4 sm:$0xff]   ;;  %v10087_v34 = vld [vmem:[%s13234_s2 + $0x20c] ss:$16 sps:$4 sm:$0xff]   ;;  %vm2976_vm10 = vcmask 654336   ;;  %vm3228_vm11 = vcmask 646144  }
  0x28   : > { %1082 = vmatpush1.bf16.msra.mxu1 %v9992_v35  ;;  %v10099_v33 = vld [vmem:[%s13234_s2 + $0x288] ss:$16 sps:$4 sm:$0x1f]   ;;  %vm3480_vm12 = vcmask 637952   ;;  %vm4825_vm13 = vcmask 523264   ;;  %s13262_s23 = smov 79  }
  0x29   : > { %1083 = vmatprep.subr.bf16.mxu1 %v9997_v36  ;;  %v10085_v35 = vld [vmem:[%s13234_s2 + $0x208] ss:$16 sps:$4 sm:$0xff]   ;;  %v10090_v36 = vld [vmem:[%s13234_s2 + $0x22c] ss:$16 sps:$4 sm:$0xff]   ;;  %v1060_v37 = vsel %vm1052_vm0, %v10099_v33, 0  ;;  %vm10447_vm14 = vmmov 0  }
  0x2a   : > { %1407 = vmatpush1.bf16.msra.mxu0 %v10012_v41  ;;  %v10088_v38 = vld [vmem:[%s13234_s2 + $0x228] ss:$16 sps:$4 sm:$0xff]   ;;  %v10096_v41 = vld [vmem:[%s13234_s2 + $0x26c] ss:$16 sps:$4 sm:$0xff]   ;;  %s9929_s26 = smul.u32 192, %s13266_s19 }
  0x2b   : > { %1408 = vmatprep.subr.bf16.mxu0 %v10020_v42  ;;  %v10094_v42 = vld [vmem:[%s13234_s2 + $0x268] ss:$16 sps:$4 sm:$0xff]  }
  0x2c   : > { %1084 = vmatpush1.bf16.msra.mxu1 %v9999_v39  ;;  %v10093_v39 = vld [vmem:[%s13234_s2 + $0x24c] ss:$16 sps:$4 sm:$0xff]   ;;  %v10100_v45 = vld [vmem:[%s13235_s3 + $0x8] ss:$16 sps:$4 sm:$0xff]   ;;  %s13177_s28 = scalar_lea.vmem %s13246_s14, %s9929_s26 }
  0x2d   : > { %1085 = vmatprep.subr.bf16.mxu1 %v10003_v40  ;;  %v10091_v40 = vld [vmem:[%s13234_s2 + $0x248] ss:$16 sps:$4 sm:$0xff]  }
  0x2e   : > { %1409 = vmatpush1.bf16.msra.mxu0 %v10018_v47  ;;  %v10103_v47 = vld [vmem:[%s13235_s3 + $0x28] ss:$16 sps:$4 sm:$0xff]  }
  0x2f   : > { %8417 = vmatprep.subr.msk.bf16.mxu0 %vm1387_vm2, %v8414_v48  ;;  %v10108_v48 = vld [vmem:[%s13235_s3 + $0x4c] ss:$16 sps:$4 sm:$0xff]   ;;  %v10106_v49 = vld [vmem:[%s13235_s3 + $0x48] ss:$16 sps:$4 sm:$0xff]  }
  0x30   : > { %1086 = vmatpush1.bf16.msra.mxu1 %v10005_v44  ;;  %v10102_v44 = vld [vmem:[%s13235_s3 + $0xc] ss:$16 sps:$4 sm:$0xff]  }
  0x31   : > { %1087 = vmatprep.subr.bf16.mxu1 %v10009_v46  ;;  %v10105_v46 = vld [vmem:[%s13235_s3 + $0x2c] ss:$16 sps:$4 sm:$0xff]  }
  0x32   : > { %1411 = vmatpush1.bf16.msra.mxu0 %v1389_v53  ;;  %v10112_v53 = vld [vmem:[%s13235_s3 + $0x88] ss:$16 sps:$4 sm:$0xff]  }
  0x34   : > { %1088 = vmatpush1.bf16.msra.mxu1 %v10011_v50  ;;  %v10111_v50 = vld [vmem:[%s13235_s3 + $0x6c] ss:$16 sps:$4 sm:$0xff]  }
  0x35   : > { %1089 = vmatprep.subr.bf16.mxu1 %v10015_v51  ;;  %8418 = vmatmul.mubr.msk.bf16.vlgmr.msra.gmra.mrb[4].mxu0 %vm1380_vm3, %v10715_v55  ;;  %v10109_v51 = vld [vmem:[%s13235_s3 + $0x68] ss:$16 sps:$4 sm:$0xff]  }
  0x36   : > { %1442 = vmatprep.mubr.bf16.mxu0 %v10437_v2 }
  0x38   : > { %1090 = vmatpush1.bf16.msra.mxu1 %v10017_v52  ;;  %v10114_v52 = vld [vmem:[%s13235_s3 + $0x8c] ss:$16 sps:$4 sm:$0xff]  }
  0x39   : > { %1091 = vmatprep.subr.bf16.mxu1 %v10021_v54 }
  0x3c   : > { %1092 = vmatpush1.bf16.msra.mxu1 %v10023_v56 }
  0x3d   : > { %1093 = vmatprep.subr.bf16.mxu1 %v10026_v57  ;;  %8419 = vmatmul.mubr.msk.bf16.gmra.mrb[8].mxu0 %vm1380_vm3, %v10733_v60 }
  0x3e   : > { %1824 = vmatprep.mubr.bf16.mxu0 %v10437_v2 }
  0x40   : > { %1094 = vmatpush1.bf16.msra.mxu1 %v10028_v58 }
  0x41   : > { %1095 = vmatprep.subr.bf16.mxu1 %v10030_v59 }
  0x44   : > { %1096 = vmatpush1.bf16.msra.mxu1 %v10032_v61 }
  0x45   : > { %1151 = vmatprep.subr.bf16.mxu1 %v10038_v62 }
  0x47   : > { %1098 = vmatmul.mubr.bf16.vlgmr.msra.gmra.mrb[0].mxu1 %v10745_v63 }
  0x48   : > { %1152 = vmatpush1.bf16.msra.mxu1 %v10036_v0  ;;  %1183 = vmatprep.mubr.bf16.mxu1 %v10035_v43  ;;  %v10097_v43 = vld [vmem:[%s13234_s2 + $0x28c] ss:$16 sps:$4 sm:$0x1f]  }
  0x49   : > { %1153 = vmatprep.subr.bf16.mxu1 %v10042_v1 }
  0x4c   : > { %1154 = vmatpush1.bf16.msra.mxu1 %v10040_v3 }
  0x4d   : > { %1155 = vmatprep.subr.bf16.mxu1 %v10045_v4 }
  0x50   : > { %1156 = vmatpush1.bf16.msra.mxu1 %v10043_v5 }
  0x51   : > { %1157 = vmatprep.subr.bf16.mxu1 %v10048_v6 }
  0x54   : > { %1158 = vmatpush1.bf16.msra.mxu1 %v10046_v7 }
  0x55   : > { %1159 = vmatprep.subr.bf16.mxu1 %v10051_v8 }
  0x58   : > { %1160 = vmatpush1.bf16.msra.mxu1 %v10049_v9 }
  0x59   : > { %1161 = vmatprep.subr.bf16.mxu1 %v10054_v10 }
  0x5c   : > { %1162 = vmatpush1.bf16.msra.mxu1 %v10052_v11 }
  0x5d   : > { %1163 = vmatprep.subr.bf16.mxu1 %v10057_v12 }
  0x60   : > { %1164 = vmatpush1.bf16.msra.mxu1 %v10055_v13 }
  0x61   : > { %1165 = vmatprep.subr.bf16.mxu1 %v10060_v14 }
  0x64   : > { %1166 = vmatpush1.bf16.msra.mxu1 %v10058_v15 }
  0x65   : > { %1167 = vmatprep.subr.bf16.mxu1 %v10063_v16 }
  0x68   : > { %1168 = vmatpush1.bf16.msra.mxu1 %v10061_v17 }
  0x69   : > { %1169 = vmatprep.subr.bf16.mxu1 %v10066_v18 }
  0x6c   : > { %1170 = vmatpush1.bf16.msra.mxu1 %v10064_v19 }
  0x6d   : > { %1171 = vmatprep.subr.bf16.mxu1 %v10069_v20 }
  0x70   : > { %1172 = vmatpush1.bf16.msra.mxu1 %v10067_v21  ;;  %v10958_v21 = vld [vmem:[%s13238_s6] sm:$0xff]  }
  0x71   : > { %1173 = vmatprep.subr.bf16.mxu1 %v10072_v22 }
  0x74   : > { %1174 = vmatpush1.bf16.msra.mxu1 %v10070_v23 }
  0x75   : > { %1175 = vmatprep.subr.bf16.mxu1 %v10075_v24  ;;  %v10966_v24 = vld [vmem:[%s13238_s6 + $0x8] sm:$0xff]  }
  0x78   : > { %1176 = vmatpush1.bf16.msra.mxu1 %v10073_v25 }
  0x79   : > { %1177 = vmatprep.subr.bf16.mxu1 %v10078_v26 }
  0x7c   : > { %1178 = vmatpush1.bf16.msra.mxu1 %v10076_v27 }
  0x7d   : > { %1179 = vmatprep.subr.bf16.mxu1 %v10081_v29 }
  0x80   : > { %1180 = vmatpush1.bf16.msra.mxu1 %v10079_v30  ;;  %v10980_v30 = vld [vmem:[%s13238_s6 + $0x10] sm:$0xff]  }
  0x81   : > { %1181 = vmatprep.subr.bf16.mxu1 %v10084_v31  ;;  %v10988_v31 = vld [vmem:[%s13238_s6 + $0x18] sm:$0xff]  }
  0x84   : > { %1182 = vmatpush1.bf16.msra.mxu1 %v10082_v32 }
  0x85   : > { %1194 = vmatprep.subr.bf16.mxu1 %v10087_v34 }
  0x87   : > { %1184 = vmatmul.mubr.bf16.vlgmr.msra.gmra.mrb[4].mxu1 %v10745_v63 }
  0x88   : > { %1195 = vmatpush1.bf16.msra.mxu1 %v10085_v35  ;;  %1226 = vmatprep.mubr.bf16.mxu1 %v10437_v2 }
  0x89   : > { %1196 = vmatprep.subr.bf16.mxu1 %v10090_v36 }
  0x8c   : > { %1197 = vmatpush1.bf16.msra.mxu1 %v10088_v38 }
  0x8d   : > { %1198 = vmatprep.subr.bf16.mxu1 %v10093_v39 }
  0x90   : > { %1199 = vmatpush1.bf16.msra.mxu1 %v10091_v40 }
  0x91   : > { %1200 = vmatprep.subr.bf16.mxu1 %v10096_v41 }
  0x94   : > { %1201 = vmatpush1.bf16.msra.mxu1 %v10094_v42 }
  0x95   : > { %8389 = vmatprep.subr.msk.bf16.mxu1 %vm1052_vm0, %v10097_v43 }
  0x98   : > { %1203 = vmatpush1.bf16.msra.mxu1 %v1060_v37 }
  0x99   : > { %1451 = vmatprep.subr.bf16.mxu1 %v10102_v44 }
  0x9b   : > { %8390 = vmatmul.mubr.msk.bf16.vlgmr.msra.gmra.mrb[4].mxu1 %vm1048_vm1, %v10634_v28  ;;  %v1261_v28 = vld [vmem:[%s13235_s3 + $0xa8] sm:$0xff] }
  0x9c   : > { %1452 = vmatpush1.bf16.msra.mxu1 %v10100_v45  ;;  %1483 = vmatprep.mubr.bf16.mxu1 %v10437_v2  ;;  %v8415_v54 = vcombine.low %v1261_v28, %v1261_v28  ;;  %v8416_v56 = vcombine.high %v1261_v28, %v1261_v28 }
  0x9d   : > { %1453 = vmatprep.subr.bf16.mxu1 %v10105_v46 }
  0x9e   : > { %v1395_v57 = vsel %vm1387_vm2, %v8415_v54, 0 }
  0xa0   : > { %1454 = vmatpush1.bf16.msra.mxu1 %v10103_v47 }
  0xa1   : > { %1455 = vmatprep.subr.bf16.mxu1 %v10108_v48 }
  0xa4   : > { %1456 = vmatpush1.bf16.msra.mxu1 %v10106_v49 }
  0xa5   : > { %1457 = vmatprep.subr.bf16.mxu1 %v10111_v50 }
  0xa8   : > { %1458 = vmatpush1.bf16.msra.mxu1 %v10109_v51 }
  0xa9   : > { %1459 = vmatprep.subr.bf16.mxu1 %v10114_v52 }
  0xac   : > { %1460 = vmatpush1.bf16.msra.mxu1 %v10112_v53 }
  0xad   : > { %8420 = vmatprep.subr.msk.bf16.mxu1 %vm1387_vm2, %v8416_v56 }
  0xb0   : > { %1462 = vmatpush1.bf16.msra.mxu1 %v1395_v57 }
  0xb3   : > { %8421 = vmatmul.mubr.msk.bf16.vlgmr.msra.gmra.mrb[8].mxu1 %vm1380_vm3, %v10715_v55 }
  0xb4   : > { %1493 = vmatprep.mubr.bf16.mxu1 %v10437_v2 }
  0xbb   : > { %8422 = vmatmul.mubr.msk.bf16.gmra.mrb[12].mxu1 %vm1380_vm3, %v10733_v60 }
  0xbc   : > { %1645 = vmatprep.mubr.bf16.mxu1 %v10437_v2 }
  0xf0   : > { %v1142_v58 = vpop.f32.mrb[0].mxu0 }
  0xf1   : > { %v1144_v59 = vpop.f32.mrb[1].mxu0 }
  0xf2   : > { %v1146_v61 = vpop.f32.mrb[2].mxu0 }
  0xf3   : > { %v1148_v62 = vpop.f32.mrb[3].mxu0 }
 0x108   : > { %v1434_v63 = vpop.f32.mrb[4].mxu0 }
 0x109   : > { %v1436_v0 = vpop.f32.mrb[5].mxu0 }
 0x10a   : > { %v1438_v1 = vpop.f32.mrb[6].mxu0 }
 0x10b   : > { %v10919_v3 = vpack.c.bf16 %v1438_v1, %v1434_v63  ;;  %v1440_v4 = vpop.f32.mrb[7].mxu0 }
 0x10c   : > { %v10921_v5 = vpack.c.bf16 %v1440_v4, %v1436_v0  ;;  %v11153_v4 = vld [vmem:[%s13238_s6 + $0x40] sm:$0xff]  }
 0x10e   : > { %1967 = vrot.lane.b32.xlu1 %v10921_v5, %s10438_s25 }
 0x110   : > { %v1444_v55 = vpop.f32.mrb[8].mxu0 }
 0x111   : > { %v10925_v60 = vpack.c.bf16 %v1444_v55, %v1444_v55  ;;  %v1446_v6 = vpop.f32.mrb[9].mxu0 }
 0x112   : > { %v1448_v7 = vpop.f32.mrb[10].mxu0  ;;  %v10942_v19 = vpack.c.bf16 %v1446_v6, %v1446_v6 }
 0x113   : > { %1971 = vrot.lane.b32.xlu0 %v10925_v60, %s10438_s25  ;;  %v1449_v8 = vpop.f32.mrb[11].mxu0  ;;  %v1784_v20 = vsel %vm1387_vm2, %v10925_v60, 0 }
 0x11a   : > { %v1099_v9 = vpop.f32.mrb[0].mxu1 }
 0x11b   : > { %v1143_v10 = vadd.f32 %v1142_v58, %v1099_v9  ;;  %v1101_v11 = vpop.f32.mrb[1].mxu1 }
 0x11c   : > { %v1145_v12 = vadd.f32 %v1144_v59, %v1101_v11  ;;  %v1103_v13 = vpop.f32.mrb[2].mxu1 }
 0x11d   : > { %v1147_v14 = vadd.f32 %v1146_v61, %v1103_v13  ;;  %v1105_v15 = vpop.f32.mrb[3].mxu1 }
 0x11e   : > { %v1149_v16 = vadd.f32 %v1148_v62, %v1105_v15 }
 0x11f   : > { %v10929_v17 = vpack.c.bf16 %v1147_v14, %v1143_v10  ;;  %v11178_v10 = vld [vmem:[%s13238_s6 + $0x48] sm:$0xff]  }
 0x120   : > { %v10931_v18 = vpack.c.bf16 %v1149_v16, %v1145_v12 }
 0x121   : > { %1959 = vrot.lane.b32.xlu1 %v10929_v17, %s10438_s25 }
 0x122   : > { %1961 = vrot.lane.b32.xlu0 %v10931_v18, %s10438_s25  ;;  %1792 = vmatprep.subr.bf16.mxu0 %v10931_v18 }
 0x123   : > { %1793 = vmatpush1.bf16.msra.mxu0 %v10929_v17 }
 0x124   : > { %1794 = vmatprep.subr.bf16.mxu0 %v10921_v5 }
 0x125   : > { %1965 = vrot.lane.b32.xlu1 %v10919_v3, %s10438_s25 }
 0x127   : > { %1795 = vmatpush1.bf16.msra.mxu0 %v10919_v3 }
 0x128   : > { %8448 = vmatprep.subr.msk.bf16.mxu0 %vm1387_vm2, %v10942_v19 }
 0x129   : > { %1973 = vrot.lane.b32.xlu1 %v10942_v19, %s10438_s25 }
 0x12b   : > { %1797 = vmatpush1.bf16.msra.mxu0 %v1784_v20 }
 0x12d   : > { %2204 = vrot.lane.b32.xlu1 %v10931_v18, %s10439_s17 }
 0x12e   : > { %8449 = vmatmul.mubr.msk.bf16.vlgmr.msra.gmra.mrb[12].mxu0 %vm1591_vm4, %v10958_v21 }
 0x12f   : > { %1834 = vmatprep.mubr.bf16.mxu0 %v10437_v2 }
 0x131   : > { %2202 = vrot.lane.b32.xlu1 %v10929_v17, %s10439_s17 }
 0x136   : > { %8450 = vmatmul.mubr.msk.bf16.gmra.mrb[16].mxu0 %vm1591_vm4, %v10966_v24 }
 0x137   : > { %1844 = vmatprep.mubr.bf16.mxu0 %v10437_v2 }
 0x13e   : > { %8451 = vmatmul.mubr.msk.bf16.gmra.mrb[20].mxu0 %vm1591_vm4, %v10980_v30 }
 0x13f   : > { %1854 = vmatprep.mubr.bf16.mxu0 %v10437_v2 }
 0x146   : > { %8452 = vmatmul.mubr.msk.bf16.gmra.mrb[24].mxu0 %vm1591_vm4, %v10988_v31 }
 0x147   : > { %2043 = vmatprep.mubr.bf16.mxu0 %v10437_v2 }
 0x16e   : > { %v1228_v22 = vpop.f32.mrb[4].mxu1 }
 0x16f   : > { %v1230_v23 = vpop.f32.mrb[5].mxu1 }
 0x170   : > { %v1232_v25 = vpop.f32.mrb[6].mxu1 }
 0x171   : > { %v10968_v26 = vpack.c.bf16 %v1232_v25, %v1228_v22  ;;  %v1234_v27 = vpop.f32.mrb[7].mxu1 }
 0x172   : > { %v10972_v29 = vpack.c.bf16 %v1234_v27, %v1230_v23 }
 0x173   : > { %1963 = vrot.lane.b32.xlu0 %v10968_v26, %s10438_s25 }
 0x180   : > { %v1968_v43 = vpop.permute.xlu1 %1967 }
 0x185   : > { %v1972_v44 = vpop.permute.xlu0 %1971 }
 0x186   : > { %v1485_v32 = vpop.f32.mrb[8].mxu1 }
 0x187   : > { %v1487_v33 = vpop.f32.mrb[9].mxu1 }
 0x188   : > { %v1489_v34 = vpop.f32.mrb[10].mxu1 }
 0x189   : > { %v10993_v35 = vpack.c.bf16 %v1489_v34, %v1485_v32  ;;  %v1491_v36 = vpop.f32.mrb[11].mxu1  ;;  %v11220_v32 = vld [vmem:[%s13238_s6 + $0x58] sm:$0xff]  }
 0x18a   : > { %v10995_v37 = vpack.c.bf16 %v1491_v36, %v1487_v33 }
 0x18b   : > { %2212 = vrot.lane.b32.xlu1 %v10993_v35, %s10439_s17  ;;  %1969 = vrot.lane.b32.xlu0 %v10993_v35, %s10438_s25 }
 0x18e   : > { %v1495_v38 = vpop.f32.mrb[12].mxu1 }
 0x18f   : > { %v11001_v39 = vpack.c.bf16 %v1495_v38, %v1495_v38  ;;  %2214 = vrot.lane.b32.xlu1 %v10925_v60, %s10439_s17  ;;  %v11005_v40 = vpop.f32.mrb[13].mxu1 }
 0x190   : > { %v1499_v41 = vpop.f32.mrb[14].mxu1  ;;  %v11110_v51 = vpack.c.bf16 %v11005_v40, %v11005_v40 }
 0x191   : > { %1975 = vrot.lane.b32.xlu0 %v11001_v39, %s10438_s25  ;;  %v1500_v42 = vpop.f32.mrb[15].mxu1  ;;  %v11234_v41 = vld [vmem:[%s13238_s6 + $0x60] sm:$0xff]  }
 0x193   : > { %2218 = vrot.lane.b32.xlu1 %v11001_v39, %s10439_s17  ;;  %v1960_v45 = vpop.permute.xlu1 %1959 }
 0x194   : > { %v1962_v46 = vpop.permute.xlu0 %1961 }
 0x195   : > { %2206 = vrot.lane.b32.xlu0 %v10968_v26, %s10439_s17  ;;  %v1978_v50 = vsel %vm1977_vm5, %v1960_v45, %v1962_v46 }
 0x197   : > { %2452 = vrot.lane.b32.xlu1 %v10968_v26, %s13257_s27  ;;  %v1966_v49 = vpop.permute.xlu1 %1965 }
 0x198   : > { %v1980_v58 = vsel %vm1977_vm5, %v1966_v49, %v1968_v43  ;;  %v11252_v49 = vld [vmem:[%s13238_s6 + $0x68] sm:$0xff]  }
 0x199   : > { %2210 = vrot.lane.b32.xlu0 %v10921_v5, %s10439_s17 }
 0x19b   : > { %1562 = vrot.lane.b32.xlu1 %v10931_v18, %s10441_s29  ;;  %v1974_v28 = vpop.permute.xlu1 %1973 }
 0x19c   : > { %v1982_v61 = vsel %vm1977_vm5, %v1972_v44, %v1974_v28 }
 0x19d   : > { %2208 = vrot.lane.b32.xlu0 %v10919_v3, %s10439_s17  ;;  %v2003_v1 = vsel %vm1387_vm2, %v1982_v61, 0 }
 0x19f   : > { %1560 = vrot.lane.b32.xlu1 %v10929_v17, %s10441_s29  ;;  %v2205_v52 = vpop.permute.xlu1 %2204 }
 0x1a1   : > { %2216 = vrot.lane.b32.xlu0 %v10942_v19, %s10439_s17 }
 0x1a3   : > { %2460 = vrot.lane.b32.xlu1 %v10993_v35, %s13257_s27  ;;  %v2203_v53 = vpop.permute.xlu1 %2202 }
 0x1a4   : > { %v2221_v7 = vsel %vm2220_vm6, %v2203_v53, %v2205_v52 }
 0x1a5   : > { %2450 = vrot.lane.b32.xlu0 %v10931_v18, %s13257_s27 }
 0x1a7   : > { %1568 = vrot.lane.b32.xlu1 %v10921_v5, %s10441_s29 }
 0x1a9   : > { %2448 = vrot.lane.b32.xlu0 %v10929_v17, %s13257_s27 }
 0x1ab   : > { %1566 = vrot.lane.b32.xlu1 %v10919_v3, %s10441_s29 }
 0x1ad   : > { %1564 = vrot.lane.b32.xlu0 %v10968_v26, %s10441_s29 }
 0x1af   : > { %2466 = vrot.lane.b32.xlu1 %v10942_v19, %s13257_s27 }
 0x1b1   : > { %2458 = vrot.lane.b32.xlu0 %v10921_v5, %s13257_s27 }
 0x1b3   : > { %1572 = vrot.lane.b32.xlu1 %v10925_v60, %s10441_s29 }
 0x1b5   : > { %2456 = vrot.lane.b32.xlu0 %v10919_v3, %s13257_s27 }
 0x1b7   : > { %1576 = vrot.lane.b32.xlu1 %v11001_v39, %s10441_s29 }
 0x1b9   : > { %1570 = vrot.lane.b32.xlu0 %v10993_v35, %s10441_s29 }
 0x1bb   : > { %2704 = vrot.lane.b32.xlu1 %v10968_v26, %s13255_s16 }
 0x1bd   : > { %2464 = vrot.lane.b32.xlu0 %v10925_v60, %s13257_s27 }
 0x1bf   : > { %2710 = vrot.lane.b32.xlu1 %v10921_v5, %s13255_s16 }
 0x1c1   : > { %2468 = vrot.lane.b32.xlu0 %v11001_v39, %s13257_s27 }
 0x1c3   : > { %2708 = vrot.lane.b32.xlu1 %v10919_v3, %s13255_s16 }
 0x1c5   : > { %1574 = vrot.lane.b32.xlu0 %v10942_v19, %s10441_s29 }
 0x1c7   : > { %2718 = vrot.lane.b32.xlu1 %v10942_v19, %s13255_s16 }
 0x1c9   : > { %2702 = vrot.lane.b32.xlu0 %v10931_v18, %s13255_s16 }
 0x1cb   : > { %2954 = vrot.lane.b32.xlu1 %v10931_v18, %s13253_s20 }
 0x1cd   : > { %2700 = vrot.lane.b32.xlu0 %v10929_v17, %s13255_s16 }
 0x1cf   : > { %2952 = vrot.lane.b32.xlu1 %v10929_v17, %s13253_s20 }
 0x1d1   : > { %2712 = vrot.lane.b32.xlu0 %v10993_v35, %s13255_s16 }
 0x1d3   : > { %2964 = vrot.lane.b32.xlu1 %v10993_v35, %s13253_s20 }
 0x1d5   : > { %2716 = vrot.lane.b32.xlu0 %v10925_v60, %s13255_s16 }
 0x1d7   : > { %2968 = vrot.lane.b32.xlu1 %v10925_v60, %s13253_s20 }
 0x1d9   : > { %2720 = vrot.lane.b32.xlu0 %v11001_v39, %s13255_s16 }
 0x1db   : > { %2972 = vrot.lane.b32.xlu1 %v11001_v39, %s13253_s20 }
 0x1dd   : > { %2956 = vrot.lane.b32.xlu0 %v10968_v26, %s13253_s20 }
 0x1df   : > { %3208 = vrot.lane.b32.xlu1 %v10968_v26, %s13251_s21 }
 0x1e1   : > { %2962 = vrot.lane.b32.xlu0 %v10921_v5, %s13253_s20 }
 0x1e3   : > { %2454 = vrot.lane.b32.xlu1 %v10972_v29, %s13257_s27 }
 0x1e5   : > { %2960 = vrot.lane.b32.xlu0 %v10919_v3, %s13253_s20  ;;  %v11093_v47 = vpop.permute.xlu0 %1963 }
 0x1e6   : > { %v1979_v48 = vsel %vm1977_vm5, %v1962_v46, %v11093_v47 }
 0x1e7   : > { %3216 = vrot.lane.b32.xlu1 %v10993_v35, %s13251_s21  ;;  %2011 = vmatprep.subr.bf16.mxu0 %v1979_v48 }
 0x1e8   : > { %2012 = vmatpush1.bf16.msra.mxu0 %v1978_v50 }
 0x1e9   : > { %2970 = vrot.lane.b32.xlu0 %v10942_v19, %s13253_s20 }
 0x1eb   : > { %2462 = vrot.lane.b32.xlu1 %v10995_v37, %s13257_s27 }
 0x1ed   : > { %3206 = vrot.lane.b32.xlu0 %v10931_v18, %s13251_s21 }
 0x1ef   : > { %3222 = vrot.lane.b32.xlu1 %v10942_v19, %s13251_s21 }
 0x1f1   : > { %3204 = vrot.lane.b32.xlu0 %v10929_v17, %s13251_s21 }
 0x1f3   : > { %2470 = vrot.lane.b32.xlu1 %v11110_v51, %s13257_s27  ;;  %s13264_s27 = smul.u32 24, %s13266_s19 }
 0x1f5   : > { %3214 = vrot.lane.b32.xlu0 %v10921_v5, %s13251_s21  ;;  %s13165_s22 = scalar_lea.vmem %s13247_s15, %s13264_s27 }
 0x1f7   : > { %2714 = vrot.lane.b32.xlu1 %v10995_v37, %s13255_s16 }
 0x1f9   : > { %3212 = vrot.lane.b32.xlu0 %v10919_v3, %s13251_s21 }
 0x1fb   : > { %3458 = vrot.lane.b32.xlu1 %v10931_v18, %s13249_s24  ;;  %v11202_v18 = vld [vmem:[%s13238_s6 + $0x50] sm:$0xff]  }
 0x1fd   : > { %v11124_v54 = vpop.permute.xlu1 %2212  ;;  %3220 = vrot.lane.b32.xlu0 %v10925_v60, %s13251_s21  ;;  %v11128_v56 = vpop.permute.xlu0 %1969 }
 0x1fe   : > { %v1981_v57 = vsel %vm1977_vm5, %v1968_v43, %v11128_v56 }
 0x1ff   : > { %3456 = vrot.lane.b32.xlu1 %v10929_v17, %s13249_s24  ;;  %2013 = vmatprep.subr.bf16.mxu0 %v1981_v57 }
 0x200   : > { %2014 = vmatpush1.bf16.msra.mxu0 %v1980_v58 }
 0x201   : > { %v2215_v59 = vpop.permute.xlu1 %2214  ;;  %3224 = vrot.lane.b32.xlu0 %v11001_v39, %s13251_s21 }
 0x203   : > { %3466 = vrot.lane.b32.xlu1 %v10921_v5, %s13249_s24  ;;  %v11140_v62 = vpop.permute.xlu0 %1975 }
 0x204   : > { %v1983_v63 = vsel %vm1977_vm5, %v1974_v28, %v11140_v62 }
 0x205   : > { %v11144_v0 = vpop.permute.xlu1 %2218  ;;  %2706 = vrot.lane.b32.xlu0 %v10972_v29, %s13255_s16  ;;  %8469 = vmatprep.subr.msk.bf16.mxu0 %vm1387_vm2, %v1983_v63 }
 0x206   : > { %2016 = vmatpush1.bf16.msra.mxu0 %v2003_v1 }
 0x207   : > { %3464 = vrot.lane.b32.xlu1 %v10919_v3, %s13249_s24  ;;  %v11157_v5 = vpop.permute.xlu0 %2206 }
 0x208   : > { %v2222_v55 = vsel %vm2220_vm6, %v2205_v52, %v11157_v5 }
 0x209   : > { %v11161_v6 = vpop.permute.xlu1 %2452  ;;  %3460 = vrot.lane.b32.xlu0 %v10968_v26, %s13249_s24  ;;  %8470 = vmatmul.mubr.msk.bf16.vlgmr.msra.gmra.mrb[12].mxu0 %vm1591_vm4, %v11153_v4 }
 0x20a   : > { %2254 = vmatprep.subr.bf16.mxu0 %v2222_v55  ;;  %2053 = vmatprep.mubr.bf16.mxu0 %v10437_v2 }
 0x20b   : > { %2255 = vmatpush1.bf16.msra.mxu0 %v2221_v7  ;;  %3472 = vrot.lane.b32.xlu1 %v10925_v60, %s13249_s24  ;;  %v2211_v3 = vpop.permute.xlu0 %2210  ;;  %v10128_v7 = vld [vmem:[%s13238_s6 + $0x20] sm:$0xff]  }
 0x20c   : > { %v2224_v8 = vsel %vm2220_vm6, %v2211_v3, %v11124_v54 }
 0x20d   : > { %v1563_v9 = vpop.permute.xlu1 %1562  ;;  %2958 = vrot.lane.b32.xlu0 %v10972_v29, %s13253_s20  ;;  %2256 = vmatprep.subr.bf16.mxu0 %v2224_v8 }
 0x20f   : > { %3476 = vrot.lane.b32.xlu1 %v11001_v39, %s13249_s24  ;;  %v2209_v11 = vpop.permute.xlu0 %2208 }
 0x210   : > { %v2223_v60 = vsel %vm2220_vm6, %v2209_v11, %v2211_v3  ;;  %v11287_v11 = vld [vmem:[%s13238_s6 + $0x78] sm:$0xff]  }
 0x211   : > { %v1561_v12 = vpop.permute.xlu1 %1560  ;;  %2722 = vrot.lane.b32.xlu0 %v11110_v51, %s13255_s16  ;;  %8471 = vmatmul.mubr.msk.bf16.gmra.mrb[16].mxu0 %vm1591_vm4, %v11178_v10 }
 0x212   : > { %2257 = vmatpush1.bf16.msra.mxu0 %v2223_v60  ;;  %2063 = vmatprep.mubr.bf16.mxu0 %v10437_v2  ;;  %v1579_v36 = vsel %vm1578_vm8, %v1561_v12, %v1563_v9 }
 0x213   : > { %3210 = vrot.lane.b32.xlu1 %v10972_v29, %s13251_s21  ;;  %v2217_v13 = vpop.permute.xlu0 %2216 }
 0x214   : > { %v2225_v14 = vsel %vm2220_vm6, %v2215_v59, %v2217_v13  ;;  %v2226_v15 = vsel %vm2220_vm6, %v2217_v13, %v11144_v0  ;;  %v11269_v59 = vld [vmem:[%s13238_s6 + $0x70] sm:$0xff]   ;;  %v10130_v13 = vld [vmem:[%s13238_s6 + $0x28] sm:$0xff]  }
 0x215   : > { %v11193_v16 = vpop.permute.xlu1 %2460  ;;  %3468 = vrot.lane.b32.xlu0 %v10993_v35, %s13249_s24  ;;  %8490 = vmatprep.subr.msk.bf16.mxu0 %vm1387_vm2, %v2226_v15  ;;  %v2246_v17 = vsel %vm1387_vm2, %v2225_v14, 0 }
 0x216   : > { %2259 = vmatpush1.bf16.msra.mxu0 %v2246_v17  ;;  %v11304_v17 = vld [vmem:[%s13238_s6 + $0x80] sm:$0xff]  }
 0x217   : > { %3226 = vrot.lane.b32.xlu1 %v11110_v51, %s13251_s21  ;;  %v2451_v20 = vpop.permute.xlu0 %2450 }
 0x218   : > { %v2474_v22 = vsel %vm2472_vm7, %v2451_v20, %v11161_v6 }
 0x219   : > { %v1569_v23 = vpop.permute.xlu1 %1568  ;;  %2966 = vrot.lane.b32.xlu0 %v10995_v37, %s13253_s20  ;;  %8472 = vmatmul.mubr.msk.bf16.gmra.mrb[20].mxu0 %vm1591_vm4, %v11202_v18 }
 0x21a   : > { %2509 = vmatprep.subr.bf16.mxu0 %v2474_v22  ;;  %2073 = vmatprep.mubr.bf16.mxu0 %v10437_v2 }
 0x21b   : > { %3470 = vrot.lane.b32.xlu1 %v10995_v37, %s13249_s24  ;;  %v2449_v25 = vpop.permute.xlu0 %2448 }
 0x21c   : > { %v2473_v44 = vsel %vm2472_vm7, %v2449_v25, %v2451_v20 }
 0x21d   : > { %v1567_v27 = vpop.permute.xlu1 %1566  ;;  %3474 = vrot.lane.b32.xlu0 %v10942_v19, %s13249_s24 }
 0x21e   : > { %v1581_v48 = vsel %vm1578_vm8, %v1567_v27, %v1569_v23 }
 0x21f   : > { %v1565_v33 = vpop.permute.xlu0 %1564 }
 0x220   : > { %v1580_v34 = vsel %vm1578_vm8, %v1563_v9, %v1565_v33 }
 0x221   : > { %v2467_v38 = vpop.permute.xlu1 %2466  ;;  %2974 = vrot.lane.b32.xlu0 %v11110_v51, %s13253_s20  ;;  %1613 = vmatprep.subr.bf16.mxu1 %v1580_v34 }
 0x222   : > { %8473 = vmatmul.mubr.msk.bf16.gmra.mrb[24].mxu0 %vm1591_vm4, %v11220_v32  ;;  %1614 = vmatpush1.bf16.msra.mxu1 %v1579_v36 }
 0x223   : > { %v2459_v19 = vpop.permute.xlu0 %2458  ;;  %2286 = vmatprep.mubr.bf16.mxu0 %v10437_v2 }
 0x224   : > { %v2477_v45 = vsel %vm2472_vm7, %v2459_v19, %v11193_v16 }
 0x225   : > { %v1573_v40 = vpop.permute.xlu1 %1572  ;;  %3218 = vrot.lane.b32.xlu0 %v10995_v37, %s13251_s21  ;;  %s13263_s21 = smov 78  }
 0x227   : > { %v2457_v42 = vpop.permute.xlu0 %2456 }
 0x229   : > { %v1577_v43 = vpop.permute.xlu1 %1576  ;;  %3462 = vrot.lane.b32.xlu0 %v10972_v29, %s13249_s24  ;;  %v2476_v29 = vsel %vm2472_vm7, %v2457_v42, %v2459_v19  ;;  %v11328_v19 = vld [vmem:[%s13238_s6 + $0x88] sm:$0xff]  }
 0x22a   : > { %8491 = vmatmul.mubr.msk.bf16.vlgmr.msra.gmra.mrb[12].mxu0 %vm1591_vm4, %v11234_v41  ;;  %v1611_v15 = vsel %vm1387_vm2, %v1577_v43, 0 }
 0x22b   : > { %2510 = vmatpush1.bf16.msra.mxu0 %v2473_v44  ;;  %v1571_v37 = vpop.permute.xlu0 %1570  ;;  %2296 = vmatprep.mubr.bf16.mxu0 %v10437_v2  ;;  %v10134_v44 = vld [vmem:[%s13238_s6 + $0x38] sm:$0xff]  }
 0x22c   : > { %2511 = vmatprep.subr.bf16.mxu0 %v2477_v45  ;;  %v1582_v46 = vsel %vm1578_vm8, %v1569_v23, %v1571_v37  ;;  %v10132_v23 = vld [vmem:[%s13238_s6 + $0x30] sm:$0xff]  }
 0x22d   : > { %3478 = vrot.lane.b32.xlu0 %v11110_v51, %s13249_s24  ;;  %1615 = vmatprep.subr.bf16.mxu1 %v1582_v46  ;;  %v11254_v50 = vpop.permute.xlu1 %2704 }
 0x22e   : > { %1616 = vmatpush1.bf16.msra.mxu1 %v1581_v48  ;;  %v11351_v48 = vld [vmem:[%s13238_s6 + $0x90] sm:$0xff]  }
 0x22f   : > { %2512 = vmatpush1.bf16.msra.mxu0 %v2476_v29  ;;  %v2465_v28 = vpop.permute.xlu0 %2464 }
 0x230   : > { %v2479_v52 = vsel %vm2472_vm7, %v2465_v28, %v2467_v38 }
 0x231   : > { %v2501_v57 = vsel %vm1387_vm2, %v2479_v52, 0  ;;  %v2711_v58 = vpop.permute.xlu1 %2710 }
 0x232   : > { %8492 = vmatmul.mubr.msk.bf16.gmra.mrb[16].mxu0 %vm1591_vm4, %v11252_v49 }
 0x233   : > { %v11259_v53 = vpop.permute.xlu0 %2468  ;;  %2306 = vmatprep.mubr.bf16.mxu0 %v10437_v2 }
 0x234   : > { %v2480_v51 = vsel %vm2472_vm7, %v2467_v38, %v11259_v53 }
 0x235   : > { %8511 = vmatprep.subr.msk.bf16.mxu0 %vm1387_vm2, %v2480_v51  ;;  %v2709_v3 = vpop.permute.xlu1 %2708  ;;  %v11362_v51 = vld [vmem:[%s13238_s6 + $0x98] sm:$0xff]  }
 0x236   : > { %2514 = vmatpush1.bf16.msra.mxu0 %v2501_v57  ;;  %v2728_v38 = vsel %vm2724_vm9, %v2709_v3, %v2711_v58 }
 0x237   : > { %v1575_v61 = vpop.permute.xlu0 %1574 }
 0x238   : > { %v1583_v63 = vsel %vm1578_vm8, %v1573_v40, %v1575_v61  ;;  %v1584_v1 = vsel %vm1578_vm8, %v1575_v61, %v1577_v43  ;;  %v1790_v61 = vsel %vm1387_vm2, %v11001_v39, 0 }
 0x239   : > { %8435 = vmatprep.subr.msk.bf16.mxu1 %vm1387_vm2, %v1584_v1  ;;  %v1605_v55 = vsel %vm1387_vm2, %v1583_v63, 0  ;;  %v2719_v12 = vpop.permute.xlu1 %2718  ;;  %v3679_v63 = vld [vmem:[%s13239_s7] sm:$0xff]  ;;  %v3680_v1 = vld [vmem:[%s13239_s7 + $0x8] sm:$0xff] }
 0x23a   : > { %8493 = vmatmul.mubr.msk.bf16.gmra.mrb[20].mxu0 %vm1591_vm4, %v11269_v59  ;;  %1618 = vmatpush1.bf16.msra.mxu1 %v1605_v55 }
 0x23b   : > { %9173 = vmatprep.subr.bf16.mxu1 %v1565_v33  ;;  %v2703_v8 = vpop.permute.xlu0 %2702  ;;  %2316 = vmatprep.mubr.bf16.mxu0 %v10437_v2 }
 0x23c   : > { %v2726_v9 = vsel %vm2724_vm9, %v2703_v8, %v11254_v50  ;;  %3689 = vperm.xlu1 %9949, %v3679_v63   ;;  %3694 = vperm.xlu0 %9950, %v3680_v1  }
 0x23d   : > { %8436 = vmatmul.mubr.msk.bf16.vlgmr.msra.gmra.mrb[16].mxu1 %vm1591_vm4, %v10128_v7  ;;  %2761 = vmatprep.subr.bf16.mxu0 %v2726_v9  ;;  %v11307_v20 = vpop.permute.xlu1 %2954 }
 0x23e   : > { %9174 = vmatpush3.bf16.msra.mxu1 %v1565_v33  ;;  %1655 = vmatprep.mubr.bf16.mxu1 %v10437_v2 }
 0x23f   : > { %9175 = vmatprep.subr.bf16.mxu1 %v1571_v37  ;;  %v2701_v60 = vpop.permute.xlu0 %2700 }
 0x240   : > { %v2725_v25 = vsel %vm2724_vm9, %v2701_v60, %v2703_v8  ;;  %v3752_v60 = vld [vmem:[%s13240_s8 + $0x8] sm:$0xff] }
 0x241   : > { %v2953_v34 = vpop.permute.xlu1 %2952 }
 0x242   : > { %8494 = vmatmul.mubr.msk.bf16.gmra.mrb[24].mxu0 %vm1591_vm4, %v11287_v11  ;;  %9176 = vmatpush3.bf16.msra.mxu1 %v1571_v37 }
 0x243   : > { %9917 = vmatprep.subr.msk.bf16.mxu1 %vm1387_vm2, %v1577_v43  ;;  %v11296_v14 = vpop.permute.xlu0 %2712  ;;  %2541 = vmatprep.mubr.bf16.mxu0 %v10437_v2 }
 0x244   : > { %v2729_v27 = vsel %vm2724_vm9, %v2711_v58, %v11296_v14 }
 0x245   : > { %8437 = vmatmul.mubr.msk.bf16.gmra.mrb[20].mxu1 %vm1591_vm4, %v10130_v13  ;;  %v11344_v37 = vpop.permute.xlu1 %2964 }
 0x246   : > { %9178 = vmatpush3.bf16.msra.mxu1 %v1611_v15  ;;  %1665 = vmatprep.mubr.bf16.mxu1 %v10437_v2 }
 0x247   : > { %9187 = vmatprep.subr.bf16.mxu1 %v10968_v26  ;;  %v2717_v22 = vpop.permute.xlu0 %2716 }
 0x248   : > { %v2731_v40 = vsel %vm2724_vm9, %v2717_v22, %v2719_v12  ;;  %v3682_v22 = vld [vmem:[%s13239_s7 + $0x18] sm:$0xff] }
 0x249   : > { %v2753_v45 = vsel %vm1387_vm2, %v2731_v40, 0  ;;  %v2969_v28 = vpop.permute.xlu1 %2968 }
 0x24a   : > { %8512 = vmatmul.mubr.msk.bf16.vlgmr.msra.gmra.mrb[12].mxu0 %vm1591_vm4, %v11304_v17 }
 0x24b   : > { %2762 = vmatpush1.bf16.msra.mxu0 %v2725_v25  ;;  %v11318_v33 = vpop.permute.xlu0 %2720  ;;  %2551 = vmatprep.mubr.bf16.mxu0 %v10437_v2 }
 0x24c   : > { %2763 = vmatprep.subr.bf16.mxu0 %v2729_v27  ;;  %v2732_v36 = vsel %vm2724_vm9, %v2719_v12, %v11318_v33  ;;  %v2009_v27 = vsel %vm1387_vm2, %v11140_v62, 0 }
 0x24d   : > { %8438 = vmatmul.mubr.msk.bf16.gmra.mrb[24].mxu1 %vm1591_vm4, %v10132_v23  ;;  %v11365_v57 = vpop.permute.xlu1 %2972 }
 0x24e   : > { %1675 = vmatprep.mubr.bf16.mxu1 %v10437_v2 }
 0x24f   : > { %2764 = vmatpush1.bf16.msra.mxu0 %v2728_v38  ;;  %v11332_v42 = vpop.permute.xlu0 %2956 }
 0x250   : > { %8532 = vmatprep.subr.msk.bf16.mxu0 %vm1387_vm2, %v2732_v36  ;;  %v2978_v43 = vsel %vm2976_vm10, %v11307_v20, %v11332_v42  ;;  %v3754_v36 = vld [vmem:[%s13240_s8 + $0x18] sm:$0xff] }
 0x252   : > { %8513 = vmatmul.mubr.msk.bf16.gmra.mrb[16].mxu0 %vm1591_vm4, %v11328_v19 }
 0x253   : > { %2766 = vmatpush1.bf16.msra.mxu0 %v2753_v45  ;;  %v2963_v46 = vpop.permute.xlu0 %2962  ;;  %2561 = vmatprep.mubr.bf16.mxu0 %v10437_v2 }
 0x254   : > { %3013 = vmatprep.subr.bf16.mxu0 %v2978_v43  ;;  %v2981_v8 = vsel %vm2976_vm10, %v2963_v46, %v11344_v37  ;;  %v11484_v43 = vld [vmem:[%s13238_s6 + $0xb8] sm:$0xff]  }
 0x255   : > { %8439 = vmatmul.mubr.msk.bf16.gmra.mrb[28].mxu1 %vm1591_vm4, %v10134_v44 }
 0x256   : > { %9179 = vmatprep.mubr.msk.bf16.mxu1 %vm1591_vm4, %v10128_v7  ;;  %v2977_v7 = vsel %vm2976_vm10, %v2953_v34, %v11307_v20  ;;  %v11461_v34 = vld [vmem:[%s13238_s6 + $0xb0] sm:$0xff]  }
 0x257   : > { %v2961_v29 = vpop.permute.xlu0 %2960 }
 0x258   : > { %v2980_v12 = vsel %vm2976_vm10, %v2961_v29, %v2963_v46  ;;  %v11513_v29 = vld [vmem:[%s13238_s6 + $0xc0] sm:$0xff]  }
 0x25a   : > { %8514 = vmatmul.mubr.msk.bf16.gmra.mrb[20].mxu0 %vm1591_vm4, %v11351_v48 }
 0x25b   : > { %v2971_v52 = vpop.permute.xlu0 %2970  ;;  %2571 = vmatprep.mubr.bf16.mxu0 %v10437_v2 }
 0x25c   : > { %v2983_v15 = vsel %vm2976_vm10, %v2969_v28, %v2971_v52 }
 0x25d   : > { %9180 = vmatmul.mubr.msk.bf16.vlgmr.msra.gmra.mrb[32].mxu1 %vm1591_vm4, %v10130_v13  ;;  %v11424_v13 = vld [vmem:[%s13238_s6 + $0xa8] sm:$0xff]  }
 0x25e   : > { %9188 = vmatpush3.bf16.msra.mxu1 %v10968_v26  ;;  %9183 = vmatprep.mubr.msk.bf16.mxu1 %vm1591_vm4, %v10132_v23  ;;  %v11376_v26 = vpop.permute.xlu1 %3208 }
 0x25f   : > { %9189 = vmatprep.subr.bf16.mxu1 %v10993_v35  ;;  %v11368_v58 = vpop.permute.xlu0 %3206 }
 0x260   : > { %v3230_v25 = vsel %vm3228_vm11, %v11368_v58, %v11376_v26 }
 0x262   : > { %9190 = vmatpush3.bf16.msra.mxu1 %v10993_v35  ;;  %8515 = vmatmul.mubr.msk.bf16.gmra.mrb[24].mxu0 %vm1591_vm4, %v11362_v51  ;;  %v11387_v35 = vld [vmem:[%s13238_s6 + $0xa0] sm:$0xff]   ;;  %v11407_v3 = vpop.permute.xlu1 %2454 }
 0x263   : > { %9918 = vmatprep.subr.msk.bf16.mxu1 %vm1387_vm2, %v11001_v39  ;;  %2793 = vmatprep.mubr.bf16.mxu0 %v10437_v2  ;;  %v11394_v55 = vpop.permute.xlu0 %3204  ;;  %v3751_v39 = vld [vmem:[%s13240_s8] sm:$0xff]  ;;  %v2475_v46 = vsel %vm2472_vm7, %v11161_v6, %v11407_v3 }
 0x264   : > { %3761 = vperm.xlu1 %9949, %v3751_v39   ;;  %v3229_v28 = vsel %vm3228_vm11, %v11394_v55, %v11368_v58 }
 0x265   : > { %9184 = vmatmul.mubr.msk.bf16.gmra.mrb[36].mxu1 %vm1591_vm4, %v10134_v44  ;;  %v3756_v44 = vld [vmem:[%s13240_s8 + $0x28] sm:$0xff] }
 0x266   : > { %9192 = vmatpush3.bf16.msra.mxu1 %v1790_v61  ;;  %9193 = vmatprep.mubr.msk.bf16.mxu1 %vm1591_vm4, %v10958_v21  ;;  %v3681_v21 = vld [vmem:[%s13239_s7 + $0x10] sm:$0xff]  ;;  %v11436_v20 = vpop.permute.xlu1 %3216  ;;  %v11540_v61 = vld [vmem:[%s13238_s6 + $0xc8] sm:$0xff]  }
 0x267   : > { %9201 = vmatprep.subr.bf16.mxu1 %v11093_v47  ;;  %v11412_v9 = vpop.permute.xlu0 %3214  ;;  %3699 = vperm.xlu0 %9950, %v3681_v21  }
 0x268   : > { %3766 = vperm.xlu1 %9949, %v3752_v60  }
 0x26a   : > { %8533 = vmatmul.mubr.msk.bf16.vlgmr.msra.gmra.mrb[12].mxu0 %vm1591_vm4, %v11387_v35  ;;  %v2463_v38 = vpop.permute.xlu1 %2462 }
 0x26b   : > { %3014 = vmatpush1.bf16.msra.mxu0 %v2977_v7  ;;  %2803 = vmatprep.mubr.bf16.mxu0 %v10437_v2  ;;  %v3213_v23 = vpop.permute.xlu0 %3212  ;;  %v2478_v58 = vsel %vm2472_vm7, %v11193_v16, %v2463_v38 }
 0x26c   : > { %3015 = vmatprep.subr.bf16.mxu0 %v2981_v8  ;;  %3704 = vperm.xlu1 %9949, %v3682_v22   ;;  %v11568_v8 = vld [vmem:[%s13238_s6 + $0xd0] sm:$0xff]  }
 0x26d   : > { %9194 = vmatmul.mubr.msk.bf16.vlgmr.msra.gmra.mrb[32].mxu1 %vm1591_vm4, %v10966_v24  ;;  %v3753_v24 = vld [vmem:[%s13240_s8 + $0x10] sm:$0xff] }
 0x26e   : > { %9202 = vmatpush3.bf16.msra.mxu1 %v11093_v47  ;;  %9197 = vmatprep.mubr.msk.bf16.mxu1 %vm1591_vm4, %v10980_v30  ;;  %v2984_v47 = vsel %vm2976_vm10, %v2971_v52, %v11365_v57  ;;  %v3005_v30 = vsel %vm1387_vm2, %v2983_v15, 0  ;;  %v3223_v40 = vpop.permute.xlu1 %3222  ;;  %v3232_v52 = vsel %vm3228_vm11, %v3213_v23, %v11412_v9 }
 0x26f   : > { %3016 = vmatpush1.bf16.msra.mxu0 %v2980_v12  ;;  %9203 = vmatprep.subr.bf16.mxu1 %v11128_v56  ;;  %v11587_v12 = vld [vmem:[%s13238_s6 + $0xd8] sm:$0xff]  }
 0x270   : > { %8553 = vmatprep.subr.msk.bf16.mxu0 %vm1387_vm2, %v2984_v47  ;;  %3771 = vperm.xlu0 %9950, %v3753_v24  }
 0x271   : > { %3776 = vperm.xlu1 %9949, %v3754_v36  }
 0x272   : > { %9204 = vmatpush3.bf16.msra.mxu1 %v11128_v56  ;;  %8534 = vmatmul.mubr.msk.bf16.gmra.mrb[16].mxu0 %vm1591_vm4, %v11424_v13  ;;  %v3683_v56 = vld [vmem:[%s13239_s7 + $0x20] sm:$0xff] }
 0x273   : > { %3018 = vmatpush1.bf16.msra.mxu0 %v3005_v30  ;;  %9919 = vmatprep.subr.msk.bf16.mxu1 %vm1387_vm2, %v11140_v62  ;;  %v3221_v62 = vpop.permute.xlu0 %3220 }
 0x274   : > { %3265 = vmatprep.subr.bf16.mxu0 %v3230_v25  ;;  %2813 = vmatprep.mubr.bf16.mxu0 %v10437_v2  ;;  %v3235_v1 = vsel %vm3228_vm11, %v3221_v62, %v3223_v40  ;;  %v10146_v25 = vld [vmem:[%s13238_s6 + $0xe8] sm:$0xff]  }
 0x275   : > { %9198 = vmatmul.mubr.msk.bf16.gmra.mrb[36].mxu1 %vm1591_vm4, %v10988_v31  ;;  %3709 = vperm.xlu0 %9950, %v3683_v56   ;;  %v3755_v31 = vld [vmem:[%s13240_s8 + $0x20] sm:$0xff]  ;;  %v3257_v39 = vsel %vm1387_vm2, %v3235_v1, 0 }
 0x276   : > { %9206 = vmatpush3.bf16.msra.mxu1 %v2009_v27  ;;  %9207 = vmatprep.mubr.msk.bf16.mxu1 %vm1591_vm4, %v11153_v4  ;;  %v3684_v4 = vld [vmem:[%s13239_s7 + $0x28] sm:$0xff]  ;;  %v10164_v1 = vld [vmem:[%s13236_s4 + $0x64] ss:$16 sps:$4 sm:$0xff]  }
 0x277   : > { %9215 = vmatprep.subr.bf16.mxu1 %v11157_v5  ;;  %3714 = vperm.xlu1 %9949, %v3684_v4   ;;  %v11491_v45 = vpop.permute.xlu0 %3224  ;;  %v10148_v4 = vld [vmem:[%s13238_s6 + $0xf8] sm:$0xff]  }
 0x279   : > { %3781 = vperm.xlu0 %9950, %v3755_v31   ;;  %v10147_v31 = vld [vmem:[%s13238_s6 + $0xf0] sm:$0xff]  }
 0x27a   : > { %8535 = vmatmul.mubr.msk.bf16.gmra.mrb[20].mxu0 %vm1591_vm4, %v11461_v34 }
 0x27b   : > { %2823 = vmatprep.mubr.bf16.mxu0 %v10437_v2  ;;  %3786 = vperm.xlu1 %9949, %v3756_v44  }
 0x27d   : > { %9208 = vmatmul.mubr.msk.bf16.vlgmr.msra.gmra.mrb[32].mxu1 %vm1591_vm4, %v11178_v10  ;;  %v2471_v10 = vpop.permute.xlu1 %2470 }
 0x27e   : > { %9216 = vmatpush3.bf16.msra.mxu1 %v11157_v5  ;;  %9211 = vmatprep.mubr.msk.bf16.mxu1 %vm1591_vm4, %v11202_v18  ;;  %v3686_v5 = vld [vmem:[%s13239_s7 + $0x38] sm:$0xff]  ;;  %v2707_v18 = vpop.permute.xlu0 %2706  ;;  %v2481_v16 = vsel %vm2472_vm7, %v11259_v53, %v2471_v10 }
 0x27f   : > { %9217 = vmatprep.subr.bf16.mxu1 %v11124_v54  ;;  %3724 = vperm.xlu1 %9949, %v3686_v5   ;;  %v2507_v53 = vsel %vm1387_vm2, %v2481_v16, 0  ;;  %v2727_v3 = vsel %vm2724_vm9, %v11254_v50, %v2707_v18 }
 0x282   : > { %9218 = vmatpush3.bf16.msra.mxu1 %v11124_v54  ;;  %8536 = vmatmul.mubr.msk.bf16.gmra.mrb[24].mxu0 %vm1591_vm4, %v11484_v43  ;;  %v2252_v54 = vsel %vm1387_vm2, %v11144_v0, 0  ;;  %v11525_v6 = vpop.permute.xlu0 %3460 }
 0x283   : > { %9920 = vmatprep.subr.msk.bf16.mxu1 %vm1387_vm2, %v11144_v0  ;;  %3045 = vmatprep.mubr.bf16.mxu0 %v10437_v2  ;;  %v2715_v0 = vpop.permute.xlu1 %2714 }
 0x285   : > { %9212 = vmatmul.mubr.msk.bf16.gmra.mrb[36].mxu1 %vm1591_vm4, %v11220_v32  ;;  %v3758_v32 = vld [vmem:[%s13240_s8 + $0x38] sm:$0xff] }
 0x286   : > { %9220 = vmatpush3.bf16.msra.mxu1 %v2252_v54  ;;  %9221 = vmatprep.mubr.msk.bf16.mxu1 %vm1591_vm4, %v11234_v41  ;;  %v3233_v41 = vsel %vm3228_vm11, %v11412_v9, %v11436_v20  ;;  %v2959_v55 = vpop.permute.xlu0 %2958  ;;  %v3757_v9 = vld [vmem:[%s13240_s8 + $0x30] sm:$0xff]  ;;  %v10150_v54 = vld [vmem:[%s13238_s6 + $0x108] sm:$0xff]  }
 0x287   : > { %9229 = vmatprep.subr.bf16.mxu1 %v2475_v46  ;;  %3796 = vperm.xlu1 %9949, %v3758_v32   ;;  %v3459_v63 = vpop.permute.xlu1 %3458  ;;  %v10155_v32 = vld [vmem:[%s13236_s4 + $0x4] ss:$16 sps:$4 sm:$0xff]  }
 0x288   : > { %v3482_v7 = vsel %vm3480_vm12, %v3459_v63, %v11525_v6 }
 0x28a   : > { %8554 = vmatmul.mubr.msk.bf16.vlgmr.msra.gmra.mrb[12].mxu0 %vm1591_vm4, %v11513_v29  ;;  %v2723_v60 = vpop.permute.xlu0 %2722 }
 0x28b   : > { %3266 = vmatpush1.bf16.msra.mxu0 %v3229_v28  ;;  %3055 = vmatprep.mubr.bf16.mxu0 %v10437_v2  ;;  %v3457_v21 = vpop.permute.xlu1 %3456  ;;  %v2733_v15 = vsel %vm2724_vm9, %v11318_v33, %v2723_v60  ;;  %v10145_v33 = vld [vmem:[%s13238_s6 + $0xe0] sm:$0xff]   ;;  %v10151_v28 = vld [vmem:[%s13238_s6 + $0x110] sm:$0xff]  }
 0x28c   : > { %3267 = vmatprep.subr.bf16.mxu0 %v3233_v41  ;;  %v3481_v22 = vsel %vm3480_vm12, %v3457_v21, %v3459_v63  ;;  %v10158_v41 = vld [vmem:[%s13236_s4 + $0x24] ss:$16 sps:$4 sm:$0xff]   ;;  %v10159_v63 = vld [vmem:[%s13236_s4 + $0x40] ss:$16 sps:$4 sm:$0xff]  }
 0x28d   : > { %9222 = vmatmul.mubr.msk.bf16.vlgmr.msra.gmra.mrb[32].mxu1 %vm1591_vm4, %v11252_v49  ;;  %v3236_v49 = vsel %vm3228_vm11, %v3223_v40, %v11491_v45  ;;  %v10176_v21 = vld [vmem:[%s13236_s4 + $0xe4] ss:$16 sps:$4 sm:$0xff]  }
 0x28e   : > { %9230 = vmatpush3.bf16.msra.mxu1 %v2475_v46  ;;  %9225 = vmatprep.mubr.msk.bf16.mxu1 %vm1591_vm4, %v11269_v59  ;;  %v3685_v59 = vld [vmem:[%s13239_s7 + $0x30] sm:$0xff]  ;;  %v11578_v50 = vpop.permute.xlu0 %3468 }
 0x28f   : > { %3268 = vmatpush1.bf16.msra.mxu0 %v3232_v52  ;;  %9231 = vmatprep.subr.bf16.mxu1 %v2478_v58  ;;  %v10152_v52 = vld [vmem:[%s13238_s6 + $0x118] sm:$0xff]   ;;  %v10182_v60 = vld [vmem:[%s13236_s4 + $0x124] ss:$16 sps:$4 sm:$0xff]  }
 0x290   : > { %8574 = vmatprep.subr.msk.bf16.mxu0 %vm1387_vm2, %v3236_v49  ;;  %3719 = vperm.xlu0 %9950, %v3685_v59   ;;  %v10162_v49 = vld [vmem:[%s13236_s4 + $0x60] ss:$16 sps:$4 sm:$0xff]  }
 0x291   : > { %v10168_v59 = vld [vmem:[%s13236_s4 + $0xa0] ss:$16 sps:$4 sm:$0xff]  }
 0x292   : > { %9232 = vmatpush3.bf16.msra.mxu1 %v2478_v58  ;;  %8555 = vmatmul.mubr.msk.bf16.gmra.mrb[16].mxu0 %vm1591_vm4, %v11540_v61  ;;  %v10156_v58 = vld [vmem:[%s13236_s4 + $0x20] ss:$16 sps:$4 sm:$0xff]  }
 0x293   : > { %3270 = vmatpush1.bf16.msra.mxu0 %v3257_v39  ;;  %9921 = vmatprep.subr.msk.bf16.mxu1 %vm1387_vm2, %v2481_v16  ;;  %v10165_v16 = vld [vmem:[%s13236_s4 + $0x80] ss:$16 sps:$4 sm:$0xff]   ;;  %v10170_v39 = vld [vmem:[%s13236_s4 + $0xa4] ss:$16 sps:$4 sm:$0xff]  }
 0x294   : > { %3517 = vmatprep.subr.bf16.mxu0 %v3482_v7  ;;  %3065 = vmatprep.mubr.bf16.mxu0 %v10437_v2  ;;  %v10173_v7 = vld [vmem:[%s13236_s4 + $0xc4] ss:$16 sps:$4 sm:$0xff]  }
 0x295   : > { %9226 = vmatmul.mubr.msk.bf16.gmra.mrb[36].mxu1 %vm1591_vm4, %v11287_v11  ;;  %3791 = vperm.xlu0 %9950, %v3757_v9   ;;  %v3467_v11 = vpop.permute.xlu1 %3466  ;;  %v10177_v9 = vld [vmem:[%s13236_s4 + $0x100] ss:$16 sps:$4 sm:$0xff]  }
 0x296   : > { %9234 = vmatpush3.bf16.msra.mxu1 %v2507_v53  ;;  %9235 = vmatprep.mubr.msk.bf16.mxu1 %vm1591_vm4, %v11304_v17  ;;  %v2730_v17 = vsel %vm2724_vm9, %v11296_v14, %v2715_v0  ;;  %v2759_v14 = vsel %vm1387_vm2, %v2733_v15, 0  ;;  %v10171_v53 = vld [vmem:[%s13236_s4 + $0xc0] ss:$16 sps:$4 sm:$0xff]  }
 0x297   : > { %9243 = vmatprep.subr.bf16.mxu1 %v2727_v3 }
 0x299   : > { %v3465_v24 = vpop.permute.xlu1 %3464 }
 0x29a   : > { %8556 = vmatmul.mubr.msk.bf16.gmra.mrb[20].mxu0 %vm1591_vm4, %v11568_v8 }
 0x29b   : > { %3075 = vmatprep.mubr.bf16.mxu0 %v10437_v2 }
 0x29d   : > { %9236 = vmatmul.mubr.msk.bf16.vlgmr.msra.gmra.mrb[32].mxu1 %vm1591_vm4, %v11328_v19  ;;  %v2967_v19 = vpop.permute.xlu0 %2966  ;;  %v3473_v47 = vpop.permute.xlu1 %3472 }
 0x29e   : > { %9244 = vmatpush3.bf16.msra.mxu1 %v2727_v3  ;;  %9239 = vmatprep.mubr.msk.bf16.mxu1 %vm1591_vm4, %v11351_v48  ;;  %v2979_v48 = vsel %vm2976_vm10, %v11332_v42, %v2959_v55  ;;  %v2982_v23 = vsel %vm2976_vm10, %v11344_v37, %v2967_v19  ;;  %v10167_v55 = vld [vmem:[%s13236_s4 + $0x84] ss:$16 sps:$4 sm:$0xff]   ;;  %v10174_v3 = vld [vmem:[%s13236_s4 + $0xe0] ss:$16 sps:$4 sm:$0xff]  }
 0x29f   : > { %9245 = vmatprep.subr.bf16.mxu1 %v2730_v17  ;;  %v10189_v19 = vld [vmem:[%s13236_s4 + $0x180] ss:$16 sps:$4 sm:$0xff]  }
 0x2a1   : > { %v3475_v30 = vpop.permute.xlu0 %3474  ;;  %v3477_v42 = vpop.permute.xlu1 %3476 }
 0x2a2   : > { %9246 = vmatpush3.bf16.msra.mxu1 %v2730_v17  ;;  %8557 = vmatmul.mubr.msk.bf16.gmra.mrb[24].mxu0 %vm1591_vm4, %v11587_v12  ;;  %v3487_v56 = vsel %vm3480_vm12, %v3473_v47, %v3475_v30  ;;  %v10183_v17 = vld [vmem:[%s13236_s4 + $0x140] ss:$16 sps:$4 sm:$0xff]  }
 0x2a3   : > { %9922 = vmatprep.subr.msk.bf16.mxu1 %vm1387_vm2, %v2733_v15  ;;  %3297 = vmatprep.mubr.bf16.mxu0 %v10437_v2  ;;  %v3509_v37 = vsel %vm1387_vm2, %v3487_v56, 0  ;;  %v10191_v15 = vld [vmem:[%s13236_s4 + $0x184] ss:$16 sps:$4 sm:$0xff]  }
 0x2a5   : > { %9240 = vmatmul.mubr.msk.bf16.gmra.mrb[36].mxu1 %vm1591_vm4, %v11362_v51  ;;  %v3485_v51 = vsel %vm3480_vm12, %v3467_v11, %v11578_v50  ;;  %v2975_v27 = vpop.permute.xlu0 %2974  ;;  %v3211_v38 = vpop.permute.xlu1 %3210 }
 0x2a6   : > { %9248 = vmatpush3.bf16.msra.mxu1 %v2759_v14  ;;  %9249 = vmatprep.mubr.msk.bf16.mxu1 %vm1591_vm4, %v11387_v35  ;;  %v3484_v35 = vsel %vm3480_vm12, %v3465_v24, %v3467_v11  ;;  %v2985_v36 = vsel %vm2976_vm10, %v11365_v57, %v2975_v27  ;;  %v3231_v57 = vsel %vm3228_vm11, %v11376_v26, %v3211_v38  ;;  %v10180_v11 = vld [vmem:[%s13236_s4 + $0x120] ss:$16 sps:$4 sm:$0xff]   ;;  %v10200_v38 = vld [vmem:[%s13236_s4 + $0x1e4] ss:$16 sps:$4 sm:$0xff]  }
 0x2a7   : > { %9257 = vmatprep.subr.bf16.mxu1 %v2979_v48  ;;  %v10186_v24 = vld [vmem:[%s13236_s4 + $0x160] ss:$16 sps:$4 sm:$0xff]  }
 0x2a9   : > { %v3219_v62 = vpop.permute.xlu0 %3218  ;;  %v3227_v40 = vpop.permute.xlu1 %3226 }
 0x2aa   : > { %8575 = vmatmul.mubr.msk.bf16.vlgmr.msra.gmra.mrb[12].mxu0 %vm1591_vm4, %v10145_v33  ;;  %v3234_v26 = vsel %vm3228_vm11, %v11436_v20, %v3219_v62 }
 0x2ab   : > { %3518 = vmatpush1.bf16.msra.mxu0 %v3481_v22  ;;  %3307 = vmatprep.mubr.bf16.mxu0 %v10437_v2 }
 0x2ac   : > { %3519 = vmatprep.subr.bf16.mxu0 %v3485_v51 }
 0x2ad   : > { %9250 = vmatmul.mubr.msk.bf16.vlgmr.msra.gmra.mrb[32].mxu1 %vm1591_vm4, %v11424_v13  ;;  %v3488_v13 = vsel %vm3480_vm12, %v3475_v30, %v3477_v42  ;;  %v3463_v44 = vpop.permute.xlu0 %3462  ;;  %v3471_v10 = vpop.permute.xlu1 %3470 }
 0x2ae   : > { %9258 = vmatpush3.bf16.msra.mxu1 %v2979_v48  ;;  %9253 = vmatprep.mubr.msk.bf16.mxu1 %vm1591_vm4, %v11461_v34  ;;  %v3011_v34 = vsel %vm1387_vm2, %v2985_v36, 0  ;;  %v3483_v5 = vsel %vm3480_vm12, %v11525_v6, %v3463_v44  ;;  %v3486_v18 = vsel %vm3480_vm12, %v11578_v50, %v3471_v10  ;;  %v10153_v6 = vld [vmem:[%s13236_s4] ss:$16 sps:$4 sm:$0xff]   ;;  %v10185_v50 = vld [vmem:[%s13236_s4 + $0x144] ss:$16 sps:$4 sm:$0xff]  }
 0x2af   : > { %3520 = vmatpush1.bf16.msra.mxu0 %v3484_v35  ;;  %9259 = vmatprep.subr.bf16.mxu1 %v2982_v23  ;;  %v10194_v35 = vld [vmem:[%s13236_s4 + $0x1a4] ss:$16 sps:$4 sm:$0xff]  }
 0x2b0   : > { %8595 = vmatprep.subr.msk.bf16.mxu0 %vm1387_vm2, %v3488_v13 }
 0x2b1   : > { %v3479_v46 = vpop.permute.xlu0 %3478 }
 0x2b2   : > { %9260 = vmatpush3.bf16.msra.mxu1 %v2982_v23  ;;  %8576 = vmatmul.mubr.msk.bf16.gmra.mrb[16].mxu0 %vm1591_vm4, %v10146_v25 }
 0x2b3   : > { %3522 = vmatpush1.bf16.msra.mxu0 %v3509_v37  ;;  %9923 = vmatprep.subr.msk.bf16.mxu1 %vm1387_vm2, %v2985_v36  ;;  %v10197_v36 = vld [vmem:[%s13236_s4 + $0x1c4] ss:$16 sps:$4 sm:$0xff]   ;;  %v10195_v37 = vld [vmem:[%s13236_s4 + $0x1c0] ss:$16 sps:$4 sm:$0xff]  }
 0x2b4   : > { %3317 = vmatprep.mubr.bf16.mxu0 %v10437_v2 }
 0x2b5   : > { %9254 = vmatmul.mubr.msk.bf16.gmra.mrb[36].mxu1 %vm1591_vm4, %v11484_v43  ;;  %v3237_v43 = vsel %vm3228_vm11, %v11491_v45, %v3227_v40  ;;  %v10149_v45 = vld [vmem:[%s13238_s6 + $0x100] sm:$0xff]  }
 0x2b6   : > { %9262 = vmatpush3.bf16.msra.mxu1 %v3011_v34  ;;  %9263 = vmatprep.mubr.msk.bf16.mxu1 %vm1591_vm4, %v11513_v29  ;;  %v3263_v20 = vsel %vm1387_vm2, %v3237_v43, 0  ;;  %v3489_v29 = vsel %vm3480_vm12, %v3477_v42, %v3479_v46 }
 0x2b7   : > { %9271 = vmatprep.subr.bf16.mxu1 %v3231_v57  ;;  %v3515_v0 = vsel %vm1387_vm2, %v3489_v29, 0 }
 0x2ba   : > { %8577 = vmatmul.mubr.msk.bf16.gmra.mrb[20].mxu0 %vm1591_vm4, %v10147_v31 }
 0x2bb   : > { %3327 = vmatprep.mubr.bf16.mxu0 %v10437_v2  ;;  %v11812_v40 = vpop.permute.xlu1 %3689  ;;  %v11816_v44 = vpop.permute.xlu0 %3694 }
 0x2bd   : > { %9264 = vmatmul.mubr.msk.bf16.vlgmr.msra.gmra.mrb[32].mxu1 %vm1591_vm4, %v11540_v61  ;;  %v10161_v61 = vld [vmem:[%s13236_s4 + $0x44] ss:$16 sps:$4 sm:$0xff]  }
 0x2be   : > { %9272 = vmatpush3.bf16.msra.mxu1 %v3231_v57  ;;  %9267 = vmatprep.mubr.msk.bf16.mxu1 %vm1591_vm4, %v11568_v8  ;;  %v10179_v8 = vld [vmem:[%s13236_s4 + $0x104] ss:$16 sps:$4 sm:$0xff]   ;;  %v10198_v57 = vld [vmem:[%s13236_s4 + $0x1e0] ss:$16 sps:$4 sm:$0xff]  }
 0x2bf   : > { %9273 = vmatprep.subr.bf16.mxu1 %v3234_v26 }
 0x2c2   : > { %8578 = vmatmul.mubr.msk.bf16.gmra.mrb[24].mxu0 %vm1591_vm4, %v10148_v4  ;;  %9274 = vmatpush3.bf16.msra.mxu1 %v3234_v26 }
 0x2c3   : > { %9924 = vmatprep.subr.msk.bf16.mxu1 %vm1387_vm2, %v3237_v43  ;;  %3549 = vmatprep.mubr.bf16.mxu0 %v10437_v2 }
 0x2c5   : > { %9268 = vmatmul.mubr.msk.bf16.gmra.mrb[36].mxu1 %vm1591_vm4, %v11587_v12  ;;  %v10188_v12 = vld [vmem:[%s13236_s4 + $0x164] ss:$16 sps:$4 sm:$0xff]  }
 0x2c6   : > { %9276 = vmatpush3.bf16.msra.mxu1 %v3263_v20  ;;  %9277 = vmatprep.mubr.msk.bf16.mxu1 %vm1591_vm4, %v10145_v33 }
 0x2c7   : > { %9285 = vmatprep.subr.bf16.mxu1 %v3483_v5 }
 0x2ca   : > { %8596 = vmatmul.mubr.msk.bf16.vlgmr.msra.gmra.mrb[12].mxu0 %vm1591_vm4, %v10149_v45 }
 0x2cb   : > { %3559 = vmatprep.mubr.bf16.mxu0 %v10437_v2 }
 0x2cd   : > { %9278 = vmatmul.mubr.msk.bf16.vlgmr.msra.gmra.mrb[32].mxu1 %vm1591_vm4, %v10146_v25  ;;  %v10192_v25 = vld [vmem:[%s13236_s4 + $0x1a0] ss:$16 sps:$4 sm:$0xff]  }
 0x2ce   : > { %9286 = vmatpush3.bf16.msra.mxu1 %v3483_v5  ;;  %9281 = vmatprep.mubr.msk.bf16.mxu1 %vm1591_vm4, %v10147_v31 }
 0x2cf   : > { %9287 = vmatprep.subr.bf16.mxu1 %v3486_v18 }
 0x2d2   : > { %8597 = vmatmul.mubr.msk.bf16.gmra.mrb[16].mxu0 %vm1591_vm4, %v10150_v54  ;;  %9288 = vmatpush3.bf16.msra.mxu1 %v3486_v18 }
 0x2d3   : > { %9925 = vmatprep.subr.msk.bf16.mxu1 %vm1387_vm2, %v3489_v29  ;;  %3569 = vmatprep.mubr.bf16.mxu0 %v10437_v2 }
 0x2d5   : > { %9282 = vmatmul.mubr.msk.bf16.gmra.mrb[36].mxu1 %vm1591_vm4, %v10148_v4  ;;  %v10203_v4 = vld [vmem:[%s13236_s4 + $0x204] ss:$16 sps:$4 sm:$0xff]  }
 0x2d6   : > { %9290 = vmatpush3.bf16.msra.mxu1 %v3515_v0  ;;  %9291 = vmatprep.mubr.msk.bf16.mxu1 %vm1591_vm4, %v10149_v45 }
 0x2d7   : > { %4424 = vmatprep.subr.bf16.mxu1 %v10155_v32 }
 0x2da   : > { %8598 = vmatmul.mubr.msk.bf16.gmra.mrb[20].mxu0 %vm1591_vm4, %v10151_v28 }
 0x2db   : > { %3579 = vmatprep.mubr.bf16.mxu0 %v10437_v2 }
 0x2dd   : > { %9292 = vmatmul.mubr.msk.bf16.vlgmr.msra.gmra.mrb[32].mxu1 %vm1591_vm4, %v10150_v54 }
 0x2de   : > { %9295 = vmatprep.mubr.msk.bf16.mxu1 %vm1591_vm4, %v10151_v28  ;;  %4425 = vmatpush1.bf16.msra.mxu1 %v10153_v6 }
 0x2df   : > { %4426 = vmatprep.subr.bf16.mxu1 %v10158_v41 }
 0x2e2   : > { %8599 = vmatmul.mubr.msk.bf16.gmra.mrb[24].mxu0 %vm1591_vm4, %v10152_v52  ;;  %4427 = vmatpush1.bf16.msra.mxu1 %v10156_v58 }
 0x2e3   : > { %4428 = vmatprep.subr.bf16.mxu1 %v10161_v61  ;;  %4870 = vmatprep.mubr.bf16.mxu0 %v10437_v2  ;;  %v11814_v43 = vpop.permute.xlu1 %3761 }
 0x2e5   : > { %9296 = vmatmul.mubr.msk.bf16.gmra.mrb[36].mxu1 %vm1591_vm4, %v10152_v52 }
 0x2e6   : > { %4429 = vmatpush1.bf16.msra.mxu1 %v10159_v63  ;;  %v11820_v5 = vpop.permute.xlu0 %3699 }
 0x2e7   : > { %4430 = vmatprep.subr.bf16.mxu1 %v10164_v1  ;;  %v11818_v20 = vpop.permute.xlu1 %3766 }
 0x2ea   : > { %4431 = vmatpush1.bf16.msra.mxu1 %v10162_v49 }
 0x2eb   : > { %4432 = vmatprep.subr.bf16.mxu1 %v10167_v55  ;;  %v11822_v45 = vpop.permute.xlu1 %3704 }
 0x2ee   : > { %4433 = vmatpush1.bf16.msra.mxu1 %v10165_v16 }
 0x2ef   : > { %4434 = vmatprep.subr.bf16.mxu1 %v10170_v39  ;;  %v11825_v6 = vpop.permute.xlu0 %3771 }
 0x2f0   : > { %v11830_v63 = vpop.permute.xlu1 %3776 }
 0x2f2   : > { %4435 = vmatpush1.bf16.msra.mxu1 %v10168_v59 }
 0x2f3   : > { %4436 = vmatprep.subr.bf16.mxu1 %v10173_v7 }
 0x2f6   : > { %4437 = vmatpush1.bf16.msra.mxu1 %v10171_v53 }
 0x2f7   : > { %4438 = vmatprep.subr.bf16.mxu1 %v10176_v21 }
 0x2fa   : > { %4439 = vmatpush1.bf16.msra.mxu1 %v10174_v3  ;;  %v11836_v3 = vpop.permute.xlu0 %3709 }
 0x2fb   : > { %4440 = vmatprep.subr.bf16.mxu1 %v10179_v8 }
 0x2fe   : > { %4441 = vmatpush1.bf16.msra.mxu1 %v10177_v9 }
 0x2ff   : > { %4442 = vmatprep.subr.bf16.mxu1 %v10182_v60 }
 0x302   : > { %4443 = vmatpush1.bf16.msra.mxu1 %v10180_v11 }
 0x303   : > { %4444 = vmatprep.subr.bf16.mxu1 %v10185_v50 }
 0x306   : > { %4445 = vmatpush1.bf16.msra.mxu1 %v10183_v17 }
 0x307   : > { %4446 = vmatprep.subr.bf16.mxu1 %v10188_v12 }
 0x30a   : > { %4447 = vmatpush1.bf16.msra.mxu1 %v10186_v24 }
 0x30b   : > { %4448 = vmatprep.subr.bf16.mxu1 %v10191_v15  ;;  %v11841_v15 = vpop.permute.xlu1 %3714 }
 0x30e   : > { %4449 = vmatpush1.bf16.msra.mxu1 %v10189_v19 }
 0x30f   : > { %4450 = vmatprep.subr.bf16.mxu1 %v10194_v35 }
 0x310   : > { %v1647_v14 = vpop.f32.mrb[16].mxu1 }
 0x311   : > { %v1649_v48 = vpop.f32.mrb[17].mxu1 }
 0x312   : > { %v1651_v33 = vpop.f32.mrb[18].mxu1  ;;  %4451 = vmatpush1.bf16.msra.mxu1 %v10192_v25  ;;  %v11860_v25 = vpop.permute.xlu0 %3781 }
 0x313   : > { %v1653_v47 = vpop.f32.mrb[19].mxu1  ;;  %4452 = vmatprep.subr.bf16.mxu1 %v10197_v36 }
 0x316   : > { %4453 = vmatpush1.bf16.msra.mxu1 %v10195_v37 }
 0x317   : > { %4454 = vmatprep.subr.bf16.mxu1 %v10200_v38  ;;  %v10204_v38 = vld [vmem:[%s13236_s4 + $0x220] ss:$16 sps:$4 sm:$0xff]  }
 0x318   : > { %v1657_v30 = vpop.f32.mrb[20].mxu1 }
 0x319   : > { %v1659_v22 = vpop.f32.mrb[21].mxu1 }
 0x31a   : > { %v1661_v51 = vpop.f32.mrb[22].mxu1  ;;  %4455 = vmatpush1.bf16.msra.mxu1 %v10198_v57 }
 0x31b   : > { %v11773_v42 = vpop.f32.mrb[23].mxu1  ;;  %4497 = vmatprep.subr.bf16.mxu1 %v10203_v4 }
 0x320   : > { %v11778_v23 = vpop.f32.mrb[24].mxu1 }
 0x321   : > { %v11783_v56 = vpop.f32.mrb[25].mxu1 }
 0x322   : > { %v11785_v27 = vpop.f32.mrb[26].mxu1 }
 0x323   : > { %v11787_v13 = vpop.f32.mrb[27].mxu1 }
 0x328   : > { %v11798_v34 = vpop.f32.mrb[28].mxu1 }
 0x329   : > { %v11803_v31 = vpop.f32.mrb[29].mxu1 }
 0x32a   : > { %v11805_v62 = vpop.f32.mrb[30].mxu1 }
 0x32b   : > { %v11807_v26 = vpop.f32.mrb[31].mxu1 }
 0x39d   : > { %v3551_v10 = vpop.f32.mrb[12].mxu0 }
 0x39e   : > { %v9481_v18 = vadd.f32 %v3551_v10, %v1647_v14  ;;  %v3553_v54 = vpop.f32.mrb[13].mxu0 }
 0x39f   : > { %v9482_v46 = vadd.f32 %v3553_v54, %v1649_v48  ;;  %v3555_v29 = vpop.f32.mrb[14].mxu0  ;;  %v10209_v54 = vld [vmem:[%s13236_s4 + $0x244] ss:$16 sps:$4 sm:$0xff]  }
 0x3a0   : > { %v3727_v32 = vmul.f32 %v9481_v18, %v11812_v40  ;;  %v9483_v0 = vadd.f32 %v3555_v29, %v1651_v33  ;;  %v3557_v28 = vpop.f32.mrb[15].mxu0  ;;  %v10201_v33 = vld [vmem:[%s13236_s4 + $0x200] ss:$16 sps:$4 sm:$0xff]  }
 0x3a1   : > { %v3728_v41 = vmul.f32 %v9482_v46, %v11812_v40  ;;  %v9484_v52 = vadd.f32 %v3557_v28, %v1653_v47  ;;  %v11870_v46 = vpop.permute.xlu1 %3786 }
 0x3a2   : > { %v3799_v58 = vadd.f32 %v11814_v43, %v3727_v32  ;;  %v3730_v61 = vmul.f32 %v9483_v0, %v11816_v44 }
 0x3a3   : > { %v3800_v1 = vadd.f32 %v11814_v43, %v3728_v41  ;;  %v3731_v49 = vmul.f32 %v9484_v52, %v11816_v44 }
 0x3a4   : > { %v3802_v55 = vadd.f32 %v11818_v20, %v3730_v61  ;;  %v3823_v59 = vmax.f32 %v3799_v58, 0.0 }
 0x3a5   : > { %v3803_v16 = vadd.f32 %v11818_v20, %v3731_v49  ;;  %v3561_v39 = vpop.f32.mrb[16].mxu0  ;;  %v3824_v8 = vmax.f32 %v3800_v1, 0.0 }
 0x3a6   : > { %v3826_v7 = vmax.f32 %v3802_v55, 0.0  ;;  %v9485_v53 = vadd.f32 %v3561_v39, %v1657_v30  ;;  %v3563_v21 = vpop.f32.mrb[17].mxu0 }
 0x3a7   : > { %v3827_v9 = vmax.f32 %v3803_v16, 0.0  ;;  %v9486_v60 = vadd.f32 %v3563_v21, %v1659_v22  ;;  %v3565_v11 = vpop.f32.mrb[18].mxu0  ;;  %v10206_v22 = vld [vmem:[%s13236_s4 + $0x224] ss:$16 sps:$4 sm:$0xff]  }
 0x3a8   : > { %v11838_v50 = vpack.c.bf16 %v3826_v7, %v3823_v59  ;;  %v3733_v17 = vmul.f32 %v9485_v53, %v11820_v5  ;;  %v9487_v12 = vadd.f32 %v3565_v11, %v1661_v51  ;;  %v3567_v24 = vpop.f32.mrb[19].mxu0 }
 0x3a9   : > { %v3734_v19 = vmul.f32 %v9486_v60, %v11820_v5  ;;  %v9488_v14 = vadd.f32 %v3567_v24, %v11773_v42  ;;  %v11845_v48 = vpack.c.bf16 %v3827_v9, %v3824_v8  ;;  %v3725_v24 = vpop.permute.xlu1 %3724 }
 0x3aa   : > { %v3805_v47 = vadd.f32 %v11825_v6, %v3733_v17  ;;  %v3736_v30 = vmul.f32 %v9487_v12, %v11822_v45 }
 0x3ab   : > { %v3806_v51 = vadd.f32 %v11825_v6, %v3734_v19  ;;  %v3737_v35 = vmul.f32 %v9488_v14, %v11822_v45  ;;  %4456 = vmatprep.mubr.bf16.mxu1 %v11845_v48 }
 0x3ac   : > { %v3808_v42 = vadd.f32 %v11830_v63, %v3736_v30  ;;  %4457 = vmatmul.mubr.bf16.vlgmr.msra.gmra.mrb[40].mxu1 %v11838_v50  ;;  %v3829_v57 = vmax.f32 %v3805_v47, 0.0 }
 0x3ad   : > { %v3809_v36 = vadd.f32 %v11830_v63, %v3737_v35  ;;  %v3571_v37 = vpop.f32.mrb[20].mxu0  ;;  %4498 = vmatpush1.bf16.msra.mxu1 %v10201_v33  ;;  %v3830_v29 = vmax.f32 %v3806_v51, 0.0  ;;  %v10215_v35 = vld [vmem:[%s13236_s4 + $0x284] ss:$16 sps:$4 sm:$0xff]  }
 0x3ae   : > { %v3832_v4 = vmax.f32 %v3808_v42, 0.0  ;;  %v9489_v10 = vadd.f32 %v3571_v37, %v11778_v23  ;;  %v3573_v18 = vpop.f32.mrb[21].mxu0  ;;  %4499 = vmatprep.subr.bf16.mxu1 %v10206_v22 }
 0x3af   : > { %v3833_v32 = vmax.f32 %v3809_v36, 0.0  ;;  %v9490_v0 = vadd.f32 %v3573_v18, %v11783_v56  ;;  %v3575_v28 = vpop.f32.mrb[22].mxu0  ;;  %v10207_v56 = vld [vmem:[%s13236_s4 + $0x240] ss:$16 sps:$4 sm:$0xff]  }
 0x3b0   : > { %v3739_v41 = vmul.f32 %v9489_v10, %v11836_v3  ;;  %v9491_v52 = vadd.f32 %v3575_v28, %v11785_v27  ;;  %v3577_v58 = vpop.f32.mrb[23].mxu0  ;;  %v9293_v61 = vpop.f32.mrb[32].mxu1  ;;  %v11875_v23 = vpack.c.bf16 %v3832_v4, %v3829_v57 }
 0x3b1   : > { %v3740_v1 = vmul.f32 %v9490_v0, %v11836_v3  ;;  %v9492_v49 = vadd.f32 %v3577_v58, %v11787_v13  ;;  %v3735_v55 = vmul.f32 %v9293_v61, %v11820_v5  ;;  %v3624_v16 = vpop.f32.mrb[33].mxu1  ;;  %v11880_v39 = vpack.c.bf16 %v3833_v32, %v3830_v29  ;;  %4500 = vmatpush1.bf16.msra.mxu1 %v10204_v38  ;;  %v10212_v13 = vld [vmem:[%s13236_s4 + $0x264] ss:$16 sps:$4 sm:$0xff]   ;;  %v3720_v5 = vpop.permute.xlu0 %3719 }
 0x3b2   : > { %v3811_v27 = vadd.f32 %v11860_v25, %v3739_v41  ;;  %v3742_v59 = vmul.f32 %v9491_v52, %v11841_v15  ;;  %v3729_v7 = vmul.f32 %v11812_v40, %v3624_v16  ;;  %v9294_v53 = vpop.f32.mrb[34].mxu1  ;;  %4501 = vmatprep.subr.bf16.mxu1 %v10209_v54 }
 0x3b3   : > { %v3812_v21 = vadd.f32 %v11860_v25, %v3740_v1  ;;  %v3743_v8 = vmul.f32 %v9492_v49, %v11841_v15  ;;  %v3807_v9 = vadd.f32 %v11825_v6, %v3735_v55  ;;  %v3738_v60 = vmul.f32 %v9294_v53, %v11822_v45  ;;  %4466 = vmatprep.mubr.bf16.mxu1 %v11880_v39  ;;  %v3627_v11 = vpop.f32.mrb[35].mxu1  ;;  %v10210_v45 = vld [vmem:[%s13236_s4 + $0x260] ss:$16 sps:$4 sm:$0xff]   ;;  %v10218_v49 = vld [vmem:[%s13236_s4 + $0x2a4] ss:$16 sps:$4 sm:$0xff]   ;;  %v3797_v55 = vpop.permute.xlu1 %3796 }
 0x3b4   : > { %v3814_v40 = vadd.f32 %v11870_v46, %v3742_v59  ;;  %v3801_v17 = vadd.f32 %v11814_v43, %v3729_v7  ;;  %v3732_v12 = vmul.f32 %v11816_v44, %v3627_v11  ;;  %4467 = vmatmul.mubr.bf16.gmra.mrb[44].mxu1 %v11875_v23  ;;  %v3835_v19 = vmax.f32 %v3811_v27, 0.0 }
 0x3b5   : > { %v3836_v14 = vmax.f32 %v3812_v21, 0.0  ;;  %v3815_v33 = vadd.f32 %v11870_v46, %v3743_v8  ;;  %v3810_v6 = vadd.f32 %v11830_v63, %v3738_v60  ;;  %v3581_v47 = vpop.f32.mrb[24].mxu0  ;;  %4502 = vmatpush1.bf16.msra.mxu1 %v10207_v56  ;;  %v3831_v22 = vmax.f32 %v3807_v9, 0.0  ;;  %v10216_v21 = vld [vmem:[%s13236_s4 + $0x2a0] ss:$16 sps:$4 sm:$0xff]  }
 0x3b6   : > { %v3838_v30 = vmax.f32 %v3814_v40, 0.0  ;;  %v3804_v43 = vadd.f32 %v11818_v20, %v3732_v12  ;;  %v9493_v44 = vadd.f32 %v3581_v47, %v11798_v34  ;;  %v3583_v51 = vpop.f32.mrb[25].mxu0  ;;  %4503 = vmatprep.subr.bf16.mxu1 %v10212_v13  ;;  %v3825_v63 = vmax.f32 %v3801_v17, 0.0  ;;  %v3792_v34 = vpop.permute.xlu0 %3791 }
 0x3b7   : > { %v3839_v42 = vmax.f32 %v3815_v33, 0.0  ;;  %v3834_v36 = vmax.f32 %v3810_v6, 0.0  ;;  %v9494_v37 = vadd.f32 %v3583_v51, %v11803_v31  ;;  %v3585_v38 = vpop.f32.mrb[26].mxu0  ;;  %v10213_v31 = vld [vmem:[%s13236_s4 + $0x280] ss:$16 sps:$4 sm:$0xff]  }
 0x3b8   : > { %v3828_v57 = vmax.f32 %v3804_v43, 0.0  ;;  %v3745_v4 = vmul.f32 %v9493_v44, %v3720_v5  ;;  %v9495_v10 = vadd.f32 %v3585_v38, %v11805_v62  ;;  %v3587_v18 = vpop.f32.mrb[27].mxu0  ;;  %v9297_v20 = vpop.f32.mrb[36].mxu1  ;;  %v11912_v54 = vpack.c.bf16 %v3838_v30, %v3835_v19  ;;  %v10221_v43 = vld [vmem:[%s13236_s4 + $0x8] ss:$16 sps:$4 sm:$0xff]  }
 0x3b9   : > { %v11914_v29 = vpack.c.bf16 %v3834_v36, %v3831_v22  ;;  %v3746_v32 = vmul.f32 %v9494_v37, %v3720_v5  ;;  %v9496_v0 = vadd.f32 %v3587_v18, %v11807_v26  ;;  %v3747_v28 = vmul.f32 %v9297_v20, %v3720_v5  ;;  %v3640_v41 = vpop.f32.mrb[37].mxu1  ;;  %4504 = vmatpush1.bf16.msra.mxu1 %v10210_v45  ;;  %v3947_v26 = vld [vmem:[%s13236_s4 + $0x2c0] sm:$0xff]  ;;  %v10223_v22 = vld [vmem:[%s13236_s4 + $0xc] ss:$16 sps:$4 sm:$0xff]   ;;  %v10224_v51 = vld [vmem:[%s13236_s4 + $0x28] ss:$16 sps:$4 sm:$0xff]  }
 0x3ba   : > { %v11920_v52 = vpack.c.bf16 %v3828_v57, %v3825_v63  ;;  %v3817_v62 = vadd.f32 %v3792_v34, %v3745_v4  ;;  %v3748_v58 = vmul.f32 %v9495_v10, %v3725_v24  ;;  %v3741_v61 = vmul.f32 %v11836_v3, %v3640_v41  ;;  %v9298_v1 = vpop.f32.mrb[38].mxu1  ;;  %4505 = vmatprep.subr.bf16.mxu1 %v10215_v35  ;;  %v10226_v44 = vld [vmem:[%s13236_s4 + $0x2c] ss:$16 sps:$4 sm:$0xff]   ;;  %v10230_v36 = vld [vmem:[%s13236_s4 + $0x68] ss:$16 sps:$4 sm:$0xff]  }
 0x3bb   : > { %v3818_v16 = vadd.f32 %v3792_v34, %v3746_v32  ;;  %v3749_v56 = vmul.f32 %v9496_v0, %v3725_v24  ;;  %v3819_v27 = vadd.f32 %v3792_v34, %v3747_v28  ;;  %v3750_v59 = vmul.f32 %v9298_v1, %v3725_v24  ;;  %v3643_v7 = vpop.f32.mrb[39].mxu1  ;;  %v10229_v35 = vld [vmem:[%s13236_s4 + $0x4c] ss:$16 sps:$4 sm:$0xff]   ;;  %v10233_v38 = vld [vmem:[%s13236_s4 + $0x88] ss:$16 sps:$4 sm:$0xff]  }
 0x3bc   : > { %v3820_v53 = vadd.f32 %v3797_v55, %v3748_v58  ;;  %v11929_v13 = vpack.c.bf16 %v3839_v42, %v3836_v14  ;;  %v8693_v8 = vcombine.high %v3947_v26, %v3947_v26  ;;  %v8692_v9 = vcombine.low %v3947_v26, %v3947_v26  ;;  %v10227_v42 = vld [vmem:[%s13236_s4 + $0x48] ss:$16 sps:$4 sm:$0xff]   ;;  %v10232_v63 = vld [vmem:[%s13236_s4 + $0x6c] ss:$16 sps:$4 sm:$0xff]  }
 0x3bd   : > { %v3821_v3 = vadd.f32 %v3797_v55, %v3749_v56  ;;  %v3822_v5 = vadd.f32 %v3797_v55, %v3750_v59  ;;  %4506 = vmatpush1.bf16.msra.mxu1 %v10213_v31  ;;  %v3841_v60 = vmax.f32 %v3817_v62, 0.0  ;;  %v3813_v40 = vadd.f32 %v11860_v25, %v3741_v61  ;;  %v10235_v37 = vld [vmem:[%s13236_s4 + $0x8c] ss:$16 sps:$4 sm:$0xff]   ;;  %v10236_v4 = vld [vmem:[%s13236_s4 + $0xa8] ss:$16 sps:$4 sm:$0xff]  }
 0x3be   : > { %v3844_v11 = vmax.f32 %v3820_v53, 0.0  ;;  %4476 = vmatprep.mubr.bf16.mxu1 %v11929_v13  ;;  %v3744_v17 = vmul.f32 %v11841_v15, %v3643_v7  ;;  %4507 = vmatprep.subr.bf16.mxu1 %v10218_v49  ;;  %v3842_v12 = vmax.f32 %v3818_v16, 0.0  ;;  %v3843_v19 = vmax.f32 %v3819_v27, 0.0  ;;  %v10238_v57 = vld [vmem:[%s13236_s4 + $0xac] ss:$16 sps:$4 sm:$0xff]  }
 0x3bf   : > { %v3845_v24 = vmax.f32 %v3821_v3, 0.0  ;;  %v3846_v14 = vmax.f32 %v3822_v5, 0.0  ;;  %4477 = vmatmul.mubr.bf16.gmra.mrb[48].mxu1 %v11912_v54  ;;  %v3837_v25 = vmax.f32 %v3813_v40, 0.0  ;;  %v4413_v15 = vsel %vm1387_vm2, %v8692_v9, 0  ;;  %v10241_v10 = vld [vmem:[%s13236_s4 + $0xcc] ss:$16 sps:$4 sm:$0xff]  }
 0x3c0   : > { %v3816_v33 = vadd.f32 %v11870_v46, %v3744_v17  ;;  %v11939_v6 = vpack.c.bf16 %v3844_v11, %v3841_v60  ;;  %v10239_v18 = vld [vmem:[%s13236_s4 + $0xc8] ss:$16 sps:$4 sm:$0xff]   ;;  %v10244_v20 = vld [vmem:[%s13236_s4 + $0xec] ss:$16 sps:$4 sm:$0xff]  }
 0x3c1   : > { %v11941_v47 = vpack.c.bf16 %v3846_v14, %v3843_v19  ;;  %v11943_v45 = vpack.c.bf16 %v3845_v24, %v3842_v12  ;;  %4508 = vmatpush1.bf16.msra.mxu1 %v10216_v21  ;;  %v10242_v34 = vld [vmem:[%s13236_s4 + $0xe8] ss:$16 sps:$4 sm:$0xff]   ;;  %v10247_v32 = vld [vmem:[%s13236_s4 + $0x10c] ss:$16 sps:$4 sm:$0xff]  }
 0x3c2   : > { %v3840_v30 = vmax.f32 %v3816_v33, 0.0  ;;  %8696 = vmatprep.subr.msk.bf16.mxu1 %vm1387_vm2, %v8693_v8  ;;  %v10245_v0 = vld [vmem:[%s13236_s4 + $0x108] ss:$16 sps:$4 sm:$0xff]   ;;  %v10250_v28 = vld [vmem:[%s13236_s4 + $0x12c] ss:$16 sps:$4 sm:$0xff]  }
 0x3c3   : > { %4486 = vmatprep.mubr.bf16.mxu1 %v11943_v45  ;;  %v10253_v41 = vld [vmem:[%s13236_s4 + $0x14c] ss:$16 sps:$4 sm:$0xff]   ;;  %v10251_v31 = vld [vmem:[%s13236_s4 + $0x148] ss:$16 sps:$4 sm:$0xff]  }
 0x3c4   : > { %v11951_v46 = vpack.c.bf16 %v3840_v30, %v3837_v25  ;;  %v10256_v62 = vld [vmem:[%s13236_s4 + $0x16c] ss:$16 sps:$4 sm:$0xff]   ;;  %v10254_v58 = vld [vmem:[%s13236_s4 + $0x168] ss:$16 sps:$4 sm:$0xff]  }
 0x3c5   : > { %4510 = vmatpush1.bf16.msra.mxu1 %v4413_v15  ;;  %v10259_v61 = vld [vmem:[%s13236_s4 + $0x18c] ss:$16 sps:$4 sm:$0xff]   ;;  %v10257_v1 = vld [vmem:[%s13236_s4 + $0x188] ss:$16 sps:$4 sm:$0xff]  }
 0x3c6   : > { %4570 = vmatprep.subr.bf16.mxu1 %v10223_v22  ;;  %v10262_v49 = vld [vmem:[%s13236_s4 + $0x1ac] ss:$16 sps:$4 sm:$0xff]   ;;  %v10260_v26 = vld [vmem:[%s13236_s4 + $0x1a8] ss:$16 sps:$4 sm:$0xff]  }
 0x3c7   : > { %4487 = vmatmul.mubr.bf16.gmra.mrb[52].mxu1 %v11939_v6  ;;  %v10265_v55 = vld [vmem:[%s13236_s4 + $0x1cc] ss:$16 sps:$4 sm:$0xff]   ;;  %v10263_v16 = vld [vmem:[%s13236_s4 + $0x1c8] ss:$16 sps:$4 sm:$0xff]  }
 0x3c8   : > { %4529 = vmatprep.mubr.bf16.mxu1 %v10437_v2  ;;  %v10268_v56 = vld [vmem:[%s13236_s4 + $0x1ec] ss:$16 sps:$4 sm:$0xff]   ;;  %v10266_v27 = vld [vmem:[%s13236_s4 + $0x1e8] ss:$16 sps:$4 sm:$0xff]  }
 0x3c9   : > { %v10271_v59 = vld [vmem:[%s13236_s4 + $0x20c] ss:$16 sps:$4 sm:$0xff]   ;;  %v10269_v7 = vld [vmem:[%s13236_s4 + $0x208] ss:$16 sps:$4 sm:$0xff]  }
 0x3ca   : > { %v10274_v53 = vld [vmem:[%s13236_s4 + $0x22c] ss:$16 sps:$4 sm:$0xff]   ;;  %v10272_v3 = vld [vmem:[%s13236_s4 + $0x228] ss:$16 sps:$4 sm:$0xff]  }
 0x3cb   : > { %v10277_v5 = vld [vmem:[%s13236_s4 + $0x24c] ss:$16 sps:$4 sm:$0xff]   ;;  %v10275_v21 = vld [vmem:[%s13236_s4 + $0x248] ss:$16 sps:$4 sm:$0xff]  }
 0x3cc   : > { %v10283_v8 = vld [vmem:[%s13236_s4 + $0x28c] ss:$16 sps:$4 sm:$0xff]   ;;  %v10281_v9 = vld [vmem:[%s13236_s4 + $0x288] ss:$16 sps:$4 sm:$0xff]  }
 0x3cd   : > { %v10284_v60 = vld [vmem:[%s13236_s4 + $0x2a8] ss:$16 sps:$4 sm:$0xff]  }
 0x3cf   : > { %8697 = vmatmul.mubr.msk.bf16.vlgmr.msra.gmra.mrb[40].mxu1 %vm2220_vm6, %v11920_v52 }
 0x3d0   : > { %4571 = vmatpush1.bf16.msra.mxu1 %v10221_v43  ;;  %4539 = vmatprep.mubr.bf16.mxu1 %v10437_v2 }
 0x3d1   : > { %4572 = vmatprep.subr.bf16.mxu1 %v10226_v44 }
 0x3d4   : > { %4573 = vmatpush1.bf16.msra.mxu1 %v10224_v51 }
 0x3d5   : > { %4574 = vmatprep.subr.bf16.mxu1 %v10229_v35 }
 0x3d7   : > { %8698 = vmatmul.mubr.msk.bf16.gmra.mrb[44].mxu1 %vm2220_vm6, %v11914_v29 }
 0x3d8   : > { %4575 = vmatpush1.bf16.msra.mxu1 %v10227_v42  ;;  %4549 = vmatprep.mubr.bf16.mxu1 %v10437_v2 }
 0x3d9   : > { %4576 = vmatprep.subr.bf16.mxu1 %v10232_v63 }
 0x3dc   : > { %4577 = vmatpush1.bf16.msra.mxu1 %v10230_v36 }
 0x3dd   : > { %4578 = vmatprep.subr.bf16.mxu1 %v10235_v37 }
 0x3df   : > { %8699 = vmatmul.mubr.msk.bf16.gmra.mrb[48].mxu1 %vm2220_vm6, %v11951_v46 }
 0x3e0   : > { %4579 = vmatpush1.bf16.msra.mxu1 %v10233_v38  ;;  %4559 = vmatprep.mubr.bf16.mxu1 %v10437_v2 }
 0x3e1   : > { %4580 = vmatprep.subr.bf16.mxu1 %v10238_v57 }
 0x3e4   : > { %4581 = vmatpush1.bf16.msra.mxu1 %v10236_v4 }
 0x3e5   : > { %4582 = vmatprep.subr.bf16.mxu1 %v10241_v10 }
 0x3e7   : > { %8700 = vmatmul.mubr.msk.bf16.gmra.mrb[52].mxu1 %vm2220_vm6, %v11941_v47 }
 0x3e8   : > { %4583 = vmatpush1.bf16.msra.mxu1 %v10239_v18  ;;  %4602 = vmatprep.mubr.bf16.mxu1 %v11845_v48  ;;  %v10248_v48 = vld [vmem:[%s13236_s4 + $0x128] ss:$16 sps:$4 sm:$0xff]  }
 0x3e9   : > { %4584 = vmatprep.subr.bf16.mxu1 %v10244_v20 }
 0x3ec   : > { %4585 = vmatpush1.bf16.msra.mxu1 %v10242_v34 }
 0x3ed   : > { %4586 = vmatprep.subr.bf16.mxu1 %v10247_v32 }
 0x3f0   : > { %4587 = vmatpush1.bf16.msra.mxu1 %v10245_v0 }
 0x3f1   : > { %4588 = vmatprep.subr.bf16.mxu1 %v10250_v28 }
 0x3f4   : > { %4589 = vmatpush1.bf16.msra.mxu1 %v10248_v48 }
 0x3f5   : > { %4590 = vmatprep.subr.bf16.mxu1 %v10253_v41 }
 0x3f8   : > { %4591 = vmatpush1.bf16.msra.mxu1 %v10251_v31 }
 0x3f9   : > { %4592 = vmatprep.subr.bf16.mxu1 %v10256_v62 }
 0x3fc   : > { %4593 = vmatpush1.bf16.msra.mxu1 %v10254_v58 }
 0x3fd   : > { %4594 = vmatprep.subr.bf16.mxu1 %v10259_v61 }
 0x400   : > { %4595 = vmatpush1.bf16.msra.mxu1 %v10257_v1 }
 0x401   : > { %4596 = vmatprep.subr.bf16.mxu1 %v10262_v49 }
 0x404   : > { %4597 = vmatpush1.bf16.msra.mxu1 %v10260_v26 }
 0x405   : > { %4598 = vmatprep.subr.bf16.mxu1 %v10265_v55 }
 0x408   : > { %4599 = vmatpush1.bf16.msra.mxu1 %v10263_v16 }
 0x409   : > { %4600 = vmatprep.subr.bf16.mxu1 %v10268_v56 }
 0x40c   : > { %4601 = vmatpush1.bf16.msra.mxu1 %v10266_v27 }
 0x40d   : > { %4643 = vmatprep.subr.bf16.mxu1 %v10271_v59 }
 0x40f   : > { %4603 = vmatmul.mubr.bf16.vlgmr.msra.gmra.mrb[56].mxu1 %v11838_v50  ;;  %v10280_v50 = vld [vmem:[%s13236_s4 + $0x26c] ss:$16 sps:$4 sm:$0xff]  }
 0x410   : > { %4612 = vmatprep.mubr.bf16.mxu1 %v11880_v39  ;;  %4644 = vmatpush1.bf16.msra.mxu1 %v10269_v7  ;;  %v10278_v39 = vld [vmem:[%s13236_s4 + $0x268] ss:$16 sps:$4 sm:$0xff]  }
 0x411   : > { %4645 = vmatprep.subr.bf16.mxu1 %v10274_v53 }
 0x414   : > { %4646 = vmatpush1.bf16.msra.mxu1 %v10272_v3 }
 0x415   : > { %4647 = vmatprep.subr.bf16.mxu1 %v10277_v5 }
 0x417   : > { %4613 = vmatmul.mubr.bf16.gmra.mrb[60].mxu1 %v11875_v23  ;;  %v10286_v23 = vld [vmem:[%s13236_s4 + $0x2ac] ss:$16 sps:$4 sm:$0xff]  }
 0x418   : > { %4622 = vmatprep.mubr.bf16.mxu1 %v11929_v13  ;;  %4648 = vmatpush1.bf16.msra.mxu1 %v10275_v21  ;;  %v3948_v13 = vld [vmem:[%s13236_s4 + $0x2c8] sm:$0xff] }
 0x419   : > { %4649 = vmatprep.subr.bf16.mxu1 %v10280_v50  ;;  %v8695_v11 = vcombine.high %v3948_v13, %v3948_v13  ;;  %v8694_v40 = vcombine.low %v3948_v13, %v3948_v13 }
 0x41b   : > { %v4419_v17 = vsel %vm1387_vm2, %v8694_v40, 0 }
 0x41c   : > { %4650 = vmatpush1.bf16.msra.mxu1 %v10278_v39 }
 0x41d   : > { %4651 = vmatprep.subr.bf16.mxu1 %v10283_v8 }
 0x41f   : > { %4623 = vmatmul.mubr.bf16.gmra.mrb[64].mxu1 %v11912_v54 }
 0x420   : > { %4632 = vmatprep.mubr.bf16.mxu1 %v11943_v45  ;;  %4652 = vmatpush1.bf16.msra.mxu1 %v10281_v9 }
 0x421   : > { %4653 = vmatprep.subr.bf16.mxu1 %v10286_v23 }
 0x424   : > { %4654 = vmatpush1.bf16.msra.mxu1 %v10284_v60 }
 0x425   : > { %8701 = vmatprep.subr.msk.bf16.mxu1 %vm1387_vm2, %v8695_v11 }
 0x427   : > { %4633 = vmatmul.mubr.bf16.gmra.mrb[68].mxu1 %v11939_v6 }
 0x428   : > { %4656 = vmatpush1.bf16.msra.mxu1 %v4419_v17  ;;  %4675 = vmatprep.mubr.bf16.mxu1 %v10437_v2 }
 0x42f   : > { %8702 = vmatmul.mubr.msk.bf16.vlgmr.msra.gmra.mrb[56].mxu1 %vm2220_vm6, %v11920_v52 }
 0x430   : > { %4685 = vmatprep.mubr.bf16.mxu1 %v10437_v2 }
 0x437   : > { %8703 = vmatmul.mubr.msk.bf16.gmra.mrb[60].mxu1 %vm2220_vm6, %v11914_v29 }
 0x438   : > { %4695 = vmatprep.mubr.bf16.mxu1 %v10437_v2 }
 0x43f   : > { %8704 = vmatmul.mubr.msk.bf16.gmra.mrb[64].mxu1 %vm2220_vm6, %v11951_v46 }
 0x440   : > { %4705 = vmatprep.mubr.bf16.mxu1 %v10437_v2 }
 0x447   : > { %8705 = vmatmul.mubr.msk.bf16.gmra.mrb[68].mxu1 %vm2220_vm6, %v11941_v47 }
 0x4a2   : > { %v4531_v54 = vpop.f32.mrb[40].mxu1 }
 0x4a3   : > { %v4533_v12 = vpop.f32.mrb[41].mxu1 }
 0x4a4   : > { %v4535_v24 = vpop.f32.mrb[42].mxu1 }
 0x4a5   : > { %v12120_v19 = vpack.c.bf16 %v4535_v24, %v4531_v54  ;;  %v4537_v52 = vpop.f32.mrb[43].mxu1 }
 0x4a6   : > { %v12122_v14 = vpack.c.bf16 %v4537_v52, %v4533_v12 }
 0x4a7   : > { %4781 = vrot.lane.b32.xlu0 %v12120_v19, %s10441_s29 }
 0x4aa   : > { %v4541_v29 = vpop.f32.mrb[44].mxu1 }
 0x4ab   : > { %4783 = vrot.lane.b32.xlu0 %v12122_v14, %s10441_s29  ;;  %v4543_v33 = vpop.f32.mrb[45].mxu1 }
 0x4ac   : > { %v4545_v6 = vpop.f32.mrb[46].mxu1 }
 0x4ad   : > { %v12128_v45 = vpack.c.bf16 %v4545_v6, %v4541_v29  ;;  %v4547_v47 = vpop.f32.mrb[47].mxu1  ;;  %v10290_v6 = vld [vmem:[%s13241_s9 + $0x28] sm:$0xff]  }
 0x4ae   : > { %v12130_v25 = vpack.c.bf16 %v4547_v47, %v4543_v33  ;;  %v10289_v33 = vld [vmem:[%s13241_s9 + $0x20] sm:$0xff]   ;;  %v10291_v47 = vld [vmem:[%s13241_s9 + $0x30] sm:$0xff]  }
 0x4b0   : > { %4789 = vrot.lane.b32.xlu1 %v12130_v25, %s10441_s29 }
 0x4b2   : > { %v4551_v30 = vpop.f32.mrb[48].mxu1 }
 0x4b3   : > { %v4553_v15 = vpop.f32.mrb[49].mxu1 }
 0x4b4   : > { %v4555_v22 = vpop.f32.mrb[50].mxu1 }
 0x4b5   : > { %v12134_v46 = vpack.c.bf16 %v4555_v22, %v4551_v30  ;;  %v4557_v43 = vpop.f32.mrb[51].mxu1  ;;  %v10292_v30 = vld [vmem:[%s13241_s9 + $0x38] sm:$0xff]   ;;  %v10294_v22 = vld [vmem:[%s13241_s9 + $0x8] sm:$0xff]  }
 0x4b6   : > { %v12136_v44 = vpack.c.bf16 %v4557_v43, %v4553_v15  ;;  %v10293_v15 = vld [vmem:[%s13241_s9] sm:$0xff]  }
 0x4b8   : > { %4795 = vrot.lane.b32.xlu0 %v12136_v44, %s10441_s29 }
 0x4ba   : > { %v4561_v51 = vpop.f32.mrb[52].mxu1 }
 0x4bb   : > { %v4563_v35 = vpop.f32.mrb[53].mxu1 }
 0x4bc   : > { %v4565_v42 = vpop.f32.mrb[54].mxu1 }
 0x4bd   : > { %v12140_v63 = vpack.c.bf16 %v4565_v42, %v4561_v51  ;;  %v4567_v36 = vpop.f32.mrb[55].mxu1 }
 0x4be   : > { %v12142_v37 = vpack.c.bf16 %v4567_v36, %v4563_v35  ;;  %v10295_v35 = vld [vmem:[%s13241_s9 + $0x10] sm:$0xff]  }
 0x502   : > { %v4677_v38 = vpop.f32.mrb[56].mxu1 }
 0x503   : > { %v4679_v57 = vpop.f32.mrb[57].mxu1 }
 0x504   : > { %v4681_v4 = vpop.f32.mrb[58].mxu1 }
 0x505   : > { %v12144_v10 = vpack.c.bf16 %v4681_v4, %v4677_v38  ;;  %v4683_v18 = vpop.f32.mrb[59].mxu1 }
 0x506   : > { %v12146_v20 = vpack.c.bf16 %v4683_v18, %v4679_v57  ;;  %v10296_v57 = vld [vmem:[%s13241_s9 + $0x18] sm:$0xff]  }
 0x507   : > { %4785 = vrot.lane.b32.xlu1 %v12144_v10, %s10441_s29 }
 0x50a   : > { %v4687_v34 = vpop.f32.mrb[60].mxu1 }
 0x50b   : > { %4787 = vrot.lane.b32.xlu1 %v12128_v45, %s10441_s29  ;;  %v4689_v32 = vpop.f32.mrb[61].mxu1 }
 0x50c   : > { %v4691_v0 = vpop.f32.mrb[62].mxu1 }
 0x50d   : > { %v12152_v28 = vpack.c.bf16 %v4691_v0, %v4687_v34  ;;  %v4693_v48 = vpop.f32.mrb[63].mxu1  ;;  %v6939_v0 = vld [vmem:[%s13242_s10] sm:$0xff] }
 0x50e   : > { %v12154_v41 = vpack.c.bf16 %v4693_v48, %v4689_v32 }
 0x50f   : > { %4791 = vrot.lane.b32.xlu0 %v12152_v28, %s10441_s29 }
 0x512   : > { %v4697_v31 = vpop.f32.mrb[64].mxu1 }
 0x513   : > { %4793 = vrot.lane.b32.xlu0 %v12134_v46, %s10441_s29  ;;  %v4699_v62 = vpop.f32.mrb[65].mxu1 }
 0x514   : > { %v4701_v58 = vpop.f32.mrb[66].mxu1 }
 0x515   : > { %v12160_v61 = vpack.c.bf16 %v4701_v58, %v4697_v31  ;;  %v4703_v1 = vpop.f32.mrb[67].mxu1  ;;  %v7011_v31 = vld [vmem:[%s13243_s11] sm:$0xff]  ;;  %v7012_v58 = vld [vmem:[%s13243_s11 + $0x8] sm:$0xff] }
 0x516   : > { %v12162_v49 = vpack.c.bf16 %v4703_v1, %v4699_v62  ;;  %v6941_v1 = vld [vmem:[%s13242_s10 + $0x10] sm:$0xff] }
 0x517   : > { %4797 = vrot.lane.b32.xlu1 %v12160_v61, %s10441_s29 }
 0x519   : > { %v4782_v7 = vpop.permute.xlu0 %4781 }
 0x51a   : > { %v4707_v26 = vpop.f32.mrb[68].mxu1 }
 0x51b   : > { %4801 = vrot.lane.b32.xlu1 %v12142_v37, %s10441_s29  ;;  %v4709_v55 = vpop.f32.mrb[69].mxu1 }
 0x51c   : > { %v4711_v16 = vpop.f32.mrb[70].mxu1 }
 0x51d   : > { %v12168_v56 = vpack.c.bf16 %v4711_v16, %v4707_v26  ;;  %v4713_v27 = vpop.f32.mrb[71].mxu1  ;;  %v4784_v3 = vpop.permute.xlu0 %4783 }
 0x51e   : > { %v12170_v59 = vpack.c.bf16 %v4713_v27, %v4709_v55  ;;  %v4805_v50 = vsel %vm1578_vm8, %v4782_v7, %v4784_v3  ;;  %v10298_v55 = vld [vmem:[%s13241_s9 + $0x48] sm:$0xff]   ;;  %v7014_v27 = vld [vmem:[%s13243_s11 + $0x18] sm:$0xff] }
 0x51f   : > { %4799 = vrot.lane.b32.xlu1 %v12140_v63, %s10441_s29  ;;  %4803 = vrot.lane.b32.xlu0 %v12168_v56, %s10441_s29  ;;  %s13261_s29 = smov 80  }
 0x522   : > { %v4790_v53 = vpop.permute.xlu1 %4789 }
 0x523   : > { %5179 = vrot.lane.b32.xlu1 %v12144_v10, %s10438_s25  ;;  %5177 = vrot.lane.b32.xlu0 %v12122_v14, %s10438_s25 }
 0x527   : > { %5183 = vrot.lane.b32.xlu1 %v12130_v25, %s10438_s25  ;;  %5175 = vrot.lane.b32.xlu0 %v12120_v19, %s10438_s25 }
 0x52a   : > { %v4796_v39 = vpop.permute.xlu0 %4795 }
 0x52b   : > { %5181 = vrot.lane.b32.xlu1 %v12128_v45, %s10438_s25  ;;  %5185 = vrot.lane.b32.xlu0 %v12152_v28, %s10438_s25 }
 0x52f   : > { %5191 = vrot.lane.b32.xlu1 %v12160_v61, %s10438_s25  ;;  %5189 = vrot.lane.b32.xlu0 %v12136_v44, %s10438_s25 }
 0x533   : > { %5195 = vrot.lane.b32.xlu1 %v12142_v37, %s10438_s25  ;;  %5187 = vrot.lane.b32.xlu0 %v12134_v46, %s10438_s25 }
 0x537   : > { %5193 = vrot.lane.b32.xlu1 %v12140_v63, %s10438_s25  ;;  %5197 = vrot.lane.b32.xlu0 %v12168_v56, %s10438_s25  ;;  %s13259_s25 = smov 103  }
 0x53b   : > { %5426 = vrot.lane.b32.xlu1 %v12144_v10, %s10439_s17  ;;  %5424 = vrot.lane.b32.xlu0 %v12122_v14, %s10439_s17 }
 0x53f   : > { %5430 = vrot.lane.b32.xlu1 %v12130_v25, %s10439_s17  ;;  %5422 = vrot.lane.b32.xlu0 %v12120_v19, %s10439_s17 }
 0x543   : > { %5428 = vrot.lane.b32.xlu1 %v12128_v45, %s10439_s17  ;;  %5432 = vrot.lane.b32.xlu0 %v12152_v28, %s10439_s17 }
 0x547   : > { %5438 = vrot.lane.b32.xlu1 %v12160_v61, %s10439_s17  ;;  %5436 = vrot.lane.b32.xlu0 %v12136_v44, %s10439_s17 }
 0x54b   : > { %5442 = vrot.lane.b32.xlu1 %v12142_v37, %s10439_s17  ;;  %5434 = vrot.lane.b32.xlu0 %v12134_v46, %s10439_s17 }
 0x54f   : > { %5440 = vrot.lane.b32.xlu1 %v12140_v63, %s10439_s17  ;;  %5444 = vrot.lane.b32.xlu0 %v12168_v56, %s10439_s17  ;;  %s13260_s17 = smov 102  }
 0x553   : > { %5677 = vrot.lane.b32.xlu1 %v12144_v10, %s13259_s25  ;;  %5675 = vrot.lane.b32.xlu0 %v12122_v14, %s13259_s25 }
 0x557   : > { %5683 = vrot.lane.b32.xlu1 %v12130_v25, %s13259_s25  ;;  %5673 = vrot.lane.b32.xlu0 %v12120_v19, %s13259_s25 }
 0x55b   : > { %5681 = vrot.lane.b32.xlu1 %v12128_v45, %s13259_s25  ;;  %5685 = vrot.lane.b32.xlu0 %v12152_v28, %s13259_s25 }
 0x55f   : > { %5693 = vrot.lane.b32.xlu1 %v12160_v61, %s13259_s25  ;;  %5691 = vrot.lane.b32.xlu0 %v12136_v44, %s13259_s25 }
 0x563   : > { %5699 = vrot.lane.b32.xlu1 %v12142_v37, %s13259_s25  ;;  %5689 = vrot.lane.b32.xlu0 %v12134_v46, %s13259_s25 }
 0x567   : > { %5697 = vrot.lane.b32.xlu1 %v12140_v63, %s13259_s25  ;;  %5701 = vrot.lane.b32.xlu0 %v12168_v56, %s13259_s25 }
 0x56b   : > { %5687 = vrot.lane.b32.xlu1 %v12154_v41, %s13259_s25  ;;  %5679 = vrot.lane.b32.xlu0 %v12146_v20, %s13259_s25 }
 0x56f   : > { %5936 = vrot.lane.b32.xlu1 %v12144_v10, %s13260_s17  ;;  %5695 = vrot.lane.b32.xlu0 %v12162_v49, %s13259_s25 }
 0x573   : > { %5934 = vrot.lane.b32.xlu0 %v12122_v14, %s13260_s17  ;;  %5703 = vrot.lane.b32.xlu1 %v12170_v59, %s13259_s25 }
 0x577   : > { %5932 = vrot.lane.b32.xlu0 %v12120_v19, %s13260_s17  ;;  %5942 = vrot.lane.b32.xlu1 %v12130_v25, %s13260_s17 }
 0x579   : > { %v4786_v5 = vpop.permute.xlu1 %4785 }
 0x57a   : > { %v4806_v21 = vsel %vm1578_vm8, %v4784_v3, %v4786_v5 }
 0x57b   : > { %4838 = vmatprep.subr.bf16.mxu0 %v4806_v21  ;;  %5944 = vrot.lane.b32.xlu0 %v12152_v28, %s13260_s17 }
 0x57c   : > { %5940 = vrot.lane.b32.xlu1 %v12128_v45, %s13260_s17  ;;  %4839 = vmatpush1.bf16.msra.mxu0 %v4805_v50  ;;  %v7015_v50 = vld [vmem:[%s13243_s11 + $0x20] sm:$0xff] }
 0x57d   : > { %v4788_v8 = vpop.permute.xlu1 %4787 }
 0x57e   : > { %v4807_v13 = vsel %vm1578_vm8, %v4788_v8, %v4790_v53 }
 0x57f   : > { %5950 = vrot.lane.b32.xlu0 %v12136_v44, %s13260_s17 }
 0x580   : > { %5952 = vrot.lane.b32.xlu1 %v12160_v61, %s13260_s17 }
 0x581   : > { %v4792_v9 = vpop.permute.xlu0 %4791 }
 0x582   : > { %v4808_v23 = vsel %vm1578_vm8, %v4790_v53, %v4792_v9  ;;  %v6944_v53 = vld [vmem:[%s13242_s10 + $0x28] sm:$0xff] }
 0x583   : > { %4840 = vmatprep.subr.bf16.mxu0 %v4808_v23  ;;  %5948 = vrot.lane.b32.xlu0 %v12134_v46, %s13260_s17  ;;  %v6945_v23 = vld [vmem:[%s13242_s10 + $0x30] sm:$0xff] }
 0x584   : > { %5958 = vrot.lane.b32.xlu1 %v12142_v37, %s13260_s17  ;;  %4841 = vmatpush1.bf16.msra.mxu0 %v4807_v13  ;;  %v6946_v13 = vld [vmem:[%s13242_s10 + $0x38] sm:$0xff] }
 0x585   : > { %v4794_v60 = vpop.permute.xlu0 %4793 }
 0x586   : > { %v4809_v17 = vsel %vm1578_vm8, %v4794_v60, %v4796_v39  ;;  %v10300_v60 = vld [vmem:[%s13241_s9 + $0x58] sm:$0xff]  }
 0x587   : > { %5960 = vrot.lane.b32.xlu0 %v12168_v56, %s13260_s17 }
 0x588   : > { %5956 = vrot.lane.b32.xlu1 %v12140_v63, %s13260_s17 }
 0x589   : > { %v4798_v11 = vpop.permute.xlu1 %4797 }
 0x58a   : > { %v4810_v40 = vsel %vm1578_vm8, %v4796_v39, %v4798_v11  ;;  %v7016_v39 = vld [vmem:[%s13243_s11 + $0x28] sm:$0xff] }
 0x58b   : > { %4842 = vmatprep.subr.bf16.mxu0 %v4810_v40  ;;  %5938 = vrot.lane.b32.xlu0 %v12146_v20, %s13260_s17 }
 0x58c   : > { %5946 = vrot.lane.b32.xlu1 %v12154_v41, %s13260_s17  ;;  %4843 = vmatpush1.bf16.msra.mxu0 %v4809_v17  ;;  %v7018_v17 = vld [vmem:[%s13243_s11 + $0x38] sm:$0xff] }
 0x58d   : > { %v4802_v54 = vpop.permute.xlu1 %4801 }
 0x58f   : > { %5954 = vrot.lane.b32.xlu0 %v12162_v49, %s13260_s17 }
 0x590   : > { %6195 = vrot.lane.b32.xlu1 %v12144_v10, %s13261_s29 }
 0x591   : > { %v4800_v12 = vpop.permute.xlu1 %4799  ;;  %v4804_v24 = vpop.permute.xlu0 %4803 }
 0x592   : > { %v4811_v52 = vsel %vm1578_vm8, %v4800_v12, %v4802_v54  ;;  %v4812_v29 = vsel %vm1578_vm8, %v4802_v54, %v4804_v24  ;;  %v7880_v12 = vld [vmem:[%s13245_s13] sm:$0xff] }
 0x593   : > { %6193 = vrot.lane.b32.xlu0 %v12122_v14, %s13261_s29  ;;  %4844 = vmatprep.subr.bf16.mxu0 %v4812_v29 }
 0x594   : > { %5962 = vrot.lane.b32.xlu1 %v12170_v59, %s13260_s17  ;;  %4845 = vmatpush1.bf16.msra.mxu0 %v4811_v52 }
 0x595   : > { %9299 = vmatprep.subr.bf16.mxu0 %v4786_v5  ;;  %v5178_v43 = vpop.permute.xlu0 %5177  ;;  %v12407_v51 = vpop.permute.xlu1 %5179 }
 0x596   : > { %v5200_v42 = vsel %vm1977_vm5, %v5178_v43, %v12407_v51 }
 0x597   : > { %6191 = vrot.lane.b32.xlu0 %v12120_v19, %s13261_s29  ;;  %8718 = vmatmul.mubr.msk.bf16.vlgmr.msra.gmra.mrb[28].mxu0 %vm4825_vm13, %v10289_v33 }
 0x598   : > { %6201 = vrot.lane.b32.xlu1 %v12130_v25, %s13261_s29  ;;  %9300 = vmatpush3.bf16.msra.mxu0 %v4786_v5  ;;  %v10299_v5 = vld [vmem:[%s13241_s9 + $0x50] sm:$0xff]  }
 0x599   : > { %9301 = vmatprep.subr.bf16.mxu0 %v4792_v9  ;;  %4880 = vmatprep.mubr.bf16.mxu0 %v10437_v2  ;;  %v5176_v36 = vpop.permute.xlu0 %5175 }
 0x59b   : > { %6203 = vrot.lane.b32.xlu0 %v12152_v28, %s13261_s29 }
 0x59c   : > { %6199 = vrot.lane.b32.xlu1 %v12128_v45, %s13261_s29  ;;  %9302 = vmatpush3.bf16.msra.mxu0 %v4792_v9 }
 0x59d   : > { %9303 = vmatprep.subr.bf16.mxu0 %v4798_v11  ;;  %v5186_v38 = vpop.permute.xlu0 %5185 }
 0x59f   : > { %6209 = vrot.lane.b32.xlu0 %v12136_v44, %s13261_s29  ;;  %8719 = vmatmul.mubr.msk.bf16.gmra.mrb[32].mxu0 %vm4825_vm13, %v10290_v6 }
 0x5a0   : > { %6211 = vrot.lane.b32.xlu1 %v12160_v61, %s13261_s29  ;;  %9304 = vmatpush3.bf16.msra.mxu0 %v4798_v11  ;;  %v7017_v11 = vld [vmem:[%s13243_s11 + $0x30] sm:$0xff] }
 0x5a1   : > { %9305 = vmatprep.subr.bf16.mxu0 %v4804_v24  ;;  %4890 = vmatprep.mubr.bf16.mxu0 %v10437_v2 }
 0x5a3   : > { %6207 = vrot.lane.b32.xlu0 %v12134_v46, %s13261_s29 }
 0x5a4   : > { %6217 = vrot.lane.b32.xlu1 %v12142_v37, %s13261_s29  ;;  %9306 = vmatpush3.bf16.msra.mxu0 %v4804_v24  ;;  %v7881_v24 = vld [vmem:[%s13245_s13 + $0x8] sm:$0xff] }
 0x5a5   : > { %5008 = vmatprep.subr.bf16.mxu0 %v12122_v14 }
 0x5a7   : > { %6219 = vrot.lane.b32.xlu0 %v12168_v56, %s13261_s29  ;;  %8720 = vmatmul.mubr.msk.bf16.gmra.mrb[36].mxu0 %vm4825_vm13, %v10291_v47 }
 0x5a8   : > { %6215 = vrot.lane.b32.xlu1 %v12140_v63, %s13261_s29  ;;  %4900 = vmatprep.mubr.bf16.mxu0 %v10437_v2 }
 0x5ab   : > { %6197 = vrot.lane.b32.xlu0 %v12146_v20, %s13261_s29 }
 0x5ac   : > { %6205 = vrot.lane.b32.xlu1 %v12154_v41, %s13261_s29 }
 0x5af   : > { %6213 = vrot.lane.b32.xlu0 %v12162_v49, %s13261_s29  ;;  %8721 = vmatmul.mubr.msk.bf16.gmra.mrb[40].mxu0 %vm4825_vm13, %v10292_v30 }
 0x5b0   : > { %6454 = vrot.lane.b32.xlu1 %v12144_v10, %s13262_s23  ;;  %9307 = vmatprep.mubr.msk.bf16.mxu0 %vm4825_vm13, %v10289_v33 }
 0x5b3   : > { %6452 = vrot.lane.b32.xlu0 %v12122_v14, %s13262_s23 }
 0x5b4   : > { %6221 = vrot.lane.b32.xlu1 %v12170_v59, %s13261_s29 }
 0x5b7   : > { %6450 = vrot.lane.b32.xlu0 %v12120_v19, %s13262_s23  ;;  %9308 = vmatmul.mubr.msk.bf16.vlgmr.msra.gmra.mrb[44].mxu0 %vm4825_vm13, %v10290_v6 }
 0x5b8   : > { %5009 = vmatpush1.bf16.msra.mxu0 %v12120_v19  ;;  %6460 = vrot.lane.b32.xlu1 %v12130_v25, %s13262_s23 }
 0x5b9   : > { %5010 = vmatprep.subr.bf16.mxu0 %v12130_v25  ;;  %9311 = vmatprep.mubr.msk.bf16.mxu0 %vm4825_vm13, %v10291_v47 }
 0x5bb   : > { %6462 = vrot.lane.b32.xlu0 %v12152_v28, %s13262_s23 }
 0x5bc   : > { %5011 = vmatpush1.bf16.msra.mxu0 %v12128_v45  ;;  %6458 = vrot.lane.b32.xlu1 %v12128_v45, %s13262_s23 }
 0x5bd   : > { %5012 = vmatprep.subr.bf16.mxu0 %v12136_v44 }
 0x5bf   : > { %6468 = vrot.lane.b32.xlu0 %v12136_v44, %s13262_s23  ;;  %9312 = vmatmul.mubr.msk.bf16.gmra.mrb[48].mxu0 %vm4825_vm13, %v10292_v30 }
 0x5c0   : > { %5013 = vmatpush1.bf16.msra.mxu0 %v12134_v46  ;;  %6470 = vrot.lane.b32.xlu1 %v12160_v61, %s13262_s23 }
 0x5c1   : > { %5014 = vmatprep.subr.bf16.mxu0 %v12142_v37  ;;  %5040 = vmatprep.mubr.bf16.mxu0 %v10437_v2 }
 0x5c3   : > { %6466 = vrot.lane.b32.xlu0 %v12134_v46, %s13262_s23 }
 0x5c4   : > { %5015 = vmatpush1.bf16.msra.mxu0 %v12140_v63  ;;  %6476 = vrot.lane.b32.xlu1 %v12142_v37, %s13262_s23 }
 0x5c5   : > { %9315 = vmatprep.subr.bf16.mxu0 %v12144_v10 }
 0x5c7   : > { %6478 = vrot.lane.b32.xlu0 %v12168_v56, %s13262_s23  ;;  %8730 = vmatmul.mubr.msk.bf16.vlgmr.msra.gmra.mrb[28].mxu0 %vm4825_vm13, %v10293_v15 }
 0x5c8   : > { %9316 = vmatpush3.bf16.msra.mxu0 %v12144_v10  ;;  %6474 = vrot.lane.b32.xlu1 %v12140_v63, %s13262_s23 }
 0x5c9   : > { %9317 = vmatprep.subr.bf16.mxu0 %v12152_v28  ;;  %5050 = vmatprep.mubr.bf16.mxu0 %v10437_v2 }
 0x5cb   : > { %6456 = vrot.lane.b32.xlu0 %v12146_v20, %s13262_s23 }
 0x5cc   : > { %9318 = vmatpush3.bf16.msra.mxu0 %v12152_v28  ;;  %6464 = vrot.lane.b32.xlu1 %v12154_v41, %s13262_s23 }
 0x5cd   : > { %9319 = vmatprep.subr.bf16.mxu0 %v12160_v61 }
 0x5cf   : > { %6472 = vrot.lane.b32.xlu0 %v12162_v49, %s13262_s23  ;;  %8731 = vmatmul.mubr.msk.bf16.gmra.mrb[32].mxu0 %vm4825_vm13, %v10294_v22 }
 0x5d0   : > { %9320 = vmatpush3.bf16.msra.mxu0 %v12160_v61  ;;  %6713 = vrot.lane.b32.xlu1 %v12144_v10, %s13263_s21 }
 0x5d1   : > { %9321 = vmatprep.subr.bf16.mxu0 %v12168_v56  ;;  %5060 = vmatprep.mubr.bf16.mxu0 %v10437_v2 }
 0x5d3   : > { %6711 = vrot.lane.b32.xlu0 %v12122_v14, %s13263_s21  ;;  %v5184_v14 = vpop.permute.xlu1 %5183 }
 0x5d4   : > { %9322 = vmatpush3.bf16.msra.mxu0 %v12168_v56  ;;  %6480 = vrot.lane.b32.xlu1 %v12170_v59, %s13262_s23 }
 0x5d5   : > { %5231 = vmatprep.subr.bf16.mxu0 %v5200_v42 }
 0x5d7   : > { %6709 = vrot.lane.b32.xlu0 %v12120_v19, %s13263_s21  ;;  %8732 = vmatmul.mubr.msk.bf16.gmra.mrb[36].mxu0 %vm4825_vm13, %v10295_v35  ;;  %v5182_v19 = vpop.permute.xlu1 %5181 }
 0x5d8   : > { %6719 = vrot.lane.b32.xlu1 %v12130_v25, %s13263_s21  ;;  %5070 = vmatprep.mubr.bf16.mxu0 %v10437_v2  ;;  %v5190_v25 = vpop.permute.xlu0 %5189 }
 0x5db   : > { %6721 = vrot.lane.b32.xlu0 %v12152_v28, %s13263_s21  ;;  %v5192_v4 = vpop.permute.xlu1 %5191  ;;  %v6940_v28 = vld [vmem:[%s13242_s10 + $0x8] sm:$0xff] }
 0x5dc   : > { %6717 = vrot.lane.b32.xlu1 %v12128_v45, %s13263_s21  ;;  %v5199_v45 = vsel %vm1977_vm5, %v5176_v36, %v5178_v43  ;;  %v5188_v10 = vpop.permute.xlu0 %5187  ;;  %v5204_v18 = vsel %vm1977_vm5, %v5190_v25, %v5192_v4 }
 0x5df   : > { %6727 = vrot.lane.b32.xlu0 %v12136_v44, %s13263_s21  ;;  %8733 = vmatmul.mubr.msk.bf16.gmra.mrb[40].mxu0 %vm4825_vm13, %v10296_v57  ;;  %v5202_v44 = vsel %vm1977_vm5, %v5184_v14, %v5186_v38 }
 0x5e0   : > { %6729 = vrot.lane.b32.xlu1 %v12160_v61, %s13263_s21  ;;  %9323 = vmatprep.mubr.msk.bf16.mxu0 %vm4825_vm13, %v10293_v15  ;;  %v5198_v34 = vpop.permute.xlu0 %5197 }
 0x5e3   : > { %6725 = vrot.lane.b32.xlu0 %v12134_v46, %s13263_s21  ;;  %v5196_v46 = vpop.permute.xlu1 %5195 }
 0x5e4   : > { %6735 = vrot.lane.b32.xlu1 %v12142_v37, %s13263_s21  ;;  %v5201_v37 = vsel %vm1977_vm5, %v5182_v19, %v5184_v14  ;;  %v12479_v62 = vpop.permute.xlu0 %5424 }
 0x5e7   : > { %9324 = vmatmul.mubr.msk.bf16.vlgmr.msra.gmra.mrb[44].mxu0 %vm4825_vm13, %v10294_v22  ;;  %6737 = vrot.lane.b32.xlu0 %v12168_v56, %s13263_s21  ;;  %v5194_v32 = vpop.permute.xlu1 %5193  ;;  %v7013_v56 = vld [vmem:[%s13243_s11 + $0x10] sm:$0xff] }
 0x5e8   : > { %5232 = vmatpush1.bf16.msra.mxu0 %v5199_v45  ;;  %6733 = vrot.lane.b32.xlu1 %v12140_v63, %s13263_s21  ;;  %v5203_v63 = vsel %vm1977_vm5, %v5188_v10, %v5190_v25  ;;  %v5205_v48 = vsel %vm1977_vm5, %v5194_v32, %v5196_v46  ;;  %v5423_v26 = vpop.permute.xlu0 %5422  ;;  %v10304_v45 = vld [vmem:[%s13241_s9 + $0x78] sm:$0xff]  }
 0x5e9   : > { %5233 = vmatprep.subr.bf16.mxu0 %v5202_v44  ;;  %9327 = vmatprep.mubr.msk.bf16.mxu0 %vm4825_vm13, %v10295_v35  ;;  %v5446_v33 = vsel %vm2220_vm6, %v5423_v26, %v12479_v62  ;;  %v10302_v35 = vld [vmem:[%s13241_s9 + $0x68] sm:$0xff]  }
 0x5eb   : > { %6715 = vrot.lane.b32.xlu0 %v12146_v20, %s13263_s21  ;;  %v5206_v20 = vsel %vm1977_vm5, %v5196_v46, %v5198_v34  ;;  %v12485_v61 = vpop.permute.xlu1 %5426 }
 0x5ec   : > { %5234 = vmatpush1.bf16.msra.mxu0 %v5201_v37  ;;  %6723 = vrot.lane.b32.xlu1 %v12154_v41, %s13263_s21  ;;  %v10297_v41 = vld [vmem:[%s13241_s9 + $0x40] sm:$0xff]   ;;  %v5433_v7 = vpop.permute.xlu0 %5432  ;;  %v5447_v21 = vsel %vm2220_vm6, %v12479_v62, %v12485_v61 }
 0x5ed   : > { %5235 = vmatprep.subr.bf16.mxu0 %v5204_v18 }
 0x5ef   : > { %9328 = vmatmul.mubr.msk.bf16.gmra.mrb[48].mxu0 %vm4825_vm13, %v10296_v57  ;;  %6731 = vrot.lane.b32.xlu0 %v12162_v49, %s13263_s21  ;;  %v6942_v49 = vld [vmem:[%s13242_s10 + $0x18] sm:$0xff]  ;;  %v5431_v16 = vpop.permute.xlu1 %5430  ;;  %v10303_v57 = vld [vmem:[%s13241_s9 + $0x70] sm:$0xff]  }
 0x5f0   : > { %5236 = vmatpush1.bf16.msra.mxu0 %v5203_v63  ;;  %6739 = vrot.lane.b32.xlu1 %v12170_v59, %s13263_s21  ;;  %v6943_v59 = vld [vmem:[%s13242_s10 + $0x20] sm:$0xff]  ;;  %v5437_v8 = vpop.permute.xlu0 %5436  ;;  %v5449_v6 = vsel %vm2220_vm6, %v5431_v16, %v5433_v7 }
 0x5f1   : > { %5237 = vmatprep.subr.bf16.mxu0 %v5206_v20  ;;  %5263 = vmatprep.mubr.bf16.mxu0 %v10437_v2 }
 0x5f3   : > { %6949 = vperm.xlu0 %9950, %v6939_v0   ;;  %v5429_v3 = vpop.permute.xlu1 %5428 }
 0x5f4   : > { %5238 = vmatpush1.bf16.msra.mxu0 %v5205_v48  ;;  %6954 = vperm.xlu1 %9949, %v6940_v28   ;;  %v5435_v40 = vpop.permute.xlu0 %5434  ;;  %v5448_v47 = vsel %vm2220_vm6, %v5429_v3, %v5431_v16  ;;  %v10307_v3 = vld [vmem:[%s13241_s9 + $0x90] sm:$0xff]  }
 0x5f5   : > { %9331 = vmatprep.subr.bf16.mxu0 %v12407_v51  ;;  %v5450_v15 = vsel %vm2220_vm6, %v5435_v40, %v5437_v8 }
 0x5f7   : > { %7021 = vperm.xlu0 %9950, %v7011_v31   ;;  %8750 = vmatmul.mubr.msk.bf16.vlgmr.msra.gmra.mrb[28].mxu0 %vm4825_vm13, %v10297_v41  ;;  %v5439_v9 = vpop.permute.xlu1 %5438 }
 0x5f8   : > { %9332 = vmatpush3.bf16.msra.mxu0 %v12407_v51  ;;  %7026 = vperm.xlu1 %9949, %v7012_v58   ;;  %v5445_v52 = vpop.permute.xlu0 %5444  ;;  %v5451_v30 = vsel %vm2220_vm6, %v5437_v8, %v5439_v9  ;;  %v10301_v51 = vld [vmem:[%s13241_s9 + $0x60] sm:$0xff]  }
 0x5f9   : > { %9333 = vmatprep.subr.bf16.mxu0 %v5186_v38  ;;  %5273 = vmatprep.mubr.bf16.mxu0 %v10437_v2  ;;  %v10305_v58 = vld [vmem:[%s13241_s9 + $0x80] sm:$0xff]  }
 0x5fb   : > { %6959 = vperm.xlu0 %9950, %v6941_v1   ;;  %v5443_v54 = vpop.permute.xlu1 %5442 }
 0x5fc   : > { %9334 = vmatpush3.bf16.msra.mxu0 %v5186_v38  ;;  %6964 = vperm.xlu1 %9949, %v6942_v49   ;;  %v5453_v22 = vsel %vm2220_vm6, %v5443_v54, %v5445_v52  ;;  %v5676_v36 = vpop.permute.xlu0 %5675 }
 0x5fd   : > { %9335 = vmatprep.subr.bf16.mxu0 %v5192_v4 }
 0x5ff   : > { %8751 = vmatmul.mubr.msk.bf16.gmra.mrb[32].mxu0 %vm4825_vm13, %v10298_v55  ;;  %7031 = vperm.xlu0 %9950, %v7013_v56   ;;  %v5441_v29 = vpop.permute.xlu1 %5440 }
 0x600   : > { %9336 = vmatpush3.bf16.msra.mxu0 %v5192_v4  ;;  %7036 = vperm.xlu1 %9949, %v7014_v27   ;;  %v5452_v43 = vsel %vm2220_vm6, %v5441_v29, %v5443_v54  ;;  %v5674_v38 = vpop.permute.xlu0 %5673 }
 0x601   : > { %9337 = vmatprep.subr.bf16.mxu0 %v5198_v34  ;;  %5283 = vmatprep.mubr.bf16.mxu0 %v10437_v2  ;;  %v5705_v18 = vsel %vm2472_vm7, %v5674_v38, %v5676_v36 }
 0x603   : > { %6969 = vperm.xlu0 %9950, %v6943_v59   ;;  %v5678_v42 = vpop.permute.xlu1 %5677 }
 0x604   : > { %9338 = vmatpush3.bf16.msra.mxu0 %v5198_v34  ;;  %6974 = vperm.xlu1 %9949, %v6944_v53   ;;  %v5706_v19 = vsel %vm2472_vm7, %v5676_v36, %v5678_v42  ;;  %v5686_v4 = vpop.permute.xlu0 %5685 }
 0x605   : > { %5478 = vmatprep.subr.bf16.mxu0 %v5447_v21 }
 0x607   : > { %8752 = vmatmul.mubr.msk.bf16.gmra.mrb[36].mxu0 %vm4825_vm13, %v10299_v5  ;;  %7041 = vperm.xlu0 %9950, %v7015_v50   ;;  %v5684_v14 = vpop.permute.xlu1 %5683 }
 0x608   : > { %7046 = vperm.xlu1 %9949, %v7016_v39   ;;  %5293 = vmatprep.mubr.bf16.mxu0 %v10437_v2  ;;  %v5692_v44 = vpop.permute.xlu0 %5691  ;;  %v5709_v34 = vsel %vm2472_vm7, %v5684_v14, %v5686_v4  ;;  %v10308_v39 = vld [vmem:[%s13241_s9 + $0x98] sm:$0xff]  }
 0x60b   : > { %6979 = vperm.xlu0 %9950, %v6945_v23   ;;  %v5682_v25 = vpop.permute.xlu1 %5681 }
 0x60c   : > { %6984 = vperm.xlu1 %9949, %v6946_v13   ;;  %v5690_v37 = vpop.permute.xlu0 %5689  ;;  %v5708_v63 = vsel %vm2472_vm7, %v5682_v25, %v5684_v14 }
 0x60d   : > { %v5711_v28 = vsel %vm2472_vm7, %v5690_v37, %v5692_v44 }
 0x60f   : > { %8753 = vmatmul.mubr.msk.bf16.gmra.mrb[40].mxu0 %vm4825_vm13, %v10300_v60  ;;  %7051 = vperm.xlu0 %9950, %v7017_v11   ;;  %v5694_v10 = vpop.permute.xlu1 %5693 }
 0x610   : > { %7056 = vperm.xlu1 %9949, %v7018_v17   ;;  %9339 = vmatprep.mubr.msk.bf16.mxu0 %vm4825_vm13, %v10297_v41  ;;  %v5702_v20 = vpop.permute.xlu0 %5701  ;;  %v5712_v0 = vsel %vm2472_vm7, %v5692_v44, %v5694_v10 }
 0x613   : > { %7884 = vperm.xlu0 %9950, %v7880_v12   ;;  %v5700_v46 = vpop.permute.xlu1 %5699 }
 0x614   : > { %7889 = vperm.xlu1 %9949, %v7881_v24   ;;  %v5715_v48 = vsel %vm2472_vm7, %v5700_v46, %v5702_v20  ;;  %v5680_v31 = vpop.permute.xlu0 %5679 }
 0x617   : > { %9340 = vmatmul.mubr.msk.bf16.vlgmr.msra.gmra.mrb[44].mxu0 %vm4825_vm13, %v10298_v55  ;;  %v5698_v32 = vpop.permute.xlu1 %5697  ;;  %v10306_v55 = vld [vmem:[%s13241_s9 + $0x88] sm:$0xff]  }
 0x618   : > { %5479 = vmatpush1.bf16.msra.mxu0 %v5446_v33  ;;  %9343 = vmatprep.mubr.msk.bf16.mxu0 %vm4825_vm13, %v10299_v5  ;;  %v5714_v62 = vsel %vm2472_vm7, %v5698_v32, %v5700_v46  ;;  %v5696_v49 = vpop.permute.xlu0 %5695 }
 0x619   : > { %5480 = vmatprep.subr.bf16.mxu0 %v5449_v6  ;;  %v5713_v16 = vsel %vm2472_vm7, %v5694_v10, %v5696_v49  ;;  %v10312_v10 = vld [vmem:[%s13241_s9 + $0xb8] sm:$0xff]  }
 0x61b   : > { %v5688_v41 = vpop.permute.xlu1 %5687 }
 0x61c   : > { %5481 = vmatpush1.bf16.msra.mxu0 %v5448_v47  ;;  %v5710_v26 = vsel %vm2472_vm7, %v5686_v4, %v5688_v41  ;;  %v5935_v56 = vpop.permute.xlu0 %5934  ;;  %v10309_v47 = vld [vmem:[%s13241_s9 + $0xa0] sm:$0xff]  }
 0x61d   : > { %5482 = vmatprep.subr.bf16.mxu0 %v5451_v30 }
 0x61f   : > { %9344 = vmatmul.mubr.msk.bf16.gmra.mrb[48].mxu0 %vm4825_vm13, %v10300_v60  ;;  %v5937_v1 = vpop.permute.xlu1 %5936 }
 0x620   : > { %5483 = vmatpush1.bf16.msra.mxu0 %v5450_v15  ;;  %5510 = vmatprep.mubr.bf16.mxu0 %v10437_v2  ;;  %v5965_v5 = vsel %vm2724_vm9, %v5935_v56, %v5937_v1 }
 0x621   : > { %5484 = vmatprep.subr.bf16.mxu0 %v5453_v22 }
 0x623   : > { %v5704_v27 = vpop.permute.xlu1 %5703 }
 0x624   : > { %5485 = vmatpush1.bf16.msra.mxu0 %v5452_v43  ;;  %v5716_v59 = vsel %vm2472_vm7, %v5702_v20, %v5704_v27 }
 0x625   : > { %9347 = vmatprep.subr.bf16.mxu0 %v12485_v61 }
 0x627   : > { %8770 = vmatmul.mubr.msk.bf16.vlgmr.msra.gmra.mrb[28].mxu0 %vm4825_vm13, %v10301_v51  ;;  %v5943_v53 = vpop.permute.xlu1 %5942 }
 0x628   : > { %9348 = vmatpush3.bf16.msra.mxu0 %v12485_v61  ;;  %5520 = vmatprep.mubr.bf16.mxu0 %v10437_v2  ;;  %v5707_v61 = vsel %vm2472_vm7, %v5678_v42, %v5680_v31 }
 0x629   : > { %9349 = vmatprep.subr.bf16.mxu0 %v5433_v7 }
 0x62b   : > { %v5941_v50 = vpop.permute.xlu1 %5940 }
 0x62c   : > { %9350 = vmatpush3.bf16.msra.mxu0 %v5433_v7  ;;  %v5933_v7 = vpop.permute.xlu0 %5932  ;;  %v5967_v40 = vsel %vm2724_vm9, %v5941_v50, %v5943_v53 }
 0x62d   : > { %9351 = vmatprep.subr.bf16.mxu0 %v5439_v9  ;;  %v5964_v60 = vsel %vm2724_vm9, %v5933_v7, %v5935_v56  ;;  %v10325_v7 = vld [vmem:[%s13237_s5] ss:$12 sps:$4 sm:$0xff]  }
 0x62f   : > { %8771 = vmatmul.mubr.msk.bf16.gmra.mrb[32].mxu0 %vm4825_vm13, %v10302_v35 }
 0x630   : > { %9352 = vmatpush3.bf16.msra.mxu0 %v5439_v9  ;;  %5530 = vmatprep.mubr.bf16.mxu0 %v10437_v2  ;;  %v5945_v21 = vpop.permute.xlu0 %5944  ;;  %v5953_v9 = vpop.permute.xlu1 %5952 }
 0x631   : > { %9353 = vmatprep.subr.bf16.mxu0 %v5445_v52  ;;  %v5968_v11 = vsel %vm2724_vm9, %v5943_v53, %v5945_v21  ;;  %v10327_v53 = vld [vmem:[%s13237_s5 + $0x4] ss:$12 sps:$4 sm:$0xff]  }
 0x632   : > { %7590 = vmatprep.subr.bf16.mxu1 %v10327_v53  ;;  %v10320_v53 = vld [vmem:[%s13241_s9 + $0xf8] sm:$0xff]  }
 0x633   : > { %7591 = vmatpush1.bf16.msra.mxu1 %v10325_v7 }
 0x634   : > { %9354 = vmatpush3.bf16.msra.mxu0 %v5445_v52  ;;  %v5951_v8 = vpop.permute.xlu0 %5950  ;;  %v5959_v13 = vpop.permute.xlu1 %5958 }
 0x635   : > { %5741 = vmatprep.subr.bf16.mxu0 %v5706_v19  ;;  %v5971_v12 = vsel %vm2724_vm9, %v5951_v8, %v5953_v9  ;;  %v10311_v19 = vld [vmem:[%s13241_s9 + $0xb0] sm:$0xff]  }
 0x637   : > { %8772 = vmatmul.mubr.msk.bf16.gmra.mrb[36].mxu0 %vm4825_vm13, %v10303_v57 }
 0x638   : > { %5540 = vmatprep.mubr.bf16.mxu0 %v10437_v2  ;;  %v5949_v23 = vpop.permute.xlu0 %5948  ;;  %v5957_v54 = vpop.permute.xlu1 %5956 }
 0x639   : > { %v5970_v24 = vsel %vm2724_vm9, %v5949_v23, %v5951_v8  ;;  %v5973_v6 = vsel %vm2724_vm9, %v5957_v54, %v5959_v13  ;;  %v10315_v8 = vld [vmem:[%s13241_s9 + $0xd0] sm:$0xff]   ;;  %v10316_v54 = vld [vmem:[%s13241_s9 + $0xd8] sm:$0xff]  }
 0x63c   : > { %v5961_v17 = vpop.permute.xlu0 %5960  ;;  %v5947_v33 = vpop.permute.xlu1 %5946 }
 0x63d   : > { %v5974_v52 = vsel %vm2724_vm9, %v5959_v13, %v5961_v17  ;;  %v5969_v43 = vsel %vm2724_vm9, %v5945_v21, %v5947_v33  ;;  %v10328_v21 = vld [vmem:[%s13237_s5 + $0x18] ss:$12 sps:$4 sm:$0xff]   ;;  %v10331_v13 = vld [vmem:[%s13237_s5 + $0x30] ss:$12 sps:$4 sm:$0xff]  }
 0x63e   : > { %v10342_v33 = vld [vmem:[%s13237_s5 + $0x7c] ss:$12 sps:$4 sm:$0xff]  }
 0x63f   : > { %8773 = vmatmul.mubr.msk.bf16.gmra.mrb[40].mxu0 %vm4825_vm13, %v10304_v45 }
 0x640   : > { %9355 = vmatprep.mubr.msk.bf16.mxu0 %vm4825_vm13, %v10301_v51  ;;  %v5939_v29 = vpop.permute.xlu0 %5938  ;;  %v6196_v22 = vpop.permute.xlu1 %6195  ;;  %v10310_v51 = vld [vmem:[%s13241_s9 + $0xa8] sm:$0xff]  }
 0x641   : > { %v5966_v30 = vsel %vm2724_vm9, %v5937_v1, %v5939_v29 }
 0x644   : > { %v5955_v15 = vpop.permute.xlu0 %5954  ;;  %v5963_v36 = vpop.permute.xlu1 %5962 }
 0x645   : > { %v5975_v14 = vsel %vm2724_vm9, %v5961_v17, %v5963_v36  ;;  %v10334_v17 = vld [vmem:[%s13237_s5 + $0x48] ss:$12 sps:$4 sm:$0xff]  }
 0x647   : > { %9356 = vmatmul.mubr.msk.bf16.vlgmr.msra.gmra.mrb[44].mxu0 %vm4825_vm13, %v10302_v35  ;;  %v5972_v35 = vsel %vm2724_vm9, %v5953_v9, %v5955_v15  ;;  %v10333_v9 = vld [vmem:[%s13237_s5 + $0x34] ss:$12 sps:$4 sm:$0xff]  }
 0x648   : > { %5742 = vmatpush1.bf16.msra.mxu0 %v5705_v18  ;;  %9359 = vmatprep.mubr.msk.bf16.mxu0 %vm4825_vm13, %v10303_v57  ;;  %v6194_v42 = vpop.permute.xlu0 %6193  ;;  %v6202_v57 = vpop.permute.xlu1 %6201 }
 0x649   : > { %5743 = vmatprep.subr.bf16.mxu0 %v5709_v34  ;;  %v6224_v25 = vsel %vm2976_vm10, %v6194_v42, %v6196_v22 }
 0x64c   : > { %5744 = vmatpush1.bf16.msra.mxu0 %v5708_v63  ;;  %v6192_v38 = vpop.permute.xlu0 %6191 }
 0x64d   : > { %5745 = vmatprep.subr.bf16.mxu0 %v5712_v0  ;;  %v6223_v34 = vsel %vm2976_vm10, %v6192_v38, %v6194_v42  ;;  %v10346_v42 = vld [vmem:[%s13237_s5 + $0xa8] ss:$12 sps:$4 sm:$0xff]  }
 0x64f   : > { %9360 = vmatmul.mubr.msk.bf16.gmra.mrb[48].mxu0 %vm4825_vm13, %v10304_v45  ;;  %v6200_v45 = vpop.permute.xlu1 %6199 }
 0x650   : > { %5746 = vmatpush1.bf16.msra.mxu0 %v5711_v28  ;;  %5773 = vmatprep.mubr.bf16.mxu0 %v10437_v2  ;;  %v6204_v4 = vpop.permute.xlu0 %6203  ;;  %v6226_v32 = vsel %vm2976_vm10, %v6200_v45, %v6202_v57  ;;  %v10354_v45 = vld [vmem:[%s13237_s5 + $0xdc] ss:$12 sps:$4 sm:$0xff]  }
 0x651   : > { %5747 = vmatprep.subr.bf16.mxu0 %v5715_v48  ;;  %v6227_v63 = vsel %vm2976_vm10, %v6202_v57, %v6204_v4  ;;  %v10351_v57 = vld [vmem:[%s13237_s5 + $0xc4] ss:$12 sps:$4 sm:$0xff]  }
 0x653   : > { %v6212_v46 = vpop.permute.xlu1 %6211 }
 0x654   : > { %5748 = vmatpush1.bf16.msra.mxu0 %v5714_v62  ;;  %v6210_v44 = vpop.permute.xlu0 %6209 }
 0x655   : > { %9363 = vmatprep.subr.bf16.mxu0 %v5707_v61  ;;  %v6230_v28 = vsel %vm2976_vm10, %v6210_v44, %v6212_v46 }
 0x657   : > { %8790 = vmatmul.mubr.msk.bf16.vlgmr.msra.gmra.mrb[28].mxu0 %vm4825_vm13, %v10305_v58  ;;  %v6218_v18 = vpop.permute.xlu1 %6217 }
 0x658   : > { %9364 = vmatpush3.bf16.msra.mxu0 %v5707_v61  ;;  %5783 = vmatprep.mubr.bf16.mxu0 %v10437_v2  ;;  %v6208_v37 = vpop.permute.xlu0 %6207  ;;  %v10313_v61 = vld [vmem:[%s13241_s9 + $0xc0] sm:$0xff]  }
 0x659   : > { %9365 = vmatprep.subr.bf16.mxu0 %v5710_v26  ;;  %v6229_v48 = vsel %vm2976_vm10, %v6208_v37, %v6210_v44  ;;  %v10352_v37 = vld [vmem:[%s13237_s5 + $0xd8] ss:$12 sps:$4 sm:$0xff]  }
 0x65b   : > { %v6216_v0 = vpop.permute.xlu1 %6215 }
 0x65c   : > { %9366 = vmatpush3.bf16.msra.mxu0 %v5710_v26  ;;  %v6220_v20 = vpop.permute.xlu0 %6219 }
 0x65d   : > { %9367 = vmatprep.subr.bf16.mxu0 %v5713_v16  ;;  %v6233_v41 = vsel %vm2976_vm10, %v6218_v18, %v6220_v20 }
 0x65f   : > { %8791 = vmatmul.mubr.msk.bf16.gmra.mrb[32].mxu0 %vm4825_vm13, %v10306_v55  ;;  %v6206_v62 = vpop.permute.xlu1 %6205 }
 0x660   : > { %9368 = vmatpush3.bf16.msra.mxu0 %v5713_v16  ;;  %5793 = vmatprep.mubr.bf16.mxu0 %v10437_v2  ;;  %v6198_v31 = vpop.permute.xlu0 %6197  ;;  %v10314_v16 = vld [vmem:[%s13241_s9 + $0xc8] sm:$0xff]  }
 0x661   : > { %9369 = vmatprep.subr.bf16.mxu0 %v5716_v59  ;;  %v6225_v1 = vsel %vm2976_vm10, %v6196_v22, %v6198_v31  ;;  %v10343_v22 = vld [vmem:[%s13237_s5 + $0x90] ss:$12 sps:$4 sm:$0xff]   ;;  %v10358_v31 = vld [vmem:[%s13237_s5 + $0x108] ss:$12 sps:$4 sm:$0xff]  }
 0x663   : > { %v12672_v26 = vpop.permute.xlu1 %6454 }
 0x664   : > { %9370 = vmatpush3.bf16.msra.mxu0 %v5716_v59  ;;  %v6214_v49 = vpop.permute.xlu0 %6213 }
 0x665   : > { %6000 = vmatprep.subr.bf16.mxu0 %v5965_v5  ;;  %v6231_v56 = vsel %vm2976_vm10, %v6212_v46, %v6214_v49  ;;  %v10330_v5 = vld [vmem:[%s13237_s5 + $0x1c] ss:$12 sps:$4 sm:$0xff]  }
 0x666   : > { %7592 = vmatprep.subr.bf16.mxu1 %v10330_v5 }
 0x667   : > { %8792 = vmatmul.mubr.msk.bf16.gmra.mrb[36].mxu0 %vm4825_vm13, %v10307_v3  ;;  %v6222_v59 = vpop.permute.xlu1 %6221  ;;  %7593 = vmatpush1.bf16.msra.mxu1 %v10328_v21 }
 0x668   : > { %5803 = vmatprep.mubr.bf16.mxu0 %v10437_v2  ;;  %v6453_v27 = vpop.permute.xlu0 %6452  ;;  %7594 = vmatprep.subr.bf16.mxu1 %v10333_v9 }
 0x669   : > { %v6483_v23 = vsel %vm3228_vm11, %v6453_v27, %v12672_v26 }
 0x66b   : > { %7595 = vmatpush1.bf16.msra.mxu1 %v10331_v13 }
 0x66c   : > { %v6451_v50 = vpop.permute.xlu0 %6450 }
 0x66f   : > { %8793 = vmatmul.mubr.msk.bf16.gmra.mrb[40].mxu0 %vm4825_vm13, %v10308_v39 }
 0x670   : > { %9371 = vmatprep.mubr.msk.bf16.mxu0 %vm4825_vm13, %v10305_v58  ;;  %v6232_v58 = vsel %vm2976_vm10, %v6216_v0, %v6218_v18 }
 0x677   : > { %9372 = vmatmul.mubr.msk.bf16.vlgmr.msra.gmra.mrb[44].mxu0 %vm4825_vm13, %v10306_v55  ;;  %v6228_v55 = vsel %vm2976_vm10, %v6204_v4, %v6206_v62  ;;  %v10318_v62 = vld [vmem:[%s13241_s9 + $0xe8] sm:$0xff]  }
 0x678   : > { %6001 = vmatpush1.bf16.msra.mxu0 %v5964_v60  ;;  %9375 = vmatprep.mubr.msk.bf16.mxu0 %vm4825_vm13, %v10307_v3  ;;  %v6234_v3 = vsel %vm2976_vm10, %v6220_v20, %v6222_v59  ;;  %v10336_v60 = vld [vmem:[%s13237_s5 + $0x4c] ss:$12 sps:$4 sm:$0xff]   ;;  %v10355_v20 = vld [vmem:[%s13237_s5 + $0xf0] ss:$12 sps:$4 sm:$0xff]  }
 0x679   : > { %6002 = vmatprep.subr.bf16.mxu0 %v5968_v11  ;;  %v12712_v11 = vpop.permute.xlu0 %6462  ;;  %7596 = vmatprep.subr.bf16.mxu1 %v10336_v60 }
 0x67a   : > { %7597 = vmatpush1.bf16.msra.mxu1 %v10334_v17 }
 0x67c   : > { %6003 = vmatpush1.bf16.msra.mxu0 %v5967_v40 }
 0x67d   : > { %6004 = vmatprep.subr.bf16.mxu0 %v5971_v12  ;;  %v10339_v12 = vld [vmem:[%s13237_s5 + $0x64] ss:$12 sps:$4 sm:$0xff]  }
 0x67e   : > { %7598 = vmatprep.subr.bf16.mxu1 %v10339_v12 }
 0x67f   : > { %9376 = vmatmul.mubr.msk.bf16.gmra.mrb[48].mxu0 %vm4825_vm13, %v10308_v39  ;;  %v6461_v39 = vpop.permute.xlu1 %6460 }
 0x680   : > { %6005 = vmatpush1.bf16.msra.mxu0 %v5970_v24  ;;  %6032 = vmatprep.mubr.bf16.mxu0 %v10437_v2  ;;  %v10337_v24 = vld [vmem:[%s13237_s5 + $0x60] ss:$12 sps:$4 sm:$0xff]  }
 0x681   : > { %6006 = vmatprep.subr.bf16.mxu0 %v5974_v52  ;;  %v6469_v52 = vpop.permute.xlu0 %6468  ;;  %7599 = vmatpush1.bf16.msra.mxu1 %v10337_v24  ;;  %v10321_v24 = vld [vmem:[%s13241_s9 + $0x100] sm:$0xff]  }
 0x682   : > { %7600 = vmatprep.subr.bf16.mxu1 %v10342_v33 }
 0x683   : > { %v6459_v40 = vpop.permute.xlu1 %6458 }
 0x684   : > { %6007 = vmatpush1.bf16.msra.mxu0 %v5973_v6  ;;  %v10340_v6 = vld [vmem:[%s13237_s5 + $0x78] ss:$12 sps:$4 sm:$0xff]   ;;  %v6485_v36 = vsel %vm3228_vm11, %v6459_v40, %v6461_v39 }
 0x685   : > { %9379 = vmatprep.subr.bf16.mxu0 %v5966_v30  ;;  %7601 = vmatpush1.bf16.msra.mxu1 %v10340_v6 }
 0x687   : > { %8810 = vmatmul.mubr.msk.bf16.vlgmr.msra.gmra.mrb[28].mxu0 %vm4825_vm13, %v10309_v47  ;;  %v12726_v29 = vpop.permute.xlu1 %6470 }
 0x688   : > { %9380 = vmatpush3.bf16.msra.mxu0 %v5966_v30  ;;  %6042 = vmatprep.mubr.bf16.mxu0 %v10437_v2  ;;  %v6467_v30 = vpop.permute.xlu0 %6466 }
 0x689   : > { %9381 = vmatprep.subr.bf16.mxu0 %v5969_v43  ;;  %v6488_v4 = vsel %vm3228_vm11, %v6467_v30, %v6469_v52 }
 0x68b   : > { %v6477_v15 = vpop.permute.xlu1 %6476 }
 0x68c   : > { %9382 = vmatpush3.bf16.msra.mxu0 %v5969_v43  ;;  %v6482_v43 = vsel %vm3228_vm11, %v6451_v50, %v6453_v27 }
 0x68d   : > { %9383 = vmatprep.subr.bf16.mxu0 %v5972_v35 }
 0x68f   : > { %8811 = vmatmul.mubr.msk.bf16.gmra.mrb[32].mxu0 %vm4825_vm13, %v10310_v51  ;;  %v6475_v38 = vpop.permute.xlu1 %6474 }
 0x690   : > { %9384 = vmatpush3.bf16.msra.mxu0 %v5972_v35  ;;  %6052 = vmatprep.mubr.bf16.mxu0 %v10437_v2  ;;  %v6486_v35 = vsel %vm3228_vm11, %v6461_v39, %v12712_v11  ;;  %v6491_v18 = vsel %vm3228_vm11, %v6475_v38, %v6477_v15  ;;  %v10372_v38 = vld [vmem:[%s13237_s5 + $0x16c] ss:$12 sps:$4 sm:$0xff]  }
 0x691   : > { %9385 = vmatprep.subr.bf16.mxu0 %v5975_v14 }
 0x693   : > { %v6465_v46 = vpop.permute.xlu1 %6464 }
 0x694   : > { %9386 = vmatpush3.bf16.msra.mxu0 %v5975_v14  ;;  %v6479_v14 = vpop.permute.xlu0 %6478 }
 0x695   : > { %6259 = vmatprep.subr.bf16.mxu0 %v6224_v25  ;;  %v10349_v25 = vld [vmem:[%s13237_s5 + $0xc0] ss:$12 sps:$4 sm:$0xff]  }
 0x697   : > { %8812 = vmatmul.mubr.msk.bf16.gmra.mrb[36].mxu0 %vm4825_vm13, %v10311_v19 }
 0x698   : > { %6062 = vmatprep.mubr.bf16.mxu0 %v10437_v2  ;;  %v6457_v44 = vpop.permute.xlu0 %6456 }
 0x69c   : > { %v6473_v0 = vpop.permute.xlu0 %6472 }
 0x69f   : > { %8813 = vmatmul.mubr.msk.bf16.gmra.mrb[40].mxu0 %vm4825_vm13, %v10312_v10 }
 0x6a0   : > { %9387 = vmatprep.mubr.msk.bf16.mxu0 %vm4825_vm13, %v10309_v47  ;;  %v10345_v47 = vld [vmem:[%s13237_s5 + $0x94] ss:$12 sps:$4 sm:$0xff]  }
 0x6a1   : > { %7602 = vmatprep.subr.bf16.mxu1 %v10345_v47  ;;  %v10322_v47 = vld [vmem:[%s13241_s9 + $0x108] sm:$0xff]  }
 0x6a2   : > { %7603 = vmatpush1.bf16.msra.mxu1 %v10343_v22 }
 0x6a7   : > { %9388 = vmatmul.mubr.msk.bf16.vlgmr.msra.gmra.mrb[44].mxu0 %vm4825_vm13, %v10310_v51  ;;  %v10348_v51 = vld [vmem:[%s13237_s5 + $0xac] ss:$12 sps:$4 sm:$0xff]  }
 0x6a8   : > { %6260 = vmatpush1.bf16.msra.mxu0 %v6223_v34  ;;  %9391 = vmatprep.mubr.msk.bf16.mxu0 %vm4825_vm13, %v10311_v19  ;;  %v6489_v19 = vsel %vm3228_vm11, %v6469_v52, %v12726_v29  ;;  %v10317_v34 = vld [vmem:[%s13241_s9 + $0xe0] sm:$0xff]  }
 0x6a9   : > { %6261 = vmatprep.subr.bf16.mxu0 %v6227_v63  ;;  %7604 = vmatprep.subr.bf16.mxu1 %v10348_v51  ;;  %v10357_v63 = vld [vmem:[%s13237_s5 + $0xf4] ss:$12 sps:$4 sm:$0xff]   ;;  %v10324_v51 = vld [vmem:[%s13241_s9 + $0x118] sm:$0xff]  }
 0x6aa   : > { %7605 = vmatpush1.bf16.msra.mxu1 %v10346_v42  ;;  %v10364_v42 = vld [vmem:[%s13237_s5 + $0x138] ss:$12 sps:$4 sm:$0xff]  }
 0x6ab   : > { %7606 = vmatprep.subr.bf16.mxu1 %v10351_v57  ;;  %v10370_v57 = vld [vmem:[%s13237_s5 + $0x168] ss:$12 sps:$4 sm:$0xff]  }
 0x6ac   : > { %6262 = vmatpush1.bf16.msra.mxu0 %v6226_v32  ;;  %v6484_v32 = vsel %vm3228_vm11, %v12672_v26, %v6457_v44  ;;  %v10361_v26 = vld [vmem:[%s13237_s5 + $0x120] ss:$12 sps:$4 sm:$0xff]  }
 0x6ad   : > { %6263 = vmatprep.subr.bf16.mxu0 %v6230_v28  ;;  %v12784_v28 = vpop.permute.xlu1 %6713 }
 0x6ae   : > { %7607 = vmatpush1.bf16.msra.mxu1 %v10349_v25 }
 0x6af   : > { %9392 = vmatmul.mubr.msk.bf16.gmra.mrb[48].mxu0 %vm4825_vm13, %v10312_v10  ;;  %v6492_v10 = vsel %vm3228_vm11, %v6477_v15, %v6479_v14  ;;  %7608 = vmatprep.subr.bf16.mxu1 %v10354_v45 }
 0x6b0   : > { %6264 = vmatpush1.bf16.msra.mxu0 %v6229_v48  ;;  %6291 = vmatprep.mubr.bf16.mxu0 %v10437_v2  ;;  %v10360_v48 = vld [vmem:[%s13237_s5 + $0x10c] ss:$12 sps:$4 sm:$0xff]  }
 0x6b1   : > { %6265 = vmatprep.subr.bf16.mxu0 %v6233_v41  ;;  %v6487_v41 = vsel %vm3228_vm11, %v12712_v11, %v6465_v46  ;;  %v6481_v49 = vpop.permute.xlu1 %6480 }
 0x6b2   : > { %7609 = vmatpush1.bf16.msra.mxu1 %v10352_v37 }
 0x6b3   : > { %7610 = vmatprep.subr.bf16.mxu1 %v10357_v63 }
 0x6b4   : > { %6266 = vmatpush1.bf16.msra.mxu0 %v6232_v58  ;;  %v10363_v58 = vld [vmem:[%s13237_s5 + $0x124] ss:$12 sps:$4 sm:$0xff]  }
 0x6b5   : > { %9395 = vmatprep.subr.bf16.mxu0 %v6225_v1  ;;  %v6720_v59 = vpop.permute.xlu1 %6719 }
 0x6b6   : > { %7611 = vmatpush1.bf16.msra.mxu1 %v10355_v20 }
 0x6b7   : > { %8830 = vmatmul.mubr.msk.bf16.vlgmr.msra.gmra.mrb[28].mxu0 %vm4825_vm13, %v10313_v61  ;;  %7612 = vmatprep.subr.bf16.mxu1 %v10360_v48 }
 0x6b8   : > { %9396 = vmatpush3.bf16.msra.mxu0 %v6225_v1  ;;  %6301 = vmatprep.mubr.bf16.mxu0 %v10437_v2  ;;  %v6712_v1 = vpop.permute.xlu0 %6711 }
 0x6b9   : > { %9397 = vmatprep.subr.bf16.mxu0 %v6228_v55  ;;  %v6742_v27 = vsel %vm3480_vm12, %v6712_v1, %v12784_v28 }
 0x6ba   : > { %7613 = vmatpush1.bf16.msra.mxu1 %v10358_v31 }
 0x6bb   : > { %7614 = vmatprep.subr.bf16.mxu1 %v10363_v58 }
 0x6bc   : > { %9398 = vmatpush3.bf16.msra.mxu0 %v6228_v55  ;;  %v6493_v55 = vsel %vm3228_vm11, %v6479_v14, %v6481_v49  ;;  %v10367_v14 = vld [vmem:[%s13237_s5 + $0x150] ss:$12 sps:$4 sm:$0xff]  }
 0x6bd   : > { %9399 = vmatprep.subr.bf16.mxu0 %v6231_v56 }
 0x6be   : > { %7615 = vmatpush1.bf16.msra.mxu1 %v10361_v26 }
 0x6bf   : > { %8831 = vmatmul.mubr.msk.bf16.gmra.mrb[32].mxu0 %vm4825_vm13, %v10314_v16 }
 0x6c0   : > { %9400 = vmatpush3.bf16.msra.mxu0 %v6231_v56  ;;  %6311 = vmatprep.mubr.bf16.mxu0 %v10437_v2  ;;  %v10319_v56 = vld [vmem:[%s13241_s9 + $0xf0] sm:$0xff]  }
 0x6c1   : > { %9401 = vmatprep.subr.bf16.mxu0 %v6234_v3 }
 0x6c4   : > { %9402 = vmatpush3.bf16.msra.mxu0 %v6234_v3  ;;  %v6718_v3 = vpop.permute.xlu1 %6717 }
 0x6c5   : > { %6518 = vmatprep.subr.bf16.mxu0 %v6483_v23  ;;  %v6744_v23 = vsel %vm3480_vm12, %v6718_v3, %v6720_v59 }
 0x6c7   : > { %8832 = vmatmul.mubr.msk.bf16.gmra.mrb[36].mxu0 %vm4825_vm13, %v10315_v8 }
 0x6c8   : > { %6321 = vmatprep.mubr.bf16.mxu0 %v10437_v2  ;;  %v6730_v21 = vpop.permute.xlu1 %6729 }
 0x6cc   : > { %v6736_v9 = vpop.permute.xlu1 %6735 }
 0x6cf   : > { %8833 = vmatmul.mubr.msk.bf16.gmra.mrb[40].mxu0 %vm4825_vm13, %v10316_v54 }
 0x6d0   : > { %9403 = vmatprep.mubr.msk.bf16.mxu0 %vm4825_vm13, %v10313_v61  ;;  %v6490_v61 = vsel %vm3228_vm11, %v12726_v29, %v6473_v0  ;;  %v6734_v40 = vpop.permute.xlu1 %6733 }
 0x6d1   : > { %v6750_v12 = vsel %vm3480_vm12, %v6734_v40, %v6736_v9 }
 0x6d4   : > { %v6724_v29 = vpop.permute.xlu1 %6723 }
 0x6d7   : > { %9404 = vmatmul.mubr.msk.bf16.vlgmr.msra.gmra.mrb[44].mxu0 %vm4825_vm13, %v10314_v16  ;;  %v6710_v16 = vpop.permute.xlu0 %6709 }
 0x6d8   : > { %6519 = vmatpush1.bf16.msra.mxu0 %v6482_v43  ;;  %9407 = vmatprep.mubr.msk.bf16.mxu0 %vm4825_vm13, %v10315_v8  ;;  %v6741_v39 = vsel %vm3480_vm12, %v6710_v16, %v6712_v1  ;;  %v6740_v15 = vpop.permute.xlu1 %6739  ;;  %v10323_v43 = vld [vmem:[%s13241_s9 + $0x110] sm:$0xff]  }
 0x6d9   : > { %6520 = vmatprep.subr.bf16.mxu0 %v6486_v35  ;;  %v10366_v35 = vld [vmem:[%s13237_s5 + $0x13c] ss:$12 sps:$4 sm:$0xff]  }
 0x6da   : > { %7616 = vmatprep.subr.bf16.mxu1 %v10366_v35 }
 0x6db   : > { %v6722_v7 = vpop.permute.xlu0 %6721  ;;  %7617 = vmatpush1.bf16.msra.mxu1 %v10364_v42  ;;  %v10379_v42 = vld [vmem:[%s13237_s5 + $0x1b0] ss:$12 sps:$4 sm:$0xff]  }
 0x6dc   : > { %6521 = vmatpush1.bf16.msra.mxu0 %v6485_v36  ;;  %v6745_v8 = vsel %vm3480_vm12, %v6720_v59, %v6722_v7  ;;  %v6746_v33 = vsel %vm3480_vm12, %v6722_v7, %v6724_v29  ;;  %v10369_v36 = vld [vmem:[%s13237_s5 + $0x154] ss:$12 sps:$4 sm:$0xff]  }
 0x6dd   : > { %6522 = vmatprep.subr.bf16.mxu0 %v6489_v19  ;;  %7618 = vmatprep.subr.bf16.mxu1 %v10369_v36  ;;  %v10375_v19 = vld [vmem:[%s13237_s5 + $0x184] ss:$12 sps:$4 sm:$0xff]  }
 0x6df   : > { %9408 = vmatmul.mubr.msk.bf16.gmra.mrb[48].mxu0 %vm4825_vm13, %v10316_v54  ;;  %v6728_v5 = vpop.permute.xlu0 %6727  ;;  %7619 = vmatpush1.bf16.msra.mxu1 %v10367_v14 }
 0x6e0   : > { %6523 = vmatpush1.bf16.msra.mxu0 %v6488_v4  ;;  %6550 = vmatprep.mubr.bf16.mxu0 %v10437_v2  ;;  %v6748_v60 = vsel %vm3480_vm12, %v6728_v5, %v6730_v21  ;;  %v12884_v4 = vpop.permute.xlu1 %6954 }
 0x6e1   : > { %6524 = vmatprep.subr.bf16.mxu0 %v6492_v10  ;;  %7620 = vmatprep.subr.bf16.mxu1 %v10372_v38 }
 0x6e3   : > { %v6726_v50 = vpop.permute.xlu0 %6725  ;;  %7621 = vmatpush1.bf16.msra.mxu1 %v10370_v57  ;;  %v10384_v57 = vld [vmem:[%s13237_s5 + $0x1cc] ss:$12 sps:$4 sm:$0xff]  }
 0x6e4   : > { %6525 = vmatpush1.bf16.msra.mxu0 %v6491_v18  ;;  %v6747_v11 = vsel %vm3480_vm12, %v6726_v50, %v6728_v5  ;;  %7663 = vmatprep.subr.bf16.mxu1 %v10375_v19  ;;  %v12888_v10 = vpop.permute.xlu1 %7026  ;;  %v10373_v50 = vld [vmem:[%s13237_s5 + $0x180] ss:$12 sps:$4 sm:$0xff]  }
 0x6e5   : > { %9411 = vmatprep.subr.bf16.mxu0 %v6484_v32 }
 0x6e7   : > { %8850 = vmatmul.mubr.msk.bf16.vlgmr.msra.gmra.mrb[28].mxu0 %vm4825_vm13, %v10317_v34  ;;  %v6738_v13 = vpop.permute.xlu0 %6737 }
 0x6e8   : > { %9412 = vmatpush3.bf16.msra.mxu0 %v6484_v32  ;;  %6560 = vmatprep.mubr.bf16.mxu0 %v10437_v2  ;;  %v6751_v17 = vsel %vm3480_vm12, %v6736_v9, %v6738_v13  ;;  %v6752_v22 = vsel %vm3480_vm12, %v6738_v13, %v6740_v15  ;;  %v12892_v46 = vpop.permute.xlu1 %6964 }
 0x6e9   : > { %9413 = vmatprep.subr.bf16.mxu0 %v6487_v41 }
 0x6eb   : > { %v6716_v54 = vpop.permute.xlu0 %6715 }
 0x6ec   : > { %9414 = vmatpush3.bf16.msra.mxu0 %v6487_v41  ;;  %v6743_v52 = vsel %vm3480_vm12, %v12784_v28, %v6716_v54  ;;  %v12900_v41 = vpop.permute.xlu1 %7036  ;;  %v10376_v54 = vld [vmem:[%s13237_s5 + $0x198] ss:$12 sps:$4 sm:$0xff]  }
 0x6ed   : > { %9415 = vmatprep.subr.bf16.mxu0 %v6490_v61 }
 0x6ef   : > { %8851 = vmatmul.mubr.msk.bf16.gmra.mrb[32].mxu0 %vm4825_vm13, %v10318_v62  ;;  %v6732_v6 = vpop.permute.xlu0 %6731 }
 0x6f0   : > { %9416 = vmatpush3.bf16.msra.mxu0 %v6490_v61  ;;  %6570 = vmatprep.mubr.bf16.mxu0 %v10437_v2  ;;  %v6749_v30 = vsel %vm3480_vm12, %v6730_v21, %v6732_v6 }
 0x6f1   : > { %9417 = vmatprep.subr.bf16.mxu0 %v6493_v55 }
 0x6f3   : > { %v12882_v25 = vpop.permute.xlu0 %6949 }
 0x6f4   : > { %9418 = vmatpush3.bf16.msra.mxu0 %v6493_v55 }
 0x6f5   : > { %6777 = vmatprep.subr.bf16.mxu0 %v6742_v27 }
 0x6f7   : > { %8852 = vmatmul.mubr.msk.bf16.gmra.mrb[36].mxu0 %vm4825_vm13, %v10319_v56  ;;  %v12886_v45 = vpop.permute.xlu0 %7021 }
 0x6f8   : > { %6580 = vmatprep.mubr.bf16.mxu0 %v10437_v2 }
 0x6fb   : > { %v12890_v44 = vpop.permute.xlu0 %6959 }
 0x6ff   : > { %8853 = vmatmul.mubr.msk.bf16.gmra.mrb[40].mxu0 %vm4825_vm13, %v10320_v53  ;;  %v12895_v63 = vpop.permute.xlu0 %7031 }
 0x700   : > { %9419 = vmatprep.mubr.msk.bf16.mxu0 %vm4825_vm13, %v10317_v34 }
 0x703   : > { %v12906_v26 = vpop.permute.xlu0 %6969 }
 0x707   : > { %9420 = vmatmul.mubr.msk.bf16.vlgmr.msra.gmra.mrb[44].mxu0 %vm4825_vm13, %v10318_v62  ;;  %v12929_v40 = vpop.permute.xlu0 %7041 }
 0x708   : > { %6778 = vmatpush1.bf16.msra.mxu0 %v6741_v39  ;;  %9423 = vmatprep.mubr.msk.bf16.mxu0 %vm4825_vm13, %v10319_v56 }
 0x709   : > { %6779 = vmatprep.subr.bf16.mxu0 %v6745_v8 }
 0x70b   : > { %v12954_v19 = vpop.permute.xlu0 %6979 }
 0x70c   : > { %6780 = vmatpush1.bf16.msra.mxu0 %v6744_v23  ;;  %v10378_v23 = vld [vmem:[%s13237_s5 + $0x19c] ss:$12 sps:$4 sm:$0xff]  }
 0x70d   : > { %6781 = vmatprep.subr.bf16.mxu0 %v6748_v60 }
 0x70f   : > { %9424 = vmatmul.mubr.msk.bf16.gmra.mrb[48].mxu0 %vm4825_vm13, %v10320_v53  ;;  %v12911_v53 = vpop.permute.xlu1 %6974 }
 0x710   : > { %6782 = vmatpush1.bf16.msra.mxu0 %v6747_v11  ;;  %6809 = vmatprep.mubr.bf16.mxu0 %v10437_v2 }
 0x711   : > { %6783 = vmatprep.subr.bf16.mxu0 %v6751_v17 }
 0x713   : > { %v12938_v29 = vpop.permute.xlu1 %7046 }
 0x714   : > { %6784 = vmatpush1.bf16.msra.mxu0 %v6750_v12 }
 0x715   : > { %9427 = vmatprep.subr.bf16.mxu0 %v6743_v52 }
 0x717   : > { %8870 = vmatmul.mubr.msk.bf16.vlgmr.msra.gmra.mrb[28].mxu0 %vm4825_vm13, %v10321_v24 }
 0x718   : > { %9428 = vmatpush3.bf16.msra.mxu0 %v6743_v52  ;;  %6819 = vmatprep.mubr.bf16.mxu0 %v10437_v2  ;;  %v10381_v52 = vld [vmem:[%s13237_s5 + $0x1b4] ss:$12 sps:$4 sm:$0xff]  }
 0x719   : > { %9429 = vmatprep.subr.bf16.mxu0 %v6746_v33 }
 0x71c   : > { %9430 = vmatpush3.bf16.msra.mxu0 %v6746_v33 }
 0x71d   : > { %9431 = vmatprep.subr.bf16.mxu0 %v6749_v30 }
 0x71f   : > { %8871 = vmatmul.mubr.msk.bf16.gmra.mrb[32].mxu0 %vm4825_vm13, %v10322_v47 }
 0x720   : > { %9432 = vmatpush3.bf16.msra.mxu0 %v6749_v30  ;;  %6829 = vmatprep.mubr.bf16.mxu0 %v10437_v2 }
 0x721   : > { %9433 = vmatprep.subr.bf16.mxu0 %v6752_v22 }
 0x724   : > { %9434 = vmatpush3.bf16.msra.mxu0 %v6752_v22 }
 0x727   : > { %8872 = vmatmul.mubr.msk.bf16.gmra.mrb[36].mxu0 %vm4825_vm13, %v10323_v43 }
 0x728   : > { %6839 = vmatprep.mubr.bf16.mxu0 %v10437_v2 }
 0x72f   : > { %8873 = vmatmul.mubr.msk.bf16.gmra.mrb[40].mxu0 %vm4825_vm13, %v10324_v51 }
 0x730   : > { %9435 = vmatprep.mubr.msk.bf16.mxu0 %vm4825_vm13, %v10321_v24 }
 0x737   : > { %9436 = vmatmul.mubr.msk.bf16.vlgmr.msra.gmra.mrb[44].mxu0 %vm4825_vm13, %v10322_v47 }
 0x738   : > { %9439 = vmatprep.mubr.msk.bf16.mxu0 %vm4825_vm13, %v10323_v43 }
 0x73f   : > { %9440 = vmatmul.mubr.msk.bf16.gmra.mrb[48].mxu0 %vm4825_vm13, %v10324_v51 }
 0x7ea   : > { %v6811_v37 = vpop.f32.mrb[28].mxu0 }
 0x7eb   : > { %v6987_v18 = vmul.f32 %v12882_v25, %v6811_v37  ;;  %v6813_v34 = vpop.f32.mrb[29].mxu0 }
 0x7ec   : > { %v6988_v32 = vmul.f32 %v12882_v25, %v6813_v34  ;;  %v6815_v20 = vpop.f32.mrb[30].mxu0 }
 0x7ed   : > { %v7059_v0 = vadd.f32 %v12886_v45, %v6987_v18  ;;  %v6990_v28 = vmul.f32 %v12884_v4, %v6815_v20  ;;  %v6817_v48 = vpop.f32.mrb[31].mxu0 }
 0x7ee   : > { %v7060_v31 = vadd.f32 %v12886_v45, %v6988_v32  ;;  %v6991_v62 = vmul.f32 %v12884_v4, %v6817_v48  ;;  %v12961_v32 = vpop.permute.xlu1 %6984 }
 0x7ef   : > { %v7062_v58 = vadd.f32 %v12888_v10, %v6990_v28  ;;  %v7083_v1 = vmax.f32 %v7059_v0, 0.0  ;;  %v10382_v0 = vld [vmem:[%s13237_s5 + $0x1c8] ss:$12 sps:$4 sm:$0xff]  }
 0x7f0   : > { %v7063_v61 = vadd.f32 %v12888_v10, %v6991_v62  ;;  %v7084_v55 = vmax.f32 %v7060_v31, 0.0  ;;  %v10387_v31 = vld [vmem:[%s13237_s5 + $0x1e4] ss:$12 sps:$4 sm:$0xff]  }
 0x7f1   : > { %v7086_v49 = vmax.f32 %v7062_v58, 0.0 }
 0x7f2   : > { %v7087_v16 = vmax.f32 %v7063_v61, 0.0  ;;  %v6821_v56 = vpop.f32.mrb[32].mxu0 }
 0x7f3   : > { %v12908_v27 = vpack.c.bf16 %v7086_v49, %v7083_v1  ;;  %v6993_v59 = vmul.f32 %v12890_v44, %v6821_v56  ;;  %v6823_v7 = vpop.f32.mrb[33].mxu0 }
 0x7f4   : > { %v6994_v3 = vmul.f32 %v12890_v44, %v6823_v7  ;;  %v6825_v5 = vpop.f32.mrb[34].mxu0  ;;  %v12914_v21 = vpack.c.bf16 %v7087_v16, %v7084_v55  ;;  %v12973_v16 = vpop.permute.xlu0 %7051 }
 0x7f5   : > { %v7065_v39 = vadd.f32 %v12895_v63, %v6993_v59  ;;  %v6996_v8 = vmul.f32 %v12892_v46, %v6825_v5  ;;  %v6827_v9 = vpop.f32.mrb[35].mxu0 }
 0x7f6   : > { %v7066_v13 = vadd.f32 %v12895_v63, %v6994_v3  ;;  %v6997_v60 = vmul.f32 %v12892_v46, %v6827_v9  ;;  %7622 = vmatprep.mubr.bf16.mxu1 %v12914_v21  ;;  %v10385_v3 = vld [vmem:[%s13237_s5 + $0x1e0] ss:$12 sps:$4 sm:$0xff]   ;;  %v7057_v9 = vpop.permute.xlu1 %7056 }
 0x7f7   : > { %v7068_v11 = vadd.f32 %v12900_v41, %v6996_v8  ;;  %7623 = vmatmul.mubr.bf16.vlgmr.msra.gmra.mrb[72].mxu1 %v12908_v27  ;;  %v7089_v12 = vmax.f32 %v7065_v39, 0.0  ;;  %v10390_v8 = vld [vmem:[%s13237_s5 + $0x1fc] ss:$12 sps:$4 sm:$0xff]  }
 0x7f8   : > { %v7069_v17 = vadd.f32 %v12900_v41, %v6997_v60  ;;  %7664 = vmatpush1.bf16.msra.mxu1 %v10373_v50  ;;  %v7090_v33 = vmax.f32 %v7066_v13, 0.0  ;;  %v7207_v60 = vld [vmem:[%s13237_s5 + $0x210] sm:$0xff] }
 0x7f9   : > { %v7092_v24 = vmax.f32 %v7068_v11, 0.0  ;;  %7665 = vmatprep.subr.bf16.mxu1 %v10378_v23 }
 0x7fa   : > { %v7093_v6 = vmax.f32 %v7069_v17, 0.0  ;;  %v6831_v47 = vpop.f32.mrb[36].mxu0 }
 0x7fb   : > { %v6999_v30 = vmul.f32 %v12906_v26, %v6831_v47  ;;  %v6833_v15 = vpop.f32.mrb[37].mxu0  ;;  %v12941_v22 = vpack.c.bf16 %v7092_v24, %v7089_v12 }
 0x7fc   : > { %v7000_v43 = vmul.f32 %v12906_v26, %v6833_v15  ;;  %v6835_v51 = vpop.f32.mrb[38].mxu0  ;;  %v12944_v35 = vpack.c.bf16 %v7093_v6, %v7090_v33  ;;  %7666 = vmatpush1.bf16.msra.mxu1 %v10376_v54  ;;  %v10388_v54 = vld [vmem:[%s13237_s5 + $0x1f8] ss:$12 sps:$4 sm:$0xff]   ;;  %v8944_v33 = vcombine.low %v7207_v60, %v7207_v60 }
 0x7fd   : > { %v7071_v36 = vadd.f32 %v12929_v40, %v6999_v30  ;;  %v7002_v14 = vmul.f32 %v12911_v53, %v6835_v51  ;;  %v6837_v38 = vpop.f32.mrb[39].mxu0  ;;  %7667 = vmatprep.subr.bf16.mxu1 %v10381_v52  ;;  %v8945_v52 = vcombine.high %v7207_v60, %v7207_v60  ;;  %v10401_v60 = vld [vmem:[%s13237_s5 + $0x128] ss:$12 sps:$4 sm:$0xff]  }
 0x7fe   : > { %v7072_v37 = vadd.f32 %v12929_v40, %v7000_v43  ;;  %v7003_v18 = vmul.f32 %v12911_v53, %v6837_v38  ;;  %7632 = vmatprep.mubr.bf16.mxu1 %v12944_v35 }
 0x7ff   : > { %v7074_v34 = vadd.f32 %v12938_v29, %v7002_v14  ;;  %7633 = vmatmul.mubr.bf16.gmra.mrb[76].mxu1 %v12941_v22  ;;  %v7095_v28 = vmax.f32 %v7071_v36, 0.0 }
 0x800   : > { %v7075_v20 = vadd.f32 %v12938_v29, %v7003_v18  ;;  %7668 = vmatpush1.bf16.msra.mxu1 %v10379_v42  ;;  %v7096_v62 = vmax.f32 %v7072_v37, 0.0  ;;  %v7582_v18 = vsel %vm1387_vm2, %v8944_v33, 0  ;;  %v10408_v33 = vld [vmem:[%s13237_s5 + $0xb0] ss:$12 sps:$4 sm:$0xff]  }
 0x801   : > { %v7098_v48 = vmax.f32 %v7074_v34, 0.0  ;;  %7669 = vmatprep.subr.bf16.mxu1 %v10384_v57 }
 0x802   : > { %v7099_v58 = vmax.f32 %v7075_v20, 0.0  ;;  %v6841_v61 = vpop.f32.mrb[40].mxu0 }
 0x803   : > { %v7005_v1 = vmul.f32 %v12954_v19, %v6841_v61  ;;  %v6843_v49 = vpop.f32.mrb[41].mxu0  ;;  %v12971_v55 = vpack.c.bf16 %v7098_v48, %v7095_v28 }
 0x804   : > { %v7006_v56 = vmul.f32 %v12954_v19, %v6843_v49  ;;  %v6845_v59 = vpop.f32.mrb[42].mxu0  ;;  %v12976_v7 = vpack.c.bf16 %v7099_v58, %v7096_v62  ;;  %7670 = vmatpush1.bf16.msra.mxu1 %v10382_v0 }
 0x805   : > { %v7077_v5 = vadd.f32 %v12973_v16, %v7005_v1  ;;  %v7008_v50 = vmul.f32 %v12961_v32, %v6845_v59  ;;  %v6847_v39 = vpop.f32.mrb[43].mxu0  ;;  %7671 = vmatprep.subr.bf16.mxu1 %v10387_v31  ;;  %v10395_v59 = vld [vmem:[%s13237_s5 + $0xe0] ss:$12 sps:$4 sm:$0xff]  }
 0x806   : > { %v7078_v23 = vadd.f32 %v12973_v16, %v7006_v56  ;;  %v7009_v13 = vmul.f32 %v12961_v32, %v6847_v39  ;;  %7642 = vmatprep.mubr.bf16.mxu1 %v12976_v7 }
 0x807   : > { %v7080_v11 = vadd.f32 %v7057_v9, %v7008_v50  ;;  %7643 = vmatmul.mubr.bf16.gmra.mrb[80].mxu1 %v12971_v55  ;;  %v7101_v12 = vmax.f32 %v7077_v5, 0.0 }
 0x808   : > { %v7081_v17 = vadd.f32 %v7057_v9, %v7009_v13  ;;  %7672 = vmatpush1.bf16.msra.mxu1 %v10385_v3  ;;  %v7102_v6 = vmax.f32 %v7078_v23, 0.0  ;;  %v10399_v23 = vld [vmem:[%s13237_s5 + $0x110] ss:$12 sps:$4 sm:$0xff]  }
 0x809   : > { %v7104_v24 = vmax.f32 %v7080_v11, 0.0  ;;  %7673 = vmatprep.subr.bf16.mxu1 %v10390_v8  ;;  %v10400_v13 = vld [vmem:[%s13237_s5 + $0x50] ss:$12 sps:$4 sm:$0xff]   ;;  %v10402_v11 = vld [vmem:[%s13237_s5 + $0x68] ss:$12 sps:$4 sm:$0xff]  }
 0x80a   : > { %v7105_v47 = vmax.f32 %v7081_v17, 0.0  ;;  %v9437_v30 = vpop.f32.mrb[44].mxu0  ;;  %v10403_v17 = vld [vmem:[%s13237_s5 + $0x140] ss:$12 sps:$4 sm:$0xff]  }
 0x80b   : > { %v6995_v15 = vmul.f32 %v9437_v30, %v12890_v44  ;;  %v6884_v43 = vpop.f32.mrb[45].mxu0  ;;  %v12997_v51 = vpack.c.bf16 %v7104_v24, %v7101_v12  ;;  %v10393_v44 = vld [vmem:[%s13237_s5 + $0xc8] ss:$12 sps:$4 sm:$0xff]   ;;  %v10405_v12 = vld [vmem:[%s13237_s5 + $0x158] ss:$12 sps:$4 sm:$0xff]  }
 0x80c   : > { %v6989_v42 = vmul.f32 %v12882_v25, %v6884_v43  ;;  %v9438_v36 = vpop.f32.mrb[46].mxu0  ;;  %v13000_v14 = vpack.c.bf16 %v7105_v47, %v7102_v6  ;;  %7674 = vmatpush1.bf16.msra.mxu1 %v10388_v54  ;;  %v10404_v54 = vld [vmem:[%s13237_s5 + $0x80] ss:$12 sps:$4 sm:$0xff]   ;;  %v10406_v24 = vld [vmem:[%s13237_s5 + $0x98] ss:$12 sps:$4 sm:$0xff]  }
 0x80d   : > { %v7067_v38 = vadd.f32 %v12895_v63, %v6995_v15  ;;  %v6998_v57 = vmul.f32 %v9438_v36, %v12892_v46  ;;  %v6887_v37 = vpop.f32.mrb[47].mxu0  ;;  %8947 = vmatprep.subr.msk.bf16.mxu1 %vm1387_vm2, %v8945_v52  ;;  %v10407_v52 = vld [vmem:[%s13237_s5 + $0x170] ss:$12 sps:$4 sm:$0xff]   ;;  %v10409_v6 = vld [vmem:[%s13237_s5 + $0x188] ss:$12 sps:$4 sm:$0xff]  }
 0x80e   : > { %v7061_v34 = vadd.f32 %v12886_v45, %v6989_v42  ;;  %v6992_v25 = vmul.f32 %v12884_v4, %v6887_v37  ;;  %7652 = vmatprep.mubr.bf16.mxu1 %v13000_v14  ;;  %v10410_v47 = vld [vmem:[%s13237_s5 + $0x1a0] ss:$12 sps:$4 sm:$0xff]   ;;  %v10412_v30 = vld [vmem:[%s13237_s5 + $0x1d0] ss:$12 sps:$4 sm:$0xff]  }
 0x80f   : > { %v7070_v20 = vadd.f32 %v12900_v41, %v6998_v57  ;;  %7653 = vmatmul.mubr.bf16.gmra.mrb[84].mxu1 %v12997_v51  ;;  %v7091_v63 = vmax.f32 %v7067_v38, 0.0 }
 0x810   : > { %v7064_v46 = vadd.f32 %v12888_v10, %v6992_v25  ;;  %7676 = vmatpush1.bf16.msra.mxu1 %v7582_v18  ;;  %7695 = vmatprep.mubr.bf16.mxu1 %v10437_v2  ;;  %v7085_v28 = vmax.f32 %v7061_v34, 0.0  ;;  %v10394_v10 = vld [vmem:[%s13237_s5 + $0x8] ss:$12 sps:$4 sm:$0xff]  }
 0x811   : > { %v7094_v0 = vmax.f32 %v7070_v20, 0.0  ;;  %9117 = vmatprep.subr.bf16.mxu1 %v10393_v44 }
 0x812   : > { %v7088_v48 = vmax.f32 %v7064_v46, 0.0  ;;  %v9441_v31 = vpop.f32.mrb[48].mxu0 }
 0x813   : > { %v13016_v45 = vpack.c.bf16 %v7094_v0, %v7091_v63  ;;  %v7007_v4 = vmul.f32 %v9441_v31, %v12954_v19  ;;  %v6900_v62 = vpop.f32.mrb[49].mxu0 }
 0x814   : > { %v13019_v58 = vpack.c.bf16 %v7088_v48, %v7085_v28  ;;  %v7001_v41 = vmul.f32 %v12906_v26, %v6900_v62  ;;  %v9442_v61 = vpop.f32.mrb[50].mxu0  ;;  %v10416_v62 = vld [vmem:[%s13244_s12] sm:$0xff]  }
 0x815   : > { %v7079_v1 = vadd.f32 %v12973_v16, %v7007_v4  ;;  %v7010_v49 = vmul.f32 %v9442_v61, %v12961_v32  ;;  %v6903_v56 = vpop.f32.mrb[51].mxu0  ;;  %v10396_v32 = vld [vmem:[%s13237_s5 + $0x20] ss:$12 sps:$4 sm:$0xff]  }
 0x816   : > { %v7073_v19 = vadd.f32 %v12929_v40, %v7001_v41  ;;  %v7004_v3 = vmul.f32 %v12911_v53, %v6903_v56  ;;  %v10397_v53 = vld [vmem:[%s13237_s5 + $0xf8] ss:$12 sps:$4 sm:$0xff]   ;;  %v10446_v41 = vmov 0.0  }
 0x817   : > { %v7082_v5 = vadd.f32 %v7057_v9, %v7010_v49  ;;  %8948 = vmatmul.mubr.msk.bf16.vlgmr.msra.gmra.mrb[72].mxu1 %vm2220_vm6, %v13019_v58  ;;  %v7103_v16 = vmax.f32 %v7079_v1, 0.0 }
 0x818   : > { %v7076_v26 = vadd.f32 %v12938_v29, %v7004_v3  ;;  %9118 = vmatpush3.bf16.msra.mxu1 %v10394_v10  ;;  %7705 = vmatprep.mubr.bf16.mxu1 %v10437_v2  ;;  %v7097_v40 = vmax.f32 %v7073_v19, 0.0  ;;  %v10398_v29 = vld [vmem:[%s13237_s5 + $0x38] ss:$12 sps:$4 sm:$0xff]  }
 0x819   : > { %v7106_v50 = vmax.f32 %v7082_v5, 0.0  ;;  %9119 = vmatprep.subr.bf16.mxu1 %v10395_v59 }
 0x81a   : > { %v7100_v39 = vmax.f32 %v7076_v26, 0.0 }
 0x81b   : > { %v13042_v8 = vpack.c.bf16 %v7106_v50, %v7103_v16 }
 0x81c   : > { %v7115_v9 = vpack.c.bf16 %v7100_v39, %v7097_v40  ;;  %9120 = vmatpush3.bf16.msra.mxu1 %v10396_v32 }
 0x81d   : > { %9121 = vmatprep.subr.bf16.mxu1 %v10397_v53 }
 0x81f   : > { %8949 = vmatmul.mubr.msk.bf16.gmra.mrb[76].mxu1 %vm2220_vm6, %v13016_v45 }
 0x820   : > { %9122 = vmatpush3.bf16.msra.mxu1 %v10398_v29  ;;  %7715 = vmatprep.mubr.bf16.mxu1 %v10437_v2 }
 0x821   : > { %9123 = vmatprep.subr.bf16.mxu1 %v10399_v23 }
 0x824   : > { %9124 = vmatpush3.bf16.msra.mxu1 %v10400_v13 }
 0x825   : > { %9125 = vmatprep.subr.bf16.mxu1 %v10401_v60 }
 0x827   : > { %8950 = vmatmul.mubr.msk.bf16.gmra.mrb[80].mxu1 %vm2220_vm6, %v7115_v9 }
 0x828   : > { %9126 = vmatpush3.bf16.msra.mxu1 %v10402_v11  ;;  %7725 = vmatprep.mubr.bf16.mxu1 %v10437_v2 }
 0x829   : > { %9127 = vmatprep.subr.bf16.mxu1 %v10403_v17 }
 0x82c   : > { %9128 = vmatpush3.bf16.msra.mxu1 %v10404_v54 }
 0x82d   : > { %9129 = vmatprep.subr.bf16.mxu1 %v10405_v12 }
 0x82f   : > { %8951 = vmatmul.mubr.msk.bf16.gmra.mrb[84].mxu1 %vm2220_vm6, %v13042_v8 }
 0x830   : > { %9130 = vmatpush3.bf16.msra.mxu1 %v10406_v24  ;;  %7768 = vmatprep.mubr.bf16.mxu1 %v12914_v21  ;;  %v10411_v21 = vld [vmem:[%s13237_s5 + $0x1b8] ss:$12 sps:$4 sm:$0xff]  }
 0x831   : > { %9131 = vmatprep.subr.bf16.mxu1 %v10407_v52 }
 0x834   : > { %9132 = vmatpush3.bf16.msra.mxu1 %v10408_v33 }
 0x835   : > { %9443 = vmatprep.subr.bf16.mxu1 %v10409_v6 }
 0x837   : > { %7769 = vmatmul.mubr.bf16.vlgmr.msra.gmra.mrb[88].mxu1 %v12908_v27  ;;  %v10413_v27 = vld [vmem:[%s13237_s5 + $0x1e8] ss:$12 sps:$4 sm:$0xff]  }
 0x838   : > { %7776 = vmatprep.mubr.bf16.mxu1 %v12944_v35  ;;  %9444 = vmatpush3.bf16.msra.mxu1 %v10409_v6  ;;  %v10414_v35 = vld [vmem:[%s13237_s5 + $0x200] ss:$12 sps:$4 sm:$0xff]  }
 0x839   : > { %9445 = vmatprep.subr.bf16.mxu1 %v10410_v47 }
 0x83c   : > { %9446 = vmatpush3.bf16.msra.mxu1 %v10410_v47 }
 0x83d   : > { %9447 = vmatprep.subr.bf16.mxu1 %v10411_v21 }
 0x83f   : > { %7777 = vmatmul.mubr.bf16.gmra.mrb[92].mxu1 %v12941_v22  ;;  %v10415_v22 = vld [vmem:[%s13237_s5 + $0x218] ss:$0 sps:$4 sm:$0xff]  }
 0x840   : > { %7784 = vmatprep.mubr.bf16.mxu1 %v12976_v7  ;;  %9448 = vmatpush3.bf16.msra.mxu1 %v10411_v21  ;;  %v7588_v7 = vsel %vm1387_vm2, %v10415_v22, 0 }
 0x841   : > { %9449 = vmatprep.subr.bf16.mxu1 %v10412_v30 }
 0x844   : > { %9450 = vmatpush3.bf16.msra.mxu1 %v10412_v30 }
 0x845   : > { %9451 = vmatprep.subr.bf16.mxu1 %v10413_v27 }
 0x847   : > { %7785 = vmatmul.mubr.bf16.gmra.mrb[96].mxu1 %v12971_v55 }
 0x848   : > { %7792 = vmatprep.mubr.bf16.mxu1 %v13000_v14  ;;  %9452 = vmatpush3.bf16.msra.mxu1 %v10413_v27 }
 0x849   : > { %9453 = vmatprep.subr.bf16.mxu1 %v10414_v35 }
 0x84c   : > { %9454 = vmatpush3.bf16.msra.mxu1 %v10414_v35 }
 0x84d   : > { %9926 = vmatprep.subr.msk.bf16.mxu1 %vm1387_vm2, %v10415_v22 }
 0x84f   : > { %7793 = vmatmul.mubr.bf16.gmra.mrb[100].mxu1 %v12997_v51 }
 0x850   : > { %9457 = vmatprep.mubr.msk.bf16.mxu1 %vm2220_vm6, %v13019_v58  ;;  %9456 = vmatpush3.bf16.msra.mxu1 %v7588_v7 }
 0x857   : > { %9458 = vmatmul.mubr.msk.bf16.vlgmr.msra.gmra.mrb[104].mxu1 %vm2220_vm6, %v13016_v45 }
 0x858   : > { %9461 = vmatprep.mubr.msk.bf16.mxu1 %vm2220_vm6, %v7115_v9 }
 0x85f   : > { %9462 = vmatmul.mubr.msk.bf16.gmra.mrb[108].mxu1 %vm2220_vm6, %v13042_v8 }
 0x860   : > { %7932 = vmatprep.mubr.bf16.mxu1 %v10437_v2 }
 0x8ea   : > { %v7697_v55 = vpop.f32.mrb[72].mxu1 }
 0x8eb   : > { %v7699_v15 = vpop.f32.mrb[73].mxu1 }
 0x8ec   : > { %v7701_v43 = vpop.f32.mrb[74].mxu1 }
 0x8ed   : > { %v7866_v42 = vpack.c.bf16 %v7701_v43, %v7697_v55  ;;  %v7703_v36 = vpop.f32.mrb[75].mxu1 }
 0x8ee   : > { %v7867_v51 = vpack.c.bf16 %v7703_v36, %v7699_v15 }
 0x8f0   : > { %7900 = vmatprep.subr.bf16.mxu1 %v7867_v51 }
 0x8f1   : > { %7901 = vmatpush1.bf16.msra.mxu1 %v7866_v42 }
 0x8f2   : > { %v7707_v14 = vpop.f32.mrb[76].mxu1 }
 0x8f3   : > { %v7709_v38 = vpop.f32.mrb[77].mxu1 }
 0x8f4   : > { %v7711_v57 = vpop.f32.mrb[78].mxu1 }
 0x8f5   : > { %v7869_v37 = vpack.c.bf16 %v7711_v57, %v7707_v14  ;;  %v7713_v18 = vpop.f32.mrb[79].mxu1  ;;  %v13128_v14 = vpop.permute.xlu0 %7884 }
 0x8f6   : > { %v7870_v44 = vpack.c.bf16 %v7713_v18, %v7709_v38 }
 0x8f8   : > { %7902 = vmatprep.subr.bf16.mxu1 %v7870_v44 }
 0x8f9   : > { %7903 = vmatpush1.bf16.msra.mxu1 %v7869_v37 }
 0x8fa   : > { %v7717_v34 = vpop.f32.mrb[80].mxu1 }
 0x8fb   : > { %v7719_v25 = vpop.f32.mrb[81].mxu1 }
 0x8fc   : > { %v7721_v20 = vpop.f32.mrb[82].mxu1 }
 0x8fd   : > { %v7872_v2 = vpack.c.bf16 %v7721_v20, %v7717_v34  ;;  %v7723_v46 = vpop.f32.mrb[83].mxu1 }
 0x8fe   : > { %v7873_v63 = vpack.c.bf16 %v7723_v46, %v7719_v25 }
 0x900   : > { %7904 = vmatprep.subr.bf16.mxu1 %v7873_v63 }
 0x901   : > { %7905 = vmatpush1.bf16.msra.mxu1 %v7872_v2 }
 0x902   : > { %v7727_v0 = vpop.f32.mrb[84].mxu1 }
 0x903   : > { %v7729_v28 = vpop.f32.mrb[85].mxu1 }
 0x904   : > { %v7731_v48 = vpop.f32.mrb[86].mxu1 }
 0x905   : > { %v7875_v31 = vpack.c.bf16 %v7731_v48, %v7727_v0  ;;  %v7733_v45 = vpop.f32.mrb[87].mxu1 }
 0x906   : > { %v7876_v4 = vpack.c.bf16 %v7733_v45, %v7729_v28 }
 0x908   : > { %7906 = vmatprep.subr.bf16.mxu1 %v7876_v4 }
 0x909   : > { %7907 = vmatpush1.bf16.msra.mxu1 %v7875_v31 }
 0x90a   : > { %v9133_v58 = vpop.f32.mrb[88].mxu1  ;;  %9465 = vmatprep.subr.bf16.mxu1 %v10446_v41 }
 0x90b   : > { %v9134_v61 = vpop.f32.mrb[89].mxu1 }
 0x90c   : > { %v9135_v10 = vadd.f32 %v9134_v61, %v9133_v58  ;;  %v9136_v1 = vpop.f32.mrb[90].mxu1  ;;  %8957 = vmatmul.mubr.msk.bf16.vlgmr.msra.gmra.mrb[112].mxu1 %vm4825_vm13, %v10416_v62 }
 0x90d   : > { %v9137_v49 = vpop.f32.mrb[91].mxu1  ;;  %9473 = vmatprep.mubr.msk.bf16.mxu1 %vm10447_vm14, %v10446_v41 }
 0x90e   : > { %v9138_v56 = vadd.f32 %v9137_v49, %v9136_v1 }
 0x912   : > { %v9139_v59 = vpop.f32.mrb[92].mxu1 }
 0x913   : > { %v9140_v19 = vpop.f32.mrb[93].mxu1 }
 0x914   : > { %v9141_v3 = vadd.f32 %v9140_v19, %v9139_v59  ;;  %v9142_v5 = vpop.f32.mrb[94].mxu1 }
 0x915   : > { %v9143_v26 = vpop.f32.mrb[95].mxu1 }
 0x916   : > { %v9144_v32 = vadd.f32 %v9143_v26, %v9142_v5 }
 0x91a   : > { %v9145_v16 = vpop.f32.mrb[96].mxu1 }
 0x91b   : > { %v9146_v50 = vpop.f32.mrb[97].mxu1 }
 0x91c   : > { %v9147_v53 = vadd.f32 %v9146_v50, %v9145_v16  ;;  %v9148_v40 = vpop.f32.mrb[98].mxu1 }
 0x91d   : > { %v9149_v39 = vpop.f32.mrb[99].mxu1 }
 0x91e   : > { %v9150_v8 = vadd.f32 %v9149_v39, %v9148_v40 }
 0x922   : > { %v9151_v9 = vpop.f32.mrb[100].mxu1 }
 0x923   : > { %v9152_v29 = vpop.f32.mrb[101].mxu1 }
 0x924   : > { %v9153_v23 = vadd.f32 %v9152_v29, %v9151_v9  ;;  %v9154_v13 = vpop.f32.mrb[102].mxu1  ;;  %v13132_v29 = vpop.permute.xlu1 %7889 }
 0x925   : > { %v9155_v60 = vpop.f32.mrb[103].mxu1 }
 0x926   : > { %v9156_v11 = vadd.f32 %v9155_v60, %v9154_v13 }
 0x92a   : > { %v9459_v17 = vpop.f32.mrb[104].mxu1 }
 0x92b   : > { %v7844_v54 = vadd.f32 %v9459_v17, %v9141_v3  ;;  %v7835_v12 = vpop.f32.mrb[105].mxu1 }
 0x92c   : > { %v7836_v24 = vadd.f32 %v9135_v10, %v7835_v12  ;;  %v9460_v52 = vpop.f32.mrb[106].mxu1 }
 0x92d   : > { %v7847_v33 = vadd.f32 %v9460_v52, %v9144_v32  ;;  %v7838_v6 = vpop.f32.mrb[107].mxu1 }
 0x92e   : > { %v7839_v47 = vadd.f32 %v9138_v56, %v7838_v6 }
 0x92f   : > { %v7871_v21 = vpack.c.bf16 %v7847_v33, %v7844_v54 }
 0x930   : > { %v7868_v30 = vpack.c.bf16 %v7839_v47, %v7836_v24 }
 0x932   : > { %v9463_v27 = vpop.f32.mrb[108].mxu1  ;;  %9466 = vmatpush3.bf16.msra.mxu1 %v7868_v30 }
 0x933   : > { %v7860_v35 = vadd.f32 %v9463_v27, %v9153_v23  ;;  %v7851_v22 = vpop.f32.mrb[109].mxu1  ;;  %9467 = vmatprep.subr.bf16.mxu1 %v10446_v41 }
 0x934   : > { %v7852_v7 = vadd.f32 %v9147_v53, %v7851_v22  ;;  %v9464_v55 = vpop.f32.mrb[110].mxu1  ;;  %v8040_v53 = vlaneseq }
 0x935   : > { %v7863_v15 = vadd.f32 %v9464_v55, %v9156_v11  ;;  %v7854_v43 = vpop.f32.mrb[111].mxu1 }
 0x936   : > { %v7855_v42 = vadd.f32 %v9150_v8, %v7854_v43  ;;  %9468 = vmatpush3.bf16.msra.mxu1 %v7871_v21  ;;  %v8041_v9 = vshrl.u32 %v8040_v53, 7 }
 0x937   : > { %v7877_v36 = vpack.c.bf16 %v7863_v15, %v7860_v35  ;;  %9469 = vmatprep.subr.bf16.mxu1 %v10446_v41 }
 0x938   : > { %v7874_v51 = vpack.c.bf16 %v7855_v42, %v7852_v7  ;;  %v13135_v13 = vsub.s32 0, %v8041_v9  ;;  %v13137_v60 = vsub.s32 1, %v8041_v9  ;;  %v13139_v11 = vsub.s32 2, %v8041_v9 }
 0x939   : > { %v13141_v17 = vsub.s32 3, %v8041_v9  ;;  %v13143_v54 = vsub.s32 4, %v8041_v9  ;;  %v13145_v12 = vsub.s32 5, %v8041_v9  ;;  %v13147_v24 = vsub.s32 6, %v8041_v9 }
 0x93a   : > { %9470 = vmatpush3.bf16.msra.mxu1 %v7874_v51  ;;  %v13149_v52 = vsub.s32 7, %v8041_v9 }
 0x93b   : > { %9471 = vmatprep.subr.bf16.mxu1 %v10446_v41 }
 0x93e   : > { %9472 = vmatpush3.bf16.msra.mxu1 %v7877_v36 }
 0x941   : > { %9474 = vmatmul.mubr.msk.bf16.vlgmr.msra.gmra.mrb[116].mxu1 %vm4825_vm13, %v10416_v62 }
 0x9df   : > { %v7934_v38 = vpop.f32.mrb[112].mxu1 }
 0x9e0   : > { %v7935_v57 = vadd.f32 %v7934_v38, %v13128_v14  ;;  %v7936_v37 = vpop.f32.mrb[113].mxu1 }
 0x9e1   : > { %v7937_v18 = vadd.f32 %v7936_v37, %v13128_v14  ;;  %v7938_v44 = vpop.f32.mrb[114].mxu1 }
 0x9e2   : > { %v7984_v34 = vrot.slane %v7935_v57, 4  ;;  %v7940_v25 = vpop.f32.mrb[115].mxu1  ;;  %v7939_v23 = vadd.f32 %v7938_v44, %v13132_v29 }
 0x9e3   : > { %v7990_v20 = vrot.slane %v7937_v18, 4  ;;  %v7941_v33 = vadd.f32 %v7940_v25, %v13132_v29 }
 0x9e4   : > { %v7985_v2 = vmax.f32 %v7935_v57, %v7984_v34  ;;  %v8043_v6 = vrot.slane %v7939_v23, %v13135_v13  ;;  %v8061_v47 = vrot.slane %v7939_v23, %v13137_v60  ;;  %v8080_v21 = vrot.slane %v7939_v23, %v13139_v11 }
 0x9e5   : > { %v7991_v46 = vmax.f32 %v7937_v18, %v7990_v20  ;;  %v8099_v30 = vrot.slane %v7939_v23, %v13141_v17  ;;  %v8118_v27 = vrot.slane %v7939_v23, %v13143_v54  ;;  %v8137_v35 = vrot.slane %v7939_v23, %v13145_v12 }
 0x9e6   : > { %v7986_v63 = vrot.slane %v7985_v2, 2  ;;  %v8156_v22 = vrot.slane %v7939_v23, %v13147_v24  ;;  %v8175_v55 = vrot.slane %v7939_v23, %v13149_v52  ;;  %v8047_v15 = vrot.slane %v7941_v33, %v13135_v13 }
 0x9e7   : > { %v7992_v0 = vrot.slane %v7991_v46, 2  ;;  %v8065_v43 = vrot.slane %v7941_v33, %v13137_v60  ;;  %v8084_v42 = vrot.slane %v7941_v33, %v13139_v11  ;;  %v8103_v38 = vrot.slane %v7941_v33, %v13141_v17 }
 0x9e8   : > { %v7987_v28 = vmax.f32 %v7985_v2, %v7986_v63  ;;  %v8141_v37 = vrot.slane %v7941_v33, %v13145_v12  ;;  %v8160_v34 = vrot.slane %v7941_v33, %v13147_v24  ;;  %v8179_v25 = vrot.slane %v7941_v33, %v13149_v52 }
 0x9e9   : > { %v7993_v48 = vmax.f32 %v7991_v46, %v7992_v0 }
 0x9ea   : > { %v7988_v31 = vrot.slane %v7987_v28, 1 }
 0x9eb   : > { %v7994_v45 = vrot.slane %v7993_v48, 1 }
 0x9ec   : > { %v7989_v4 = vmax.f32 %v7987_v28, %v7988_v31 }
 0x9ed   : > { %v7995_v62 = vmax.f32 %v7993_v48, %v7994_v45 }
 0x9ee   : > { %v8003_v58 = vsub.f32 %v7935_v57, %v7989_v4  ;;  %v8122_v57 = vrot.slane %v7941_v33, %v13143_v54 }
 0x9ef   : > { %v8004_v41 = vsub.f32 %v7937_v18, %v7995_v62 }
 0x9f0   : > { %v8006_v61 = vmul.f32 1.442695, %v8003_v58 }
 0x9f1   : > { %v8008_v10 = vmul.f32 1.442695, %v8004_v41 }
 0x9f2   : > { %10417 = vpow2.f32 %v8006_v61 }
 0x9f3   : > { %10419 = vpow2.f32 %v8008_v10 }
 0x9fc   : > { %v10418_v1 = vpop.eup %10417 }
 0x9fd   : > { %v10420_v49 = vpop.eup %10419  ;;  %v8012_v56 = vrot.slane %v10418_v1, 4 }
 0x9fe   : > { %v8018_v59 = vrot.slane %v10420_v49, 4 }
 0x9ff   : > { %v8013_v19 = vadd.f32 %v10418_v1, %v8012_v56 }
 0xa00   : > { %v8019_v3 = vadd.f32 %v10420_v49, %v8018_v59 }
 0xa01   : > { %v8014_v5 = vrot.slane %v8013_v19, 2 }
 0xa02   : > { %v8020_v26 = vrot.slane %v8019_v3, 2 }
 0xa03   : > { %v8015_v32 = vadd.f32 %v8014_v5, %v8013_v19 }
 0xa04   : > { %v8021_v16 = vadd.f32 %v8020_v26, %v8019_v3 }
 0xa05   : > { %v8016_v50 = vrot.slane %v8015_v32, 1 }
 0xa06   : > { %v8022_v40 = vrot.slane %v8021_v16, 1 }
 0xa07   : > { %v8017_v39 = vadd.f32 %v8016_v50, %v8015_v32 }
 0xa08   : > { %v8023_v8 = vadd.f32 %v8022_v40, %v8021_v16 }
 0xa09   : > { %10421 = vrcp.f32 %v8017_v39 }
 0xa0a   : > { %10423 = vrcp.f32 %v8023_v8 }
 0xa13   : > { %v10422_v7 = vpop.eup %10421 }
 0xa14   : > { %v10424_v36 = vpop.eup %10423  ;;  %v8034_v51 = vmul.f32 %v10422_v7, %v10418_v1  ;;  %v7977_v18 = vpop.f32.mrb[116].mxu1 }
 0xa15   : > { %v8035_v44 = vmul.f32 %v10424_v36, %v10420_v49  ;;  %v7978_v20 = vadd.f32 %v7977_v18, %v13128_v14  ;;  %v9475_v2 = vpop.f32.mrb[117].mxu1 }
 0xa16   : > { %8037 = vst [vmem:[%s13165_s22] sm:$0xff] %v8034_v51  ;;  %v8052_v46 = vmul.f32 %v8043_v6, %v8034_v51  ;;  %v8070_v63 = vmul.f32 %v8061_v47, %v8034_v51  ;;  %v8089_v0 = vmul.f32 %v8080_v21, %v8034_v51  ;;  %v8108_v28 = vmul.f32 %v8099_v30, %v8034_v51  ;;  %v7980_v48 = vpop.f32.mrb[118].mxu1 }
 0xa17   : > { %8038 = vst [vmem:[%s13165_s22 + $0x8] sm:$0xff] %v8035_v44  ;;  %v8127_v31 = vmul.f32 %v8118_v27, %v8034_v51  ;;  %v8146_v45 = vmul.f32 %v8137_v35, %v8034_v51  ;;  %v8165_v4 = vmul.f32 %v8156_v22, %v8034_v51  ;;  %v8184_v62 = vmul.f32 %v8175_v55, %v8034_v51  ;;  %v9476_v58 = vpop.f32.mrb[119].mxu1 }
 0xa18   : > { %8055 = vst [vmem:[%s13177_s28] sm:$0xff] %v8052_v46  ;;  %8959 = vst [vmem:[%s13177_s28 + $0x18] sm:$0xff] %v8070_v63  ;;  %v8053_v14 = vmul.f32 %v8047_v15, %v8035_v44  ;;  %v8071_v41 = vmul.f32 %v8065_v43, %v8035_v44  ;;  %v8090_v61 = vmul.f32 %v8084_v42, %v8035_v44  ;;  %v7996_v19 = vsel %vm1048_vm1, %v7978_v20, -inf }
 0xa19   : > { %8962 = vst [vmem:[%s13177_s28 + $0x30] sm:$0xff] %v8089_v0  ;;  %8965 = vst [vmem:[%s13177_s28 + $0x48] sm:$0xff] %v8108_v28  ;;  %v8109_v10 = vmul.f32 %v8103_v38, %v8035_v44  ;;  %v8128_v1 = vmul.f32 %v8122_v57, %v8035_v44  ;;  %v8147_v49 = vmul.f32 %v8141_v37, %v8035_v44  ;;  %v7997_v3 = vrot.slane %v7996_v19, 4 }
 0xa1a   : > { %8968 = vst [vmem:[%s13177_s28 + $0x60] sm:$0xff] %v8127_v31  ;;  %8971 = vst [vmem:[%s13177_s28 + $0x78] sm:$0xff] %v8146_v45  ;;  %v8166_v56 = vmul.f32 %v8160_v34, %v8035_v44  ;;  %v8185_v59 = vmul.f32 %v8179_v25, %v8035_v44  ;;  %v7981_v30 = vadd.f32 %v7980_v48, %v13132_v29 }
 0xa1b   : > { %8974 = vst [vmem:[%s13177_s28 + $0x90] sm:$0xff] %v8165_v4  ;;  %8977 = vst [vmem:[%s13177_s28 + $0xa8] sm:$0xff] %v8184_v62  ;;  %v7998_v5 = vmax.f32 %v7996_v19, %v7997_v3 }
 0xa1c   : > { %8056 = vst [vmem:[%s13177_s28 + $0x8] sm:$0xff] %v8053_v14  ;;  %8960 = vst [vmem:[%s13177_s28 + $0x20] sm:$0xff] %v8071_v41  ;;  %v8051_v35 = vrot.slane %v7981_v30, %v13135_v13  ;;  %v8069_v7 = vrot.slane %v7981_v30, %v13137_v60  ;;  %v8088_v55 = vrot.slane %v7981_v30, %v13139_v11 }
 0xa1d   : > { %8963 = vst [vmem:[%s13177_s28 + $0x38] sm:$0xff] %v8090_v61  ;;  %8966 = vst [vmem:[%s13177_s28 + $0x50] sm:$0xff] %v8109_v10  ;;  %v7999_v26 = vrot.slane %v7998_v5, 2  ;;  %v8107_v15 = vrot.slane %v7981_v30, %v13141_v17  ;;  %v8126_v43 = vrot.slane %v7981_v30, %v13143_v54  ;;  %v8145_v42 = vrot.slane %v7981_v30, %v13145_v12 }
 0xa1e   : > { %8969 = vst [vmem:[%s13177_s28 + $0x68] sm:$0xff] %v8128_v1  ;;  %8972 = vst [vmem:[%s13177_s28 + $0x80] sm:$0xff] %v8147_v49  ;;  %v8164_v29 = vrot.slane %v7981_v30, %v13147_v24  ;;  %v8183_v13 = vrot.slane %v7981_v30, %v13149_v52 }
 0xa1f   : > { %8975 = vst [vmem:[%s13177_s28 + $0x98] sm:$0xff] %v8166_v56  ;;  %8978 = vst [vmem:[%s13177_s28 + $0xb0] sm:$0xff] %v8185_v59  ;;  %v8000_v32 = vmax.f32 %v7998_v5, %v7999_v26 }
 0xa21   : > { %v8001_v16 = vrot.slane %v8000_v32, 1 }
 0xa23   : > { %v8002_v50 = vmax.f32 %v8000_v32, %v8001_v16 }
 0xa25   : > { %v8005_v53 = vsub.f32 %v7978_v20, %v8002_v50 }
 0xa27   : > { %v8010_v40 = vmul.f32 1.442695, %v8005_v53 }
 0xa29   : > { %10425 = vpow2.f32 %v8010_v40 }
 0xa33   : > { %v10426_v39 = vpop.eup %10425 }
 0xa34   : > { %v8024_v8 = vsel %vm1048_vm1, %v10426_v39, 0.0 }
 0xa35   : > { %v8025_v9 = vrot.slane %v8024_v8, 4 }
 0xa37   : > { %v8026_v23 = vadd.f32 %v8025_v9, %v8024_v8 }
 0xa39   : > { %v8027_v33 = vrot.slane %v8026_v23, 2 }
 0xa3b   : > { %v8028_v6 = vadd.f32 %v8027_v33, %v8026_v23 }
 0xa3d   : > { %v8029_v47 = vrot.slane %v8028_v6, 1 }
 0xa3f   : > { %v8030_v21 = vadd.f32 %v8029_v47, %v8028_v6 }
 0xa41   : > { %10427 = vrcp.f32 %v8030_v21 }
 0xa4b   : > { %v10428_v27 = vpop.eup %10427 }
 0xa4c   : > { %v8036_v22 = vmul.f32 %v10428_v27, %v10426_v39 }
 0xa4e   : > { %8039 = vst.msk [vmem:[%s13165_s22 + $0x10] sm:$0xff] %vm1048_vm1, %v8036_v22  ;;  %v8054_v60 = vmul.f32 %v8051_v35, %v8036_v22  ;;  %v8072_v11 = vmul.f32 %v8069_v7, %v8036_v22  ;;  %v8091_v36 = vmul.f32 %v8088_v55, %v8036_v22  ;;  %v8110_v17 = vmul.f32 %v8107_v15, %v8036_v22 }
 0xa4f   : > { %v8129_v51 = vmul.f32 %v8126_v43, %v8036_v22  ;;  %v8148_v38 = vmul.f32 %v8145_v42, %v8036_v22  ;;  %v8167_v54 = vmul.f32 %v8164_v29, %v8036_v22  ;;  %v8186_v57 = vmul.f32 %v8183_v13, %v8036_v22 }
 0xa50   : > { %8057 = vst.msk [vmem:[%s13177_s28 + $0x10] sm:$0xff] %vm1048_vm1, %v8054_v60  ;;  %8961 = vst.msk [vmem:[%s13177_s28 + $0x28] sm:$0xff] %vm1048_vm1, %v8072_v11 }
 0xa51   : > { %8964 = vst.msk [vmem:[%s13177_s28 + $0x40] sm:$0xff] %vm1048_vm1, %v8091_v36  ;;  %8967 = vst.msk [vmem:[%s13177_s28 + $0x58] sm:$0xff] %vm1048_vm1, %v8110_v17 }
 0xa52   : > { %8970 = vst.msk [vmem:[%s13177_s28 + $0x70] sm:$0xff] %vm1048_vm1, %v8129_v51  ;;  %8973 = vst.msk [vmem:[%s13177_s28 + $0x88] sm:$0xff] %vm1048_vm1, %v8148_v38 }
 0xa53   : > { %8976 = vst.msk [vmem:[%s13177_s28 + $0xa0] sm:$0xff] %vm1048_vm1, %v8167_v54  ;;  %8979 = vst.msk [vmem:[%s13177_s28 + $0xb8] sm:$0xff] %vm1048_vm1, %v8186_v57 }
 0xa54 PF: > { %s26_s18 = sadd.s32 1, %s10435_s18  }
 0xa55   : > { %p23_p4 = scmp.ge.s32.totalorder %s26_s18, 4  }
 0xa57   :  { %25 = sbr.rel (!%p23_p4) target bundleno = 1 (0x1), region = 144 }

</bundles_post_ra>
